<compile_context>
chip_gen: v6e
topology: v6e:2x2x1
jax: 0.10.0
libtpu: 0.0.40
codegen_flags: <defaults>
</compile_context>

<pallas_src>
import math

import jax
import jax.numpy as jnp
from jax import lax
from jax.experimental import pallas as pl
from jax.experimental.pallas import tpu as pltpu

# ----------------------------- model config ---------------------------------
B = 2                 # batch
IN_CHANNELS = 4       # model input channels
H = W = 16            # spatial grid
LATENT = 32           # fno_layer_size / latent_channels
NUM_FNO_LAYERS = 2
MODES1 = MODES2 = 4   # num_fno_modes
PADDING = 8           # domain padding ("constant")
COORD_FEATURES = True
DEC_LAYER_SIZE = 16   # decoder FullyConnected(layer_size=16, num_layers=2)
DEC_NUM_LAYERS = 2
OUT_CHANNELS = 3      # decoder out_features


# ----------------------------- activations ----------------------------------
_SQRT_HALF = 0.7071067811865476


def _gelu(x):
    # exact erf formulation == torch.nn.GELU() default
    return 0.5 * x * (1.0 + lax.erf(x * _SQRT_HALF))


def _silu(x):
    # x * sigmoid(x); sigmoid via one tanh EUP op (exact identity)
    return x * (0.5 * (jnp.tanh(0.5 * x) + 1.0))


# ----------------------------- tiling helpers --------------------------------
def _choose_tile_n(n_vec, col_bytes, budget_bytes=12 << 20):
    """Largest multiple-of-128 N tile keeping double-buffered N blocks in budget."""
    t = (budget_bytes // max(1, 2 * col_bytes)) // 128 * 128
    return max(128, min(n_vec, t))


def _compiler_params(num_steps, vmem_est_bytes):
    return pltpu.CompilerParams(
        dimension_semantics=(("parallel",) if num_steps > 1 else ("arbitrary",)),
        vmem_limit_bytes=int(min(64 << 20, max(32 << 20, vmem_est_bytes))),
    )


# --------------------- fused pointwise MLP Pallas kernel ---------------------
def _make_fused_mlp_kernel(num_layers, acts, has_add):
    """kernel(x, w1, b1, ..., wL, bL, [add], out) in [C, N] layout."""
    def kernel(*refs):
        x_ref = refs[0]
        o_ref = refs[-1]
        add_ref = refs[-2] if has_add else None
        h = x_ref[...]
        for l in range(num_layers):
            w = refs[1 + 2 * l][...]
            b = refs[2 + 2 * l][...]          # (Cout_l, 1) broadcasts over lanes
            h = jnp.dot(w, h, preferred_element_type=jnp.float32) + b
            if l == num_layers - 1 and has_add:
                h = h + add_ref[...]
            a = acts[l]
            if a == "gelu":
                h = _gelu(h)
            elif a == "silu":
                h = _silu(h)
        o_ref[...] = h.astype(o_ref.dtype)
    return kernel


def fused_mlp(x_cn, weights, biases, acts, add=None, tile_n=None):
    """act_L(W_L @ ... act_1(W_1 @ x + b_1) ... + b_L [+ add]) in [C, N] layout."""
    Cin, N = x_cn.shape
    Cout = weights[-1].shape[0]
    num_layers = len(weights)

    col_bytes = 4 * (Cin + Cout + (Cout if add is not None else 0))
    Nv = pl.cdiv(N, 128) * 128
    if tile_n is None:
        tile_n = _choose_tile_n(Nv, col_bytes)
    tile_n = min(tile_n, Nv)
    Nv = pl.cdiv(Nv, tile_n) * tile_n
    if Nv != N:
        x_cn = jnp.pad(x_cn, ((0, 0), (0, Nv - N)))
        if add is not None:
            add = jnp.pad(add, ((0, 0), (0, Nv - N)))
    num_steps = Nv // tile_n

    in_specs = [pl.BlockSpec((Cin, tile_n), lambda i: (0, i))]
    args = [x_cn]
    w_bytes = 0
    for w, b in zip(weights, biases):
        in_specs.append(pl.BlockSpec(w.shape, lambda i: (0, 0)))
        in_specs.append(pl.BlockSpec(b.shape, lambda i: (0, 0)))
        args.append(w)
        args.append(b)
        w_bytes += (int(w.size) + int(b.size)) * 4
    if add is not None:
        in_specs.append(pl.BlockSpec((Cout, tile_n), lambda i: (0, i)))
        args.append(add)

    out = pl.pallas_call(
        _make_fused_mlp_kernel(num_layers, tuple(acts), add is not None),
        out_shape=jax.ShapeDtypeStruct((Cout, Nv), jnp.float32),
        grid=(num_steps,),
        in_specs=in_specs,
        out_specs=pl.BlockSpec((Cout, tile_n), lambda i: (0, i)),
        compiler_params=_compiler_params(
            num_steps, 2 * col_bytes * tile_n + w_bytes + (4 << 20)),
    )(*args)
    return out[:, :N]


# ------------------- lift network kernel (coords in-kernel) ------------------
def _make_lift_kernel(h_size, w_size, tile_n):
    log2_w = int(math.log2(w_size))
    h_mask = h_size - 1
    w_mask = w_size - 1
    inv_h = 1.0 / float(max(h_size - 1, 1))   # torch.linspace(0,1,H) step
    inv_w = 1.0 / float(max(w_size - 1, 1))

    def kernel(x_ref, w1x_ref, w1gx_ref, w1gy_ref, b1_ref, w2_ref, b2_ref, o_ref):
        n0 = pl.program_id(0) * tile_n
        n = lax.broadcasted_iota(jnp.int32, (1, tile_n), 1) + n0   # flat b*H*W+h*W+w
        w_idx = n & w_mask
        h_idx = (n >> log2_w) & h_mask
        gx = h_idx.astype(jnp.float32) * inv_h                     # grid_x (varies w/ h)
        gy = w_idx.astype(jnp.float32) * inv_w                     # grid_y (varies w/ w)
        h = jnp.dot(w1x_ref[...], x_ref[...], preferred_element_type=jnp.float32)
        h = h + w1gx_ref[...] * gx + w1gy_ref[...] * gy + b1_ref[...]
        h = _gelu(h)
        h = jnp.dot(w2_ref[...], h, preferred_element_type=jnp.float32) + b2_ref[...]
        o_ref[...] = h.astype(o_ref.dtype)
    return kernel


def lift_network(x_cn, p, h_size, w_size):
    Cin, N = x_cn.shape
    # TODO(synk): in-kernel coord features use shift/mask index math; non
    # power-of-two H/W would need a precomputed coord input instead.
    assert (h_size & (h_size - 1)) == 0 and (w_size & (w_size - 1)) == 0

    col_bytes = 4 * (Cin + LATENT)
    Nv = pl.cdiv(N, 128) * 128
    tile_n = min(_choose_tile_n(Nv, col_bytes), Nv)
    Nv = pl.cdiv(Nv, tile_n) * tile_n
    if Nv != N:
        x_cn = jnp.pad(x_cn, ((0, 0), (0, Nv - N)))
    num_steps = Nv // tile_n

    w_args = [p["lift_w1x"], p["lift_w1gx"], p["lift_w1gy"], p["lift_b1"],
              p["lift_w2t"], p["lift_b2"]]
    w_bytes = sum(int(a.size) * 4 for a in w_args)
    in_specs = [pl.BlockSpec((Cin, tile_n), lambda i: (0, i))]
    in_specs += [pl.BlockSpec(a.shape, lambda i: (0, 0)) for a in w_args]

    out = pl.pallas_call(
        _make_lift_kernel(h_size, w_size, tile_n),
        out_shape=jax.ShapeDtypeStruct((LATENT, Nv), jnp.float32),
        grid=(num_steps,),
        in_specs=in_specs,
        out_specs=pl.BlockSpec((LATENT, tile_n), lambda i: (0, i)),
        compiler_params=_compiler_params(
            num_steps, 2 * col_bytes * tile_n + w_bytes + (4 << 20)),
    )(x_cn, *w_args)
    return out[:, :N]


# ---------------- Pallas spectral (batched complex-as-real) matmul ----------
def _spectral_kernel(x_ref, w_ref, o_ref):
    # x: [M, B, 2Cin], w: [M, 2Cin, 2Cout] -> o: [M, B, 2Cout]
    o_ref[...] = lax.dot_general(
        x_ref[...], w_ref[...],
        dimension_numbers=(((2,), (1,)), ((0,), (0,))),
        preferred_element_type=jnp.float32,
    ).astype(o_ref.dtype)


def spectral_mul_cr(xcr_m, wcr):
    """Per-mode complex multiply, real-packed: one kernel, one grid step."""
    M2, Bb, C2in = xcr_m.shape
    C2out = wcr.shape[2]
    return pl.pallas_call(
        _spectral_kernel,
        out_shape=jax.ShapeDtypeStruct((M2, Bb, C2out), jnp.float32),
        grid=(1,),
        in_specs=[pl.BlockSpec((M2, Bb, C2in), lambda i: (0, 0, 0)),
                  pl.BlockSpec((M2, C2in, C2out), lambda i: (0, 0, 0))],
        out_specs=pl.BlockSpec((M2, Bb, C2out), lambda i: (0, 0, 0)),
        compiler_params=pltpu.CompilerParams(dimension_semantics=("arbitrary",)),
    )(xcr_m, wcr)


# ------------------------------ parameters -----------------------------------
def _make_wcr(w_r, w_i):
    """[Cin,Cout,m1,m2] real/imag -> mode-major complex-as-real [M, 2Cin, 2Cout]."""
    M = MODES1 * MODES2
    wr_m = jnp.transpose(w_r, (2, 3, 0, 1)).reshape(M, LATENT, LATENT)
    wi_m = jnp.transpose(w_i, (2, 3, 0, 1)).reshape(M, LATENT, LATENT)
    top = jnp.concatenate([wr_m, wi_m], axis=2)      # rows hit by the real part
    bot = jnp.concatenate([-wi_m, wr_m], axis=2)     # rows hit by the imag part
    return jnp.concatenate([top, bot], axis=1)       # [M, 2Cin, 2Cout]


def init_params(key):
    cin = IN_CHANNELS + (2 if COORD_FEATURES else 0)
    half = LATENT // 2
    keys = iter(jax.random.split(key, 64))

    def lin(fan_in, fan_out):
        bound = 1.0 / jnp.sqrt(jnp.float32(fan_in))
        w = jax.random.uniform(next(keys), (fan_out, fan_in), jnp.float32, -bound, bound)
        b = jax.random.uniform(next(keys), (fan_out,), jnp.float32, -bound, bound)
        return w, b.reshape(fan_out, 1)

    p = {}
    # lift network: Conv2dFCLayer(cin, LATENT//2) + GELU + Conv2dFCLayer(half, LATENT)
    w1, b1 = lin(cin, half)
    if COORD_FEATURES:
        p["lift_w1x"] = w1[:, :IN_CHANNELS]
        p["lift_w1gx"] = w1[:, IN_CHANNELS:IN_CHANNELS + 1]
        p["lift_w1gy"] = w1[:, IN_CHANNELS + 1:IN_CHANNELS + 2]
    else:
        p["lift_w1x"] = w1
        p["lift_w1gx"] = p["lift_w1gy"] = None
    p["lift_b1"] = b1
    p["lift_w2t"], p["lift_b2"] = lin(half, LATENT)

    # FNO layers: SpectralConv2d weights (scale * uniform[0,1)) + 1x1 Conv2d
    scale = 1.0 / (LATENT * LATENT)
    p["conv_wt"], p["conv_b"], p["spw_cr"] = [], [], []
    for _ in range(NUM_FNO_LAYERS):
        wt, b = lin(LATENT, LATENT)
        p["conv_wt"].append(wt)
        p["conv_b"].append(b)
        raw = [scale * jax.random.uniform(
            next(keys), (LATENT, LATENT, MODES1, MODES2), jnp.float32)
            for _ in range(4)]
        w1r, w1i, w2r, w2i = raw
        # mode-major complex-as-real weights (low-row block then high-row block)
        p["spw_cr"].append(
            jnp.concatenate([_make_wcr(w1r, w1i), _make_wcr(w2r, w2i)], axis=0))

    # decoder: FullyConnected(in=LATENT, layer_size=16, num_layers=2, out=3, silu)
    p["dec_wt"], p["dec_b"] = [], []
    fan_in = LATENT
    for _ in range(DEC_NUM_LAYERS):
        wt, b = lin(fan_in, DEC_LAYER_SIZE)
        p["dec_wt"].append(wt)
        p["dec_b"].append(b)
        fan_in = DEC_LAYER_SIZE
    wt, b = lin(fan_in, OUT_CHANNELS)
    p["dec_wt"].append(wt)
    p["dec_b"].append(b)
    return p


# ------------------------------- forward -------------------------------------
def fno_forward(params, x):
    B_, _, H_, W_ = x.shape

    # one boundary transpose: NCHW -> channels-first points [Cin, N]
    xp = jnp.transpose(x, (1, 0, 2, 3)).reshape(IN_CHANNELS, B_ * H_ * W_)

    # lift network (two 1x1 convs + GELU) with in-kernel coordinate features
    if COORD_FEATURES:
        xl = lift_network(xp, params, H_, W_)
    else:
        xl = fused_mlp(xp, [params["lift_w1x"], params["lift_w2t"]],
                       [params["lift_b1"], params["lift_b2"]], ["gelu", "none"])
    xg = xl.reshape(LATENT, B_, H_, W_)

    # domain padding: F.pad(x, (0, pad, 0, pad), mode="constant")
    xg = jnp.pad(xg, ((0, 0), (0, 0), (0, PADDING), (0, PADDING)))
    Hp, Wp = H_ + PADDING, W_ + PADDING
    Wf = Wp // 2 + 1
    Np = B_ * Hp * Wp
    M_TOT = 2 * MODES1 * MODES2

    for k in range(NUM_FNO_LAYERS):
        # ---- SpectralConv2d ----
        x_ft = jnp.fft.rfft2(xg)                               # [C, B, Hp, Wf] c64
        blk = jnp.concatenate([x_ft[:, :, :MODES1, :MODES2],
                               x_ft[:, :, Hp - MODES1:, :MODES2]],
                              axis=2)                          # [C, B, 2m1, m2]
        xcr = jnp.concatenate([jnp.real(blk), jnp.imag(blk)], axis=0)   # [2C,B,2m1,m2]
        xcr_m = jnp.transpose(xcr, (2, 3, 1, 0)).reshape(M_TOT, B_, 2 * LATENT)

        ocr = spectral_mul_cr(xcr_m, params["spw_cr"][k])      # [M_TOT, B, 2C]

        # unpack: complex + concat(zeros middle rows) + single pad (no DUS)
        o_c = lax.complex(ocr[..., :LATENT], ocr[..., LATENT:])          # [M,B,C]
        o_grid = jnp.transpose(o_c.reshape(2 * MODES1, MODES2, B_, LATENT),
                               (3, 2, 0, 1))                              # [C,B,2m1,m2]
        zeros_mid = jnp.zeros((LATENT, B_, Hp - 2 * MODES1, MODES2), jnp.complex64)
        out_rows = jnp.concatenate([o_grid[:, :, :MODES1], zeros_mid,
                                    o_grid[:, :, MODES1:]], axis=2)       # [C,B,Hp,m2]
        out_ft = jnp.pad(out_rows, ((0, 0), (0, 0), (0, 0), (0, Wf - MODES2)))
        spx = jnp.fft.irfft2(out_ft, s=(Hp, Wp))               # [C, B, Hp, Wp] f32

        # ---- fused 1x1 conv + spectral residual add (+ GELU except last) ----
        act = "gelu" if k < NUM_FNO_LAYERS - 1 else "none"
        y_cn = fused_mlp(xg.reshape(LATENT, Np),
                         [params["conv_wt"][k]], [params["conv_b"][k]],
                         [act], add=spx.reshape(LATENT, Np))
        xg = y_cn.reshape(LATENT, B_, Hp, Wp)

    # remove domain padding: x[..., :-pad, :-pad]
    xg = xg[:, :, :H_, :W_]

    # decoder (var_dim == -1): pointwise MLP (silu, silu, linear) in one kernel
    y_cn = fused_mlp(xg.reshape(LATENT, B_ * H_ * W_),
                     params["dec_wt"], params["dec_b"], ["silu", "silu", "none"])

    # boundary transpose back to NCHW
    y = jnp.transpose(y_cn.reshape(OUT_CHANNELS, B_, H_, W_), (1, 0, 2, 3))
    return y


# --------------------------------- main ---------------------------------------
if __name__ == "__main__":
    key = jax.random.PRNGKey(0)
    kx, kp = jax.random.split(key)
    x = jax.random.normal(kx, (B, IN_CHANNELS, H, W), dtype=jnp.float32)
    params = init_params(kp)

    fwd = jax.jit(fno_forward)
    y = jax.block_until_ready(fwd(params, x))

    assert y.shape == (B, OUT_CHANNELS, H, W), y.shape
    assert bool(jnp.all(jnp.isfinite(y)))
    print("KERNEL_OK")
</pallas_src>

<mosaic_0001>
module attributes {stable_mosaic.version = 11 : i64} {
  func.func @kernel(%arg0: i32, %arg1: memref<4x512xf32, #tpu.memory_space<vmem>>, %arg2: memref<16x4xf32, #tpu.memory_space<vmem>>, %arg3: memref<16x1xf32, #tpu.memory_space<vmem>>, %arg4: memref<16x1xf32, #tpu.memory_space<vmem>>, %arg5: memref<16x1xf32, #tpu.memory_space<vmem>>, %arg6: memref<32x16xf32, #tpu.memory_space<vmem>>, %arg7: memref<32x1xf32, #tpu.memory_space<vmem>>, %arg8: memref<32x512xf32, #tpu.memory_space<vmem>>) attributes {dimension_semantics = [#tpu.dimension_semantics<arbitrary>], iteration_bounds = array<i64: 1>, scalar_prefetch = 0 : i64, scratch_operands = 0 : i64, tpu.core_type = #tpu.core_type<tc>, window_params = [{transform_indices = @transform_0, window_bounds = array<i64: 4, 512>}, {pipeline_mode = #tpu.pipeline_mode<synchronous>, transform_indices = @transform_1, window_bounds = array<i64: 16, 4>}, {pipeline_mode = #tpu.pipeline_mode<synchronous>, transform_indices = @transform_2, window_bounds = array<i64: 16, 1>}, {pipeline_mode = #tpu.pipeline_mode<synchronous>, transform_indices = @transform_3, window_bounds = array<i64: 16, 1>}, {pipeline_mode = #tpu.pipeline_mode<synchronous>, transform_indices = @transform_4, window_bounds = array<i64: 16, 1>}, {pipeline_mode = #tpu.pipeline_mode<synchronous>, transform_indices = @transform_5, window_bounds = array<i64: 32, 16>}, {pipeline_mode = #tpu.pipeline_mode<synchronous>, transform_indices = @transform_6, window_bounds = array<i64: 32, 1>}, {transform_indices = @transform_7, window_bounds = array<i64: 32, 512>}]} {
    %c512_i32 = arith.constant 512 : i32
    %0 = arith.muli %arg0, %c512_i32 : i32
    %1 = tpu.iota {dimensions = array<i32: 1>} : vector<1x512xi32>
    %2 = vector.broadcast %0 : i32 to vector<1x512xi32>
    %3 = arith.addi %1, %2 : vector<1x512xi32>
    %c15_i32 = arith.constant 15 : i32
    %4 = vector.broadcast %c15_i32 : i32 to vector<1x512xi32>
    %5 = arith.andi %3, %4 : vector<1x512xi32>
    %c4_i32 = arith.constant 4 : i32
    %6 = vector.broadcast %c4_i32 : i32 to vector<1x512xi32>
    %7 = arith.shrsi %3, %6 : vector<1x512xi32>
    %c15_i32_0 = arith.constant 15 : i32
    %8 = vector.broadcast %c15_i32_0 : i32 to vector<1x512xi32>
    %9 = arith.andi %7, %8 : vector<1x512xi32>
    %10 = arith.sitofp %9 : vector<1x512xi32> to vector<1x512xf32>
    %cst = arith.constant 0.0666666701 : f32
    %11 = vector.broadcast %cst : f32 to vector<1x512xf32>
    %12 = arith.mulf %10, %11 : vector<1x512xf32>
    %13 = arith.sitofp %5 : vector<1x512xi32> to vector<1x512xf32>
    %cst_1 = arith.constant 0.0666666701 : f32
    %14 = vector.broadcast %cst_1 : f32 to vector<1x512xf32>
    %15 = arith.mulf %13, %14 : vector<1x512xf32>
    %c0 = arith.constant 0 : index
    %c0_2 = arith.constant 0 : index
    %16 = vector.load %arg2[%c0, %c0_2] : memref<16x4xf32, #tpu.memory_space<vmem>>, vector<16x4xf32>
    %c0_3 = arith.constant 0 : index
    %c0_4 = arith.constant 0 : index
    %17 = vector.load %arg1[%c0_3, %c0_4] : memref<4x512xf32, #tpu.memory_space<vmem>>, vector<4x512xf32>
    %cst_5 = arith.constant dense<0.000000e+00> : vector<16x512xf32>
    %18 = tpu.matmul %16, %17, %cst_5 {dimension_numbers = #tpu.dot_dimension_numbers<[1], [0], [0], [1], [0, 0, 1, 1], [], []>} : vector<16x4xf32>, vector<4x512xf32>, vector<16x512xf32> -> vector<16x512xf32>
    %c0_6 = arith.constant 0 : index
    %c0_7 = arith.constant 0 : index
    %19 = vector.load %arg3[%c0_6, %c0_7] : memref<16x1xf32, #tpu.memory_space<vmem>>, vector<16x1xf32>
    %20 = vector.broadcast %19 : vector<16x1xf32> to vector<16x512xf32>
    %21 = vector.broadcast %12 : vector<1x512xf32> to vector<16x512xf32>
    %22 = arith.mulf %20, %21 : vector<16x512xf32>
    %23 = arith.addf %18, %22 : vector<16x512xf32>
    %c0_8 = arith.constant 0 : index
    %c0_9 = arith.constant 0 : index
    %24 = vector.load %arg4[%c0_8, %c0_9] : memref<16x1xf32, #tpu.memory_space<vmem>>, vector<16x1xf32>
    %25 = vector.broadcast %24 : vector<16x1xf32> to vector<16x512xf32>
    %26 = vector.broadcast %15 : vector<1x512xf32> to vector<16x512xf32>
    %27 = arith.mulf %25, %26 : vector<16x512xf32>
    %28 = arith.addf %23, %27 : vector<16x512xf32>
    %c0_10 = arith.constant 0 : index
    %c0_11 = arith.constant 0 : index
    %29 = vector.load %arg5[%c0_10, %c0_11] : memref<16x1xf32, #tpu.memory_space<vmem>>, vector<16x1xf32>
    %30 = vector.broadcast %29 : vector<16x1xf32> to vector<16x512xf32>
    %31 = arith.addf %28, %30 : vector<16x512xf32>
    %cst_12 = arith.constant 5.000000e-01 : f32
    %32 = vector.broadcast %cst_12 : f32 to vector<16x512xf32>
    %33 = arith.mulf %32, %31 : vector<16x512xf32>
    %cst_13 = arith.constant 0.707106769 : f32
    %34 = vector.broadcast %cst_13 : f32 to vector<16x512xf32>
    %35 = arith.mulf %31, %34 : vector<16x512xf32>
    %36 = math.erf %35 : vector<16x512xf32>
    %cst_14 = arith.constant 1.000000e+00 : f32
    %37 = vector.broadcast %cst_14 : f32 to vector<16x512xf32>
    %38 = arith.addf %37, %36 : vector<16x512xf32>
    %39 = arith.mulf %33, %38 : vector<16x512xf32>
    %c0_15 = arith.constant 0 : index
    %c0_16 = arith.constant 0 : index
    %40 = vector.load %arg6[%c0_15, %c0_16] : memref<32x16xf32, #tpu.memory_space<vmem>>, vector<32x16xf32>
    %cst_17 = arith.constant dense<0.000000e+00> : vector<32x512xf32>
    %41 = tpu.matmul %40, %39, %cst_17 {dimension_numbers = #tpu.dot_dimension_numbers<[1], [0], [0], [1], [0, 0, 1, 1], [], []>} : vector<32x16xf32>, vector<16x512xf32>, vector<32x512xf32> -> vector<32x512xf32>
    %c0_18 = arith.constant 0 : index
    %c0_19 = arith.constant 0 : index
    %42 = vector.load %arg7[%c0_18, %c0_19] : memref<32x1xf32, #tpu.memory_space<vmem>>, vector<32x1xf32>
    %43 = vector.broadcast %42 : vector<32x1xf32> to vector<32x512xf32>
    %44 = arith.addf %41, %43 : vector<32x512xf32>
    %c0_20 = arith.constant 0 : index
    %c0_21 = arith.constant 0 : index
    %45 = vector.load %arg8[%c0_20, %c0_21] : memref<32x512xf32, #tpu.memory_space<vmem>>, vector<32x512xf32>
    tpu.vector_store %arg8[%c0_20, %c0_21], %44 {strides = array<i32>} : memref<32x512xf32, #tpu.memory_space<vmem>>, vector<32x512xf32>,
    return
  }
  func.func @transform_0(%arg0: i32) -> (i32, i32) {
    %c0_i32 = arith.constant 0 : i32
    %c0_i32_0 = arith.constant 0 : i32
    return %c0_i32, %arg0 : i32, i32
  }
  func.func @transform_1(%arg0: i32) -> (i32, i32) {
    %c0_i32 = arith.constant 0 : i32
    %c0_i32_0 = arith.constant 0 : i32
    %c0_i32_1 = arith.constant 0 : i32
    return %c0_i32, %c0_i32_0 : i32, i32
  }
  func.func @transform_2(%arg0: i32) -> (i32, i32) {
    %c0_i32 = arith.constant 0 : i32
    %c0_i32_0 = arith.constant 0 : i32
    %c0_i32_1 = arith.constant 0 : i32
    return %c0_i32, %c0_i32_0 : i32, i32
  }
  func.func @transform_3(%arg0: i32) -> (i32, i32) {
    %c0_i32 = arith.constant 0 : i32
    %c0_i32_0 = arith.constant 0 : i32
    %c0_i32_1 = arith.constant 0 : i32
    return %c0_i32, %c0_i32_0 : i32, i32
  }
  func.func @transform_4(%arg0: i32) -> (i32, i32) {
    %c0_i32 = arith.constant 0 : i32
    %c0_i32_0 = arith.constant 0 : i32
    %c0_i32_1 = arith.constant 0 : i32
    return %c0_i32, %c0_i32_0 : i32, i32
  }
  func.func @transform_5(%arg0: i32) -> (i32, i32) {
    %c0_i32 = arith.constant 0 : i32
    %c0_i32_0 = arith.constant 0 : i32
    %c0_i32_1 = arith.constant 0 : i32
    return %c0_i32, %c0_i32_0 : i32, i32
  }
  func.func @transform_6(%arg0: i32) -> (i32, i32) {
    %c0_i32 = arith.constant 0 : i32
    %c0_i32_0 = arith.constant 0 : i32
    %c0_i32_1 = arith.constant 0 : i32
    return %c0_i32, %c0_i32_0 : i32, i32
  }
  func.func @transform_7(%arg0: i32) -> (i32, i32) {
    %c0_i32 = arith.constant 0 : i32
    %c0_i32_0 = arith.constant 0 : i32
    return %c0_i32, %arg0 : i32, i32
  }
}

module attributes {stable_mosaic.version = 11 : i64} {
  func.func @_spectral_kernel(%arg0: i32, %arg1: memref<32x2x64xf32, #tpu.memory_space<vmem>>, %arg2: memref<32x64x64xf32, #tpu.memory_space<vmem>>, %arg3: memref<32x2x64xf32, #tpu.memory_space<vmem>>) attributes {dimension_semantics = [#tpu.dimension_semantics<arbitrary>], iteration_bounds = array<i64: 1>, scalar_prefetch = 0 : i64, scratch_operands = 0 : i64, tpu.core_type = #tpu.core_type<tc>, window_params = [{pipeline_mode = #tpu.pipeline_mode<synchronous>, transform_indices = @transform_0, window_bounds = array<i64: 32, 2, 64>}, {pipeline_mode = #tpu.pipeline_mode<synchronous>, transform_indices = @transform_1, window_bounds = array<i64: 32, 64, 64>}, {pipeline_mode = #tpu.pipeline_mode<synchronous>, transform_indices = @transform_2, window_bounds = array<i64: 32, 2, 64>}]} {
    %c0 = arith.constant 0 : index
    %c0_0 = arith.constant 0 : index
    %c0_1 = arith.constant 0 : index
    %0 = vector.load %arg1[%c0, %c0_0, %c0_1] : memref<32x2x64xf32, #tpu.memory_space<vmem>>, vector<32x2x64xf32>
    %c0_2 = arith.constant 0 : index
    %c0_3 = arith.constant 0 : index
    %c0_4 = arith.constant 0 : index
    %1 = vector.load %arg2[%c0_2, %c0_3, %c0_4] : memref<32x64x64xf32, #tpu.memory_space<vmem>>, vector<32x64x64xf32>
    %cst = arith.constant dense<0.000000e+00> : vector<32x2x64xf32>
    %2 = tpu.matmul %0, %1, %cst {dimension_numbers = #tpu.dot_dimension_numbers<[2], [1], [1], [2], [0, 0, 0, 1, 1, 2], [0], [0]>} : vector<32x2x64xf32>, vector<32x64x64xf32>, vector<32x2x64xf32> -> vector<32x2x64xf32>
    %c0_5 = arith.constant 0 : index
    %c0_6 = arith.constant 0 : index
    %c0_7 = arith.constant 0 : index
    %3 = vector.load %arg3[%c0_5, %c0_6, %c0_7] : memref<32x2x64xf32, #tpu.memory_space<vmem>>, vector<32x2x64xf32>
    tpu.vector_store %arg3[%c0_5, %c0_6, %c0_7], %2 {strides = array<i32>} : memref<32x2x64xf32, #tpu.memory_space<vmem>>, vector<32x2x64xf32>,
    return
  }
  func.func @transform_0(%arg0: i32) -> (i32, i32, i32) {
    %c0_i32 = arith.constant 0 : i32
    %c0_i32_0 = arith.constant 0 : i32
    %c0_i32_1 = arith.constant 0 : i32
    %c0_i32_2 = arith.constant 0 : i32
    return %c0_i32, %c0_i32_0, %c0_i32_1 : i32, i32, i32
  }
  func.func @transform_1(%arg0: i32) -> (i32, i32, i32) {
    %c0_i32 = arith.constant 0 : i32
    %c0_i32_0 = arith.constant 0 : i32
    %c0_i32_1 = arith.constant 0 : i32
    %c0_i32_2 = arith.constant 0 : i32
    return %c0_i32, %c0_i32_0, %c0_i32_1 : i32, i32, i32
  }
  func.func @transform_2(%arg0: i32) -> (i32, i32, i32) {
    %c0_i32 = arith.constant 0 : i32
    %c0_i32_0 = arith.constant 0 : i32
    %c0_i32_1 = arith.constant 0 : i32
    %c0_i32_2 = arith.constant 0 : i32
    return %c0_i32, %c0_i32_0, %c0_i32_1 : i32, i32, i32
  }
}

module attributes {stable_mosaic.version = 11 : i64} {
  func.func @kernel(%arg0: i32, %arg1: memref<32x1152xf32, #tpu.memory_space<vmem>>, %arg2: memref<32x32xf32, #tpu.memory_space<vmem>>, %arg3: memref<32x1xf32, #tpu.memory_space<vmem>>, %arg4: memref<32x1152xf32, #tpu.memory_space<vmem>>, %arg5: memref<32x1152xf32, #tpu.memory_space<vmem>>) attributes {dimension_semantics = [#tpu.dimension_semantics<arbitrary>], iteration_bounds = array<i64: 1>, scalar_prefetch = 0 : i64, scratch_operands = 0 : i64, tpu.core_type = #tpu.core_type<tc>, window_params = [{transform_indices = @transform_0, window_bounds = array<i64: 32, 1152>}, {pipeline_mode = #tpu.pipeline_mode<synchronous>, transform_indices = @transform_1, window_bounds = array<i64: 32, 32>}, {pipeline_mode = #tpu.pipeline_mode<synchronous>, transform_indices = @transform_2, window_bounds = array<i64: 32, 1>}, {transform_indices = @transform_3, window_bounds = array<i64: 32, 1152>}, {transform_indices = @transform_4, window_bounds = array<i64: 32, 1152>}]} {
    %c0 = arith.constant 0 : index
    %c0_0 = arith.constant 0 : index
    %0 = vector.load %arg1[%c0, %c0_0] : memref<32x1152xf32, #tpu.memory_space<vmem>>, vector<32x1152xf32>
    %c0_1 = arith.constant 0 : index
    %c0_2 = arith.constant 0 : index
    %1 = vector.load %arg2[%c0_1, %c0_2] : memref<32x32xf32, #tpu.memory_space<vmem>>, vector<32x32xf32>
    %c0_3 = arith.constant 0 : index
    %c0_4 = arith.constant 0 : index
    %2 = vector.load %arg3[%c0_3, %c0_4] : memref<32x1xf32, #tpu.memory_space<vmem>>, vector<32x1xf32>
    %cst = arith.constant dense<0.000000e+00> : vector<32x1152xf32>
    %3 = tpu.matmul %1, %0, %cst {dimension_numbers = #tpu.dot_dimension_numbers<[1], [0], [0], [1], [0, 0, 1, 1], [], []>} : vector<32x32xf32>, vector<32x1152xf32>, vector<32x1152xf32> -> vector<32x1152xf32>
    %4 = vector.broadcast %2 : vector<32x1xf32> to vector<32x1152xf32>
    %5 = arith.addf %3, %4 : vector<32x1152xf32>
    %c0_5 = arith.constant 0 : index
    %c0_6 = arith.constant 0 : index
    %6 = vector.load %arg4[%c0_5, %c0_6] : memref<32x1152xf32, #tpu.memory_space<vmem>>, vector<32x1152xf32>
    %7 = arith.addf %5, %6 : vector<32x1152xf32>
    %cst_7 = arith.constant 5.000000e-01 : f32
    %8 = vector.broadcast %cst_7 : f32 to vector<32x1152xf32>
    %9 = arith.mulf %8, %7 : vector<32x1152xf32>
    %cst_8 = arith.constant 0.707106769 : f32
    %10 = vector.broadcast %cst_8 : f32 to vector<32x1152xf32>
    %11 = arith.mulf %7, %10 : vector<32x1152xf32>
    %12 = math.erf %11 : vector<32x1152xf32>
    %cst_9 = arith.constant 1.000000e+00 : f32
    %13 = vector.broadcast %cst_9 : f32 to vector<32x1152xf32>
    %14 = arith.addf %13, %12 : vector<32x1152xf32>
    %15 = arith.mulf %9, %14 : vector<32x1152xf32>
    %c0_10 = arith.constant 0 : index
    %c0_11 = arith.constant 0 : index
    %16 = vector.load %arg5[%c0_10, %c0_11] : memref<32x1152xf32, #tpu.memory_space<vmem>>, vector<32x1152xf32>
    tpu.vector_store %arg5[%c0_10, %c0_11], %15 {strides = array<i32>} : memref<32x1152xf32, #tpu.memory_space<vmem>>, vector<32x1152xf32>,
    return
  }
  func.func @transform_0(%arg0: i32) -> (i32, i32) {
    %c0_i32 = arith.constant 0 : i32
    %c0_i32_0 = arith.constant 0 : i32
    return %c0_i32, %arg0 : i32, i32
  }
  func.func @transform_1(%arg0: i32) -> (i32, i32) {
    %c0_i32 = arith.constant 0 : i32
    %c0_i32_0 = arith.constant 0 : i32
    %c0_i32_1 = arith.constant 0 : i32
    return %c0_i32, %c0_i32_0 : i32, i32
  }
  func.func @transform_2(%arg0: i32) -> (i32, i32) {
    %c0_i32 = arith.constant 0 : i32
    %c0_i32_0 = arith.constant 0 : i32
    %c0_i32_1 = arith.constant 0 : i32
    return %c0_i32, %c0_i32_0 : i32, i32
  }
  func.func @transform_3(%arg0: i32) -> (i32, i32) {
    %c0_i32 = arith.constant 0 : i32
    %c0_i32_0 = arith.constant 0 : i32
    return %c0_i32, %arg0 : i32, i32
  }
  func.func @transform_4(%arg0: i32) -> (i32, i32) {
    %c0_i32 = arith.constant 0 : i32
    %c0_i32_0 = arith.constant 0 : i32
    return %c0_i32, %arg0 : i32, i32
  }
}

module attributes {stable_mosaic.version = 11 : i64} {
  func.func @kernel(%arg0: i32, %arg1: memref<32x1152xf32, #tpu.memory_space<vmem>>, %arg2: memref<32x32xf32, #tpu.memory_space<vmem>>, %arg3: memref<32x1xf32, #tpu.memory_space<vmem>>, %arg4: memref<32x1152xf32, #tpu.memory_space<vmem>>, %arg5: memref<32x1152xf32, #tpu.memory_space<vmem>>) attributes {dimension_semantics = [#tpu.dimension_semantics<arbitrary>], iteration_bounds = array<i64: 1>, scalar_prefetch = 0 : i64, scratch_operands = 0 : i64, tpu.core_type = #tpu.core_type<tc>, window_params = [{transform_indices = @transform_0, window_bounds = array<i64: 32, 1152>}, {pipeline_mode = #tpu.pipeline_mode<synchronous>, transform_indices = @transform_1, window_bounds = array<i64: 32, 32>}, {pipeline_mode = #tpu.pipeline_mode<synchronous>, transform_indices = @transform_2, window_bounds = array<i64: 32, 1>}, {transform_indices = @transform_3, window_bounds = array<i64: 32, 1152>}, {transform_indices = @transform_4, window_bounds = array<i64: 32, 1152>}]} {
    %c0 = arith.constant 0 : index
    %c0_0 = arith.constant 0 : index
    %0 = vector.load %arg1[%c0, %c0_0] : memref<32x1152xf32, #tpu.memory_space<vmem>>, vector<32x1152xf32>
    %c0_1 = arith.constant 0 : index
    %c0_2 = arith.constant 0 : index
    %1 = vector.load %arg2[%c0_1, %c0_2] : memref<32x32xf32, #tpu.memory_space<vmem>>, vector<32x32xf32>
    %c0_3 = arith.constant 0 : index
    %c0_4 = arith.constant 0 : index
    %2 = vector.load %arg3[%c0_3, %c0_4] : memref<32x1xf32, #tpu.memory_space<vmem>>, vector<32x1xf32>
    %cst = arith.constant dense<0.000000e+00> : vector<32x1152xf32>
    %3 = tpu.matmul %1, %0, %cst {dimension_numbers = #tpu.dot_dimension_numbers<[1], [0], [0], [1], [0, 0, 1, 1], [], []>} : vector<32x32xf32>, vector<32x1152xf32>, vector<32x1152xf32> -> vector<32x1152xf32>
    %4 = vector.broadcast %2 : vector<32x1xf32> to vector<32x1152xf32>
    %5 = arith.addf %3, %4 : vector<32x1152xf32>
    %c0_5 = arith.constant 0 : index
    %c0_6 = arith.constant 0 : index
    %6 = vector.load %arg4[%c0_5, %c0_6] : memref<32x1152xf32, #tpu.memory_space<vmem>>, vector<32x1152xf32>
    %7 = arith.addf %5, %6 : vector<32x1152xf32>
    %c0_7 = arith.constant 0 : index
    %c0_8 = arith.constant 0 : index
    %8 = vector.load %arg5[%c0_7, %c0_8] : memref<32x1152xf32, #tpu.memory_space<vmem>>, vector<32x1152xf32>
    tpu.vector_store %arg5[%c0_7, %c0_8], %7 {strides = array<i32>} : memref<32x1152xf32, #tpu.memory_space<vmem>>, vector<32x1152xf32>,
    return
  }
  func.func @transform_0(%arg0: i32) -> (i32, i32) {
    %c0_i32 = arith.constant 0 : i32
    %c0_i32_0 = arith.constant 0 : i32
    return %c0_i32, %arg0 : i32, i32
  }
  func.func @transform_1(%arg0: i32) -> (i32, i32) {
    %c0_i32 = arith.constant 0 : i32
    %c0_i32_0 = arith.constant 0 : i32
    %c0_i32_1 = arith.constant 0 : i32
    return %c0_i32, %c0_i32_0 : i32, i32
  }
  func.func @transform_2(%arg0: i32) -> (i32, i32) {
    %c0_i32 = arith.constant 0 : i32
    %c0_i32_0 = arith.constant 0 : i32
    %c0_i32_1 = arith.constant 0 : i32
    return %c0_i32, %c0_i32_0 : i32, i32
  }
  func.func @transform_3(%arg0: i32) -> (i32, i32) {
    %c0_i32 = arith.constant 0 : i32
    %c0_i32_0 = arith.constant 0 : i32
    return %c0_i32, %arg0 : i32, i32
  }
  func.func @transform_4(%arg0: i32) -> (i32, i32) {
    %c0_i32 = arith.constant 0 : i32
    %c0_i32_0 = arith.constant 0 : i32
    return %c0_i32, %arg0 : i32, i32
  }
}

module attributes {stable_mosaic.version = 11 : i64} {
  func.func @kernel(%arg0: i32, %arg1: memref<32x512xf32, #tpu.memory_space<vmem>>, %arg2: memref<16x32xf32, #tpu.memory_space<vmem>>, %arg3: memref<16x1xf32, #tpu.memory_space<vmem>>, %arg4: memref<16x16xf32, #tpu.memory_space<vmem>>, %arg5: memref<16x1xf32, #tpu.memory_space<vmem>>, %arg6: memref<3x16xf32, #tpu.memory_space<vmem>>, %arg7: memref<3x1xf32, #tpu.memory_space<vmem>>, %arg8: memref<3x512xf32, #tpu.memory_space<vmem>>) attributes {dimension_semantics = [#tpu.dimension_semantics<arbitrary>], iteration_bounds = array<i64: 1>, scalar_prefetch = 0 : i64, scratch_operands = 0 : i64, tpu.core_type = #tpu.core_type<tc>, window_params = [{transform_indices = @transform_0, window_bounds = array<i64: 32, 512>}, {pipeline_mode = #tpu.pipeline_mode<synchronous>, transform_indices = @transform_1, window_bounds = array<i64: 16, 32>}, {pipeline_mode = #tpu.pipeline_mode<synchronous>, transform_indices = @transform_2, window_bounds = array<i64: 16, 1>}, {pipeline_mode = #tpu.pipeline_mode<synchronous>, transform_indices = @transform_3, window_bounds = array<i64: 16, 16>}, {pipeline_mode = #tpu.pipeline_mode<synchronous>, transform_indices = @transform_4, window_bounds = array<i64: 16, 1>}, {pipeline_mode = #tpu.pipeline_mode<synchronous>, transform_indices = @transform_5, window_bounds = array<i64: 3, 16>}, {pipeline_mode = #tpu.pipeline_mode<synchronous>, transform_indices = @transform_6, window_bounds = array<i64: 3, 1>}, {transform_indices = @transform_7, window_bounds = array<i64: 3, 512>}]} {
    %c0 = arith.constant 0 : index
    %c0_0 = arith.constant 0 : index
    %0 = vector.load %arg1[%c0, %c0_0] : memref<32x512xf32, #tpu.memory_space<vmem>>, vector<32x512xf32>
    %c0_1 = arith.constant 0 : index
    %c0_2 = arith.constant 0 : index
    %1 = vector.load %arg2[%c0_1, %c0_2] : memref<16x32xf32, #tpu.memory_space<vmem>>, vector<16x32xf32>
    %c0_3 = arith.constant 0 : index
    %c0_4 = arith.constant 0 : index
    %2 = vector.load %arg3[%c0_3, %c0_4] : memref<16x1xf32, #tpu.memory_space<vmem>>, vector<16x1xf32>
    %cst = arith.constant dense<0.000000e+00> : vector<16x512xf32>
    %3 = tpu.matmul %1, %0, %cst {dimension_numbers = #tpu.dot_dimension_numbers<[1], [0], [0], [1], [0, 0, 1, 1], [], []>} : vector<16x32xf32>, vector<32x512xf32>, vector<16x512xf32> -> vector<16x512xf32>
    %4 = vector.broadcast %2 : vector<16x1xf32> to vector<16x512xf32>
    %5 = arith.addf %3, %4 : vector<16x512xf32>
    %cst_5 = arith.constant 5.000000e-01 : f32
    %6 = vector.broadcast %cst_5 : f32 to vector<16x512xf32>
    %7 = arith.mulf %6, %5 : vector<16x512xf32>
    %8 = math.tanh %7 : vector<16x512xf32>
    %cst_6 = arith.constant 1.000000e+00 : f32
    %9 = vector.broadcast %cst_6 : f32 to vector<16x512xf32>
    %10 = arith.addf %8, %9 : vector<16x512xf32>
    %cst_7 = arith.constant 5.000000e-01 : f32
    %11 = vector.broadcast %cst_7 : f32 to vector<16x512xf32>
    %12 = arith.mulf %11, %10 : vector<16x512xf32>
    %13 = arith.mulf %5, %12 : vector<16x512xf32>
    %c0_8 = arith.constant 0 : index
    %c0_9 = arith.constant 0 : index
    %14 = vector.load %arg4[%c0_8, %c0_9] : memref<16x16xf32, #tpu.memory_space<vmem>>, vector<16x16xf32>
    %c0_10 = arith.constant 0 : index
    %c0_11 = arith.constant 0 : index
    %15 = vector.load %arg5[%c0_10, %c0_11] : memref<16x1xf32, #tpu.memory_space<vmem>>, vector<16x1xf32>
    %cst_12 = arith.constant dense<0.000000e+00> : vector<16x512xf32>
    %16 = tpu.matmul %14, %13, %cst_12 {dimension_numbers = #tpu.dot_dimension_numbers<[1], [0], [0], [1], [0, 0, 1, 1], [], []>} : vector<16x16xf32>, vector<16x512xf32>, vector<16x512xf32> -> vector<16x512xf32>
    %17 = vector.broadcast %15 : vector<16x1xf32> to vector<16x512xf32>
    %18 = arith.addf %16, %17 : vector<16x512xf32>
    %cst_13 = arith.constant 5.000000e-01 : f32
    %19 = vector.broadcast %cst_13 : f32 to vector<16x512xf32>
    %20 = arith.mulf %19, %18 : vector<16x512xf32>
    %21 = math.tanh %20 : vector<16x512xf32>
    %cst_14 = arith.constant 1.000000e+00 : f32
    %22 = vector.broadcast %cst_14 : f32 to vector<16x512xf32>
    %23 = arith.addf %21, %22 : vector<16x512xf32>
    %cst_15 = arith.constant 5.000000e-01 : f32
    %24 = vector.broadcast %cst_15 : f32 to vector<16x512xf32>
    %25 = arith.mulf %24, %23 : vector<16x512xf32>
    %26 = arith.mulf %18, %25 : vector<16x512xf32>
    %c0_16 = arith.constant 0 : index
    %c0_17 = arith.constant 0 : index
    %27 = vector.load %arg6[%c0_16, %c0_17] : memref<3x16xf32, #tpu.memory_space<vmem>>, vector<3x16xf32>
    %c0_18 = arith.constant 0 : index
    %c0_19 = arith.constant 0 : index
    %28 = vector.load %arg7[%c0_18, %c0_19] : memref<3x1xf32, #tpu.memory_space<vmem>>, vector<3x1xf32>
    %cst_20 = arith.constant dense<0.000000e+00> : vector<3x512xf32>
    %29 = tpu.matmul %27, %26, %cst_20 {dimension_numbers = #tpu.dot_dimension_numbers<[1], [0], [0], [1], [0, 0, 1, 1], [], []>} : vector<3x16xf32>, vector<16x512xf32>, vector<3x512xf32> -> vector<3x512xf32>
    %30 = vector.broadcast %28 : vector<3x1xf32> to vector<3x512xf32>
    %31 = arith.addf %29, %30 : vector<3x512xf32>
    %c0_21 = arith.constant 0 : index
    %c0_22 = arith.constant 0 : index
    %32 = vector.load %arg8[%c0_21, %c0_22] : memref<3x512xf32, #tpu.memory_space<vmem>>, vector<3x512xf32>
    tpu.vector_store %arg8[%c0_21, %c0_22], %31 {strides = array<i32>} : memref<3x512xf32, #tpu.memory_space<vmem>>, vector<3x512xf32>,
    return
  }
  func.func @transform_0(%arg0: i32) -> (i32, i32) {
    %c0_i32 = arith.constant 0 : i32
    %c0_i32_0 = arith.constant 0 : i32
    return %c0_i32, %arg0 : i32, i32
  }
  func.func @transform_1(%arg0: i32) -> (i32, i32) {
    %c0_i32 = arith.constant 0 : i32
    %c0_i32_0 = arith.constant 0 : i32
    %c0_i32_1 = arith.constant 0 : i32
    return %c0_i32, %c0_i32_0 : i32, i32
  }
  func.func @transform_2(%arg0: i32) -> (i32, i32) {
    %c0_i32 = arith.constant 0 : i32
    %c0_i32_0 = arith.constant 0 : i32
    %c0_i32_1 = arith.constant 0 : i32
    return %c0_i32, %c0_i32_0 : i32, i32
  }
  func.func @transform_3(%arg0: i32) -> (i32, i32) {
    %c0_i32 = arith.constant 0 : i32
    %c0_i32_0 = arith.constant 0 : i32
    %c0_i32_1 = arith.constant 0 : i32
    return %c0_i32, %c0_i32_0 : i32, i32
  }
  func.func @transform_4(%arg0: i32) -> (i32, i32) {
    %c0_i32 = arith.constant 0 : i32
    %c0_i32_0 = arith.constant 0 : i32
    %c0_i32_1 = arith.constant 0 : i32
    return %c0_i32, %c0_i32_0 : i32, i32
  }
  func.func @transform_5(%arg0: i32) -> (i32, i32) {
    %c0_i32 = arith.constant 0 : i32
    %c0_i32_0 = arith.constant 0 : i32
    %c0_i32_1 = arith.constant 0 : i32
    return %c0_i32, %c0_i32_0 : i32, i32
  }
  func.func @transform_6(%arg0: i32) -> (i32, i32) {
    %c0_i32 = arith.constant 0 : i32
    %c0_i32_0 = arith.constant 0 : i32
    %c0_i32_1 = arith.constant 0 : i32
    return %c0_i32, %c0_i32_0 : i32, i32
  }
  func.func @transform_7(%arg0: i32) -> (i32, i32) {
    %c0_i32 = arith.constant 0 : i32
    %c0_i32_0 = arith.constant 0 : i32
    return %c0_i32, %arg0 : i32, i32
  }
}

</mosaic_0001>

<bundles_post_ra>
// kernel: fno_forward.6
= control target key start
LH: loop header
LB: loop body
LE: loop exit
PB: predicated region body
PF: predicated region fallthrough
CT: control target
= control target key end

     0   :  { %vm100_vm0 = vcmask 1043456   ;;  %v628_v2 = vmov 0.0   ;;  %v629_v5 = vmov 0   ;;  %vm93_vm1 = vcmask 31744   ;;  %s808_s0 = inlined_call_operand.vmem [shape: f32[4,512], index: 0, kind: input, shape index: {}]   ;;  %s809_s1 = inlined_call_operand.vmem [shape: f32[16,4], index: 1, kind: input, shape index: {}]   ;;  %s810_s2 = inlined_call_operand.vmem [shape: f32[16,1], index: 2, kind: input, shape index: {}]   ;;  %s811_s3 = inlined_call_operand.vmem [shape: f32[16,1], index: 3, kind: input, shape index: {}]   ;;  %s812_s4 = inlined_call_operand.vmem [shape: f32[16,1], index: 4, kind: input, shape index: {}]   ;;  %s813_s6 = inlined_call_operand.vmem [shape: f32[32,1], index: 6, kind: input, shape index: {}]   ;;  %s814_s5 = inlined_call_operand.vmem [shape: f32[32,16], index: 5, kind: input, shape index: {}]   ;;  %s815_s7 = inlined_call_operand.vmem [shape: f32[32,512], index: 7, kind: output, shape index: {}]  }
   0x1   :  { %v67_v0 = vld [vmem:[%s808_s0] sm:$0xff]  ;;  %v68_v1 = vld [vmem:[%s808_s0 + $0x8] sm:$0xff]  ;;  %173 = vmatprep.mubr.f32.mxu0 %v628_v2  ;;  %250 = vmatprep.mubr.f32.mxu1 %v628_v2  ;;  %v357_v16 = vld [vmem:[%s813_s6 + $0x10] sm:$0xff]  ;;  %v27_v18 = vlaneseq  ;;  %vm379_vm2 = vcmask 130048  }
   0x2   :  { %v91_v3 = vcombine.high %v67_v0, %v67_v0  ;;  %v92_v4 = vcombine.high %v68_v1, %v68_v1  ;;  %608 = vset.pattern.permute.xlu0 %v629_v5  ;;  %v70_v6 = vld [vmem:[%s810_s2 + $0x8] sm:$0xff]  ;;  %609 = vset.pattern.permute.xlu1 %v629_v5  ;;  %v65_v8 = vld [vmem:[%s809_s1] sm:$0xff]  ;;  %v358_v17 = vld [vmem:[%s813_s6 + $0x18] sm:$0xff] }
   0x3   :  { %v264_v7 = vld [vmem:[%s811_s3 + $0x8] sm:$0xff]  ;;  %78 = vperm.xlu0 %608, %v70_v6   ;;  %v69_v9 = vld [vmem:[%s810_s2] sm:$0xff]  ;;  %v28_v19 = vand.u32 127, %v27_v18 }
   0x4   :  { %272 = vperm.xlu1 %609, %v264_v7   ;;  %590 = vmatprep.subr.msk.mxu0 %vm100_vm0, %v91_v3  ;;  %v263_v10 = vld [vmem:[%s811_s3] sm:$0xff]  ;;  %v66_v11 = vld [vmem:[%s809_s1 + $0x8] sm:$0xff] }
   0x5   :  { %594 = vmatprep.subr.msk.mxu1 %vm100_vm0, %v92_v4  ;;  %591 = vmatpush1.msk.msra.mxu0 %vm100_vm0, %v67_v0  ;;  %v292_v12 = vld [vmem:[%s812_s4 + $0x8] sm:$0xff]  ;;  %v291_v13 = vld [vmem:[%s812_s4] sm:$0xff]  ;;  %v30_v20 = vadd.s32 256, %v28_v19  ;;  %v29_v21 = vadd.s32 128, %v28_v19  ;;  %v31_v22 = vadd.s32 384, %v28_v19  ;;  %v41_v23 = vshra.s32 %v28_v19, 4 }
   0x6   :  { %595 = vmatpush1.msk.msra.mxu1 %vm100_vm0, %v68_v1  ;;  %592 = vmatmul.mubr.msk.f32.vlgmr.msra.gmra.mxu0 %vm93_vm1, %v65_v8  ;;  %v355_v14 = vld [vmem:[%s813_s6] sm:$0xff]  ;;  %v356_v15 = vld [vmem:[%s813_s6 + $0x8] sm:$0xff]  ;;  %v37_v29 = vand.u32 15, %v28_v19 }
   0x7   :  { %596 = vmatmul.mubr.msk.f32.vlgmr.msra.gmra.mxu1 %vm93_vm1, %v65_v8  ;;  %179 = vmatprep.mubr.f32.mxu0 %v628_v2  ;;  %v43_v24 = vshra.s32 %v30_v20, 4  ;;  %v42_v25 = vshra.s32 %v29_v21, 4  ;;  %v44_v26 = vshra.s32 %v31_v22, 4  ;;  %v45_v27 = vand.u32 15, %v41_v23 }
   0x8   :  { %256 = vmatprep.mubr.f32.mxu1 %v628_v2  ;;  %73 = vperm.xlu0 %608, %v69_v9   ;;  %v39_v30 = vand.u32 15, %v30_v20  ;;  %v38_v35 = vand.u32 15, %v29_v21  ;;  %v40_v36 = vand.u32 15, %v31_v22  ;;  %v57_v38 = vcvt.s32.f32 %v37_v29 }
   0x9   :  { %267 = vperm.xlu1 %609, %v263_v10   ;;  %v47_v28 = vand.u32 15, %v43_v24  ;;  %v46_v31 = vand.u32 15, %v42_v25  ;;  %v48_v32 = vand.u32 15, %v44_v26  ;;  %v49_v33 = vcvt.s32.f32 %v45_v27 }
   0xa   :  { %593 = vmatmul.mubr.msk.f32.gmra.mxu0 %vm93_vm1, %v66_v11  ;;  %v59_v40 = vcvt.s32.f32 %v39_v30  ;;  %v58_v45 = vcvt.s32.f32 %v38_v35  ;;  %v60_v46 = vcvt.s32.f32 %v40_v36  ;;  %v61_v47 = vmul.f32 0.06666667, %v57_v38 }
   0xb   :  { %597 = vmatmul.mubr.msk.f32.gmra.mxu1 %vm93_vm1, %v66_v11  ;;  %456 = vmatprep.mubr.f32.mxu0 %v628_v2  ;;  %v51_v34 = vcvt.s32.f32 %v47_v28  ;;  %v50_v41 = vcvt.s32.f32 %v46_v31  ;;  %v52_v42 = vcvt.s32.f32 %v48_v32  ;;  %v53_v43 = vmul.f32 0.06666667, %v49_v33 }
   0xc   :  { %545 = vmatprep.mubr.f32.mxu1 %v628_v2  ;;  %300 = vperm.xlu0 %608, %v292_v12   ;;  %v63_v48 = vmul.f32 0.06666667, %v59_v40  ;;  %v62_v55 = vmul.f32 0.06666667, %v58_v45  ;;  %v64_v56 = vmul.f32 0.06666667, %v60_v46 }
   0xd   :  { %295 = vperm.xlu1 %609, %v291_v13   ;;  %v55_v44 = vmul.f32 0.06666667, %v51_v34  ;;  %v54_v49 = vmul.f32 0.06666667, %v50_v41  ;;  %v56_v50 = vmul.f32 0.06666667, %v52_v42 }
  0x10   :  { %361 = vperm.xlu0 %608, %v355_v14  }
  0x11   :  { %366 = vperm.xlu1 %609, %v356_v15  }
  0x14   :  { %371 = vperm.xlu0 %608, %v357_v16  }
  0x15   :  { %376 = vperm.xlu1 %609, %v358_v17  }
  0x7e   :  { %v79_v37 = vpop.permute.xlu0 %78 }
  0x7f   :  { %v273_v39 = vpop.permute.xlu1 %272  ;;  %v85_v6 = vmul.f32 %v79_v37, %v53_v43  ;;  %v87_v7 = vmul.f32 %v79_v37, %v55_v44  ;;  %v86_v27 = vmul.f32 %v79_v37, %v54_v49  ;;  %v88_v28 = vmul.f32 %v79_v37, %v56_v50 }
  0x80   :  { %v279_v14 = vmul.f32 %v273_v39, %v61_v47  ;;  %v281_v16 = vmul.f32 %v273_v39, %v63_v48  ;;  %v280_v35 = vmul.f32 %v273_v39, %v62_v55  ;;  %v282_v38 = vmul.f32 %v273_v39, %v64_v56 }
  0x83   :  { %v74_v51 = vpop.permute.xlu0 %73 }
  0x84   :  { %v268_v52 = vpop.permute.xlu1 %267  ;;  %v81_v53 = vmul.f32 %v74_v51, %v53_v43  ;;  %v83_v54 = vmul.f32 %v74_v51, %v55_v44  ;;  %v82_v59 = vmul.f32 %v74_v51, %v54_v49  ;;  %v84_v60 = vmul.f32 %v74_v51, %v56_v50 }
  0x85   :  { %v275_v57 = vmul.f32 %v268_v52, %v61_v47  ;;  %v277_v58 = vmul.f32 %v268_v52, %v63_v48  ;;  %v276_v1 = vmul.f32 %v268_v52, %v62_v55  ;;  %v278_v3 = vmul.f32 %v268_v52, %v64_v56 }
  0x87   :  { %v301_v33 = vpop.permute.xlu0 %300 }
  0x88   :  { %v296_v8 = vpop.permute.xlu1 %295 }
  0xc6   :  { %v175_v61 = vpop.f32.mrf.mxu0 }
  0xc7   :  { %v252_v62 = vpop.f32.mrf.mxu1  ;;  %v176_v63 = vadd.f32 %v175_v61, %v81_v53 }
  0xc8   :  { %v253_v0 = vadd.f32 %v252_v62, %v83_v54  ;;  %v177_v4 = vpop.f32.mrf.mxu0 }
  0xc9   :  { %v254_v5 = vpop.f32.mrf.mxu1  ;;  %v283_v9 = vadd.f32 %v275_v57, %v176_v63  ;;  %v178_v11 = vadd.f32 %v177_v4, %v82_v59 }
  0xca   :  { %v285_v10 = vadd.f32 %v277_v58, %v253_v0  ;;  %v255_v12 = vadd.f32 %v254_v5, %v84_v60  ;;  %v181_v13 = vpop.f32.mrf.mxu0 }
  0xcb   :  { %v258_v15 = vpop.f32.mrf.mxu1  ;;  %v726_v17 = vadd.f32 %v296_v8, %v283_v9  ;;  %v284_v19 = vadd.f32 %v276_v1, %v178_v11  ;;  %v182_v21 = vadd.f32 %v181_v13, %v85_v6 }
  0xcc   :  { %v728_v18 = vadd.f32 %v296_v8, %v285_v10  ;;  %v286_v20 = vadd.f32 %v278_v3, %v255_v12  ;;  %v259_v22 = vadd.f32 %v258_v15, %v87_v7  ;;  %v183_v23 = vpop.f32.mrf.mxu0 }
  0xcd   :  { %v260_v24 = vpop.f32.mrf.mxu1  ;;  %v319_v25 = vmul.f32 0.70710677, %v726_v17  ;;  %v304_v29 = vadd.f32 %v296_v8, %v284_v19  ;;  %v287_v31 = vadd.f32 %v279_v14, %v182_v21  ;;  %v184_v34 = vadd.f32 %v183_v23, %v86_v27  ;;  %v353_v21 = vld [vmem:[%s814_s5 + $0x10] sm:$0xff]  ;;  %v362_v23 = vpop.permute.xlu0 %361 }
  0xce   :  { %v321_v26 = vmul.f32 0.70710677, %v728_v18  ;;  %v306_v30 = vadd.f32 %v296_v8, %v286_v20  ;;  %v289_v32 = vadd.f32 %v281_v16, %v259_v22  ;;  %v261_v36 = vadd.f32 %v260_v24, %v88_v28  ;;  %v351_v20 = vld [vmem:[%s814_s5] sm:$0xff]  ;;  %v354_v22 = vld [vmem:[%s814_s5 + $0x18] sm:$0xff] }
  0xcf   :  { %v320_v40 = vmul.f32 0.70710677, %v304_v29  ;;  %v307_v41 = vadd.f32 %v301_v33, %v287_v31  ;;  %612 = verf.f32 %v319_v25  ;;  %v288_v43 = vadd.f32 %v280_v35, %v184_v34  ;;  %v367_v31 = vpop.permute.xlu1 %366 }
  0xd0   :  { %v309_v42 = vadd.f32 %v301_v33, %v289_v32  ;;  %v290_v44 = vadd.f32 %v282_v38, %v261_v36  ;;  %614 = verf.f32 %v321_v26  ;;  %v322_v45 = vmul.f32 0.70710677, %v306_v30 }
  0xd1   :  { %v323_v46 = vmul.f32 0.70710677, %v307_v41  ;;  %616 = verf.f32 %v320_v40  ;;  %v308_v47 = vadd.f32 %v301_v33, %v288_v43  ;;  %v315_v57 = vmul.f32 0.5, %v307_v41  ;;  %v372_v41 = vpop.permute.xlu0 %371 }
  0xd2   :  { %v325_v37 = vmul.f32 0.70710677, %v309_v42  ;;  %v310_v48 = vadd.f32 %v301_v33, %v290_v44  ;;  %v317_v5 = vmul.f32 0.5, %v309_v42  ;;  %v312_v7 = vmul.f32 0.5, %v304_v29 }
  0xd3   :  { %618 = verf.f32 %v323_v46  ;;  %v324_v49 = vmul.f32 0.70710677, %v308_v47  ;;  %v316_v60 = vmul.f32 0.5, %v308_v47  ;;  %v311_v9 = vmul.f32 0.5, %v726_v17 }
  0xd4   :  { %620 = verf.f32 %v325_v37  ;;  %v326_v50 = vmul.f32 0.70710677, %v310_v48  ;;  %v318_v0 = vmul.f32 0.5, %v310_v48  ;;  %v314_v12 = vmul.f32 0.5, %v306_v30 }
  0xd5   :  { %622 = verf.f32 %v322_v45  ;;  %v313_v13 = vmul.f32 0.5, %v728_v18  ;;  %v352_v18 = vld [vmem:[%s814_s5 + $0x8] sm:$0xff] }
  0xd6   :  { %624 = verf.f32 %v324_v49  ;;  %v377_v49 = vpop.permute.xlu1 %376 }
  0xd7   :  { %626 = verf.f32 %v326_v50 }
  0xdc   :  { %v613_v39 = vpop.eup %612 }
  0xdd   :  { %v615_v51 = vpop.eup %614  ;;  %v335_v4 = vadd.f32 1.0, %v613_v39 }
  0xde   :  { %v617_v52 = vpop.eup %616  ;;  %v337_v8 = vadd.f32 1.0, %v615_v51 }
  0xdf   :  { %v336_v63 = vadd.f32 1.0, %v617_v52  ;;  %v343_v19 = vmul.f32 %v335_v4, %v311_v9 }
  0xe0   :  { %v619_v53 = vpop.eup %618  ;;  %v345_v17 = vmul.f32 %v337_v8, %v313_v13 }
  0xe1   :  { %v621_v54 = vpop.eup %620  ;;  %v339_v58 = vadd.f32 1.0, %v619_v53  ;;  %v344_v15 = vmul.f32 %v336_v63, %v312_v7 }
  0xe2   :  { %v623_v55 = vpop.eup %622  ;;  %v341_v62 = vadd.f32 1.0, %v621_v54 }
  0xe3   :  { %v625_v56 = vpop.eup %624  ;;  %v338_v3 = vadd.f32 1.0, %v623_v55  ;;  %v347_v11 = vmul.f32 %v339_v58, %v315_v57 }
  0xe4   :  { %v627_v59 = vpop.eup %626  ;;  %v340_v61 = vadd.f32 1.0, %v625_v56  ;;  %v349_v14 = vmul.f32 %v341_v62, %v317_v5 }
  0xe5   :  { %v342_v1 = vadd.f32 1.0, %v627_v59  ;;  %v346_v16 = vmul.f32 %v338_v3, %v314_v12 }
  0xe6   :  { %v348_v6 = vmul.f32 %v340_v61, %v316_v60 }
  0xe7   :  { %v350_v10 = vmul.f32 %v342_v1, %v318_v0 }
  0xe8   :  { %420 = vmatprep.subr.mxu0 %v348_v6 }
  0xe9   :  { %509 = vmatprep.subr.mxu1 %v350_v10  ;;  %421 = vmatpush1.msra.mxu0 %v347_v11 }
  0xea   :  { %510 = vmatpush1.msra.mxu1 %v349_v14  ;;  %422 = vmatprep.subr.mxu0 %v344_v15 }
  0xeb   :  { %511 = vmatprep.subr.mxu1 %v346_v16  ;;  %423 = vmatpush1.msra.mxu0 %v343_v19 }
  0xec   :  { %512 = vmatpush1.msra.mxu1 %v345_v17  ;;  %598 = vmatmul.mubr.msk.f32.vlgmr.msra.gmra.mxu0 %vm379_vm2, %v351_v20 }
  0xed   :  { %602 = vmatmul.mubr.msk.f32.vlgmr.msra.gmra.mxu1 %vm379_vm2, %v351_v20  ;;  %462 = vmatprep.mubr.f32.mxu0 %v628_v2 }
  0xee   :  { %551 = vmatprep.mubr.f32.mxu1 %v628_v2 }
  0xf0   :  { %599 = vmatmul.mubr.msk.f32.gmra.mxu0 %vm379_vm2, %v352_v18 }
  0xf1   :  { %603 = vmatmul.mubr.msk.f32.gmra.mxu1 %vm379_vm2, %v352_v18  ;;  %468 = vmatprep.mubr.f32.mxu0 %v628_v2 }
  0xf2   :  { %557 = vmatprep.mubr.f32.mxu1 %v628_v2 }
  0xf4   :  { %600 = vmatmul.mubr.msk.f32.gmra.mxu0 %vm379_vm2, %v353_v21 }
  0xf5   :  { %604 = vmatmul.mubr.msk.f32.gmra.mxu1 %vm379_vm2, %v353_v21  ;;  %474 = vmatprep.mubr.f32.mxu0 %v628_v2 }
  0xf6   :  { %563 = vmatprep.mubr.f32.mxu1 %v628_v2 }
  0xf8   :  { %601 = vmatmul.mubr.msk.f32.gmra.mxu0 %vm379_vm2, %v354_v22 }
  0xf9   :  { %605 = vmatmul.mubr.msk.f32.gmra.mxu1 %vm379_vm2, %v354_v22 }
 0x1ac   :  { %v458_v24 = vpop.f32.mrf.mxu0 }
 0x1ad   :  { %v459_v25 = vadd.f32 %v458_v24, %v362_v23  ;;  %v547_v26 = vpop.f32.mrf.mxu1 }
 0x1ae   :  { %v548_v27 = vadd.f32 %v547_v26, %v362_v23  ;;  %v460_v28 = vpop.f32.mrf.mxu0 }
 0x1af   :  { %570 = vst [vmem:[%s815_s7] sm:$0xff] %v459_v25  ;;  %v461_v29 = vadd.f32 %v460_v28, %v362_v23  ;;  %v549_v30 = vpop.f32.mrf.mxu1 }
 0x1b0   :  { %572 = vst [vmem:[%s815_s7 + $0x10] sm:$0xff] %v548_v27  ;;  %v550_v2 = vadd.f32 %v549_v30, %v362_v23  ;;  %v464_v32 = vpop.f32.mrf.mxu0 }
 0x1b1   :  { %571 = vst [vmem:[%s815_s7 + $0x8] sm:$0xff] %v461_v29  ;;  %v465_v33 = vadd.f32 %v464_v32, %v367_v31  ;;  %v553_v34 = vpop.f32.mrf.mxu1 }
 0x1b2   :  { %573 = vst [vmem:[%s815_s7 + $0x18] sm:$0xff] %v550_v2  ;;  %v554_v35 = vadd.f32 %v553_v34, %v367_v31  ;;  %v466_v36 = vpop.f32.mrf.mxu0 }
 0x1b3   :  { %574 = vst [vmem:[%s815_s7 + $0x20] sm:$0xff] %v465_v33  ;;  %v467_v38 = vadd.f32 %v466_v36, %v367_v31  ;;  %v555_v40 = vpop.f32.mrf.mxu1 }
 0x1b4   :  { %576 = vst [vmem:[%s815_s7 + $0x30] sm:$0xff] %v554_v35  ;;  %v556_v42 = vadd.f32 %v555_v40, %v367_v31  ;;  %v470_v43 = vpop.f32.mrf.mxu0 }
 0x1b5   :  { %575 = vst [vmem:[%s815_s7 + $0x28] sm:$0xff] %v467_v38  ;;  %v471_v44 = vadd.f32 %v470_v43, %v372_v41  ;;  %v559_v45 = vpop.f32.mrf.mxu1 }
 0x1b6   :  { %577 = vst [vmem:[%s815_s7 + $0x38] sm:$0xff] %v556_v42  ;;  %v560_v46 = vadd.f32 %v559_v45, %v372_v41  ;;  %v472_v37 = vpop.f32.mrf.mxu0 }
 0x1b7   :  { %578 = vst [vmem:[%s815_s7 + $0x40] sm:$0xff] %v471_v44  ;;  %v473_v47 = vadd.f32 %v472_v37, %v372_v41  ;;  %v561_v48 = vpop.f32.mrf.mxu1 }
 0x1b8   :  { %580 = vst [vmem:[%s815_s7 + $0x50] sm:$0xff] %v560_v46  ;;  %v562_v50 = vadd.f32 %v561_v48, %v372_v41  ;;  %v476_v39 = vpop.f32.mrf.mxu0 }
 0x1b9   :  { %579 = vst [vmem:[%s815_s7 + $0x48] sm:$0xff] %v473_v47  ;;  %v477_v51 = vadd.f32 %v476_v39, %v377_v49  ;;  %v565_v52 = vpop.f32.mrf.mxu1 }
 0x1ba   :  { %581 = vst [vmem:[%s815_s7 + $0x58] sm:$0xff] %v562_v50  ;;  %v566_v53 = vadd.f32 %v565_v52, %v377_v49  ;;  %v478_v54 = vpop.f32.mrf.mxu0 }
 0x1bb   :  { %582 = vst [vmem:[%s815_s7 + $0x60] sm:$0xff] %v477_v51  ;;  %v479_v55 = vadd.f32 %v478_v54, %v377_v49  ;;  %v567_v56 = vpop.f32.mrf.mxu1 }
 0x1bc   :  { %584 = vst [vmem:[%s815_s7 + $0x70] sm:$0xff] %v566_v53  ;;  %v568_v57 = vadd.f32 %v567_v56, %v377_v49 }
 0x1bd   :  { %583 = vst [vmem:[%s815_s7 + $0x68] sm:$0xff] %v479_v55 }
 0x1be   :  { %585 = vst [vmem:[%s815_s7 + $0x78] sm:$0xff] %v568_v57 }

// kernel: fno_forward.7
= control target key start
LH: loop header
LB: loop body
LE: loop exit
PB: predicated region body
PF: predicated region fallthrough
CT: control target
= control target key end

     0   :  { %v3603_v0 = vmov 0.0   ;;  %vm299_vm0 = vcmask 523264   ;;  %vm3604_vm1 = vmmov 0   ;;  %vm2636_vm2 = vcmask 517120   ;;  %s4964_s1 = inlined_call_operand.vmem [shape: f32[32,64,64], index: 1, kind: input, shape index: {}]   ;;  %s4965_s0 = inlined_call_operand.vmem [shape: f32[32,2,64], index: 0, kind: input, shape index: {}]   ;;  %s4966_s2 = inlined_call_operand.vmem [shape: f32[32,2,64], index: 2, kind: output, shape index: {}]  }
   0x1   :  { %2993 = vmatprep.subr.mxu0 %v3603_v0  ;;  %3012 = vmatprep.subr.mxu1 %v3603_v0  ;;  %v50_v1 = vld [vmem:[%s4964_s1 + $0x38] sm:$0xff]  ;;  %v49_v3 = vld [vmem:[%s4964_s1 + $0x30] sm:$0xff]  ;;  %v48_v5 = vld [vmem:[%s4964_s1 + $0x28] sm:$0xff] }
   0x2   :  { %v58_v2 = vld [vmem:[%s4964_s1 + $0x78] sm:$0xff]  ;;  %2994 = vmatpush3.msra.mxu0 %v50_v1  ;;  %v57_v4 = vld [vmem:[%s4964_s1 + $0x70] sm:$0xff]  ;;  %v56_v6 = vld [vmem:[%s4964_s1 + $0x68] sm:$0xff]  ;;  %3009 = vmatprep.mubr.msk.f32.mxu0 %vm3604_vm1, %v3603_v0 }
   0x3   :  { %3013 = vmatpush3.msra.mxu1 %v58_v2  ;;  %2995 = vmatprep.subr.mxu0 %v3603_v0  ;;  %v47_v7 = vld [vmem:[%s4964_s1 + $0x20] sm:$0xff]  ;;  %v46_v9 = vld [vmem:[%s4964_s1 + $0x18] sm:$0xff]  ;;  %v45_v11 = vld [vmem:[%s4964_s1 + $0x10] sm:$0xff] }
   0x4   :  { %3014 = vmatprep.subr.mxu1 %v3603_v0  ;;  %2996 = vmatpush3.msra.mxu0 %v49_v3  ;;  %v55_v8 = vld [vmem:[%s4964_s1 + $0x60] sm:$0xff]  ;;  %v54_v10 = vld [vmem:[%s4964_s1 + $0x58] sm:$0xff]  ;;  %v53_v12 = vld [vmem:[%s4964_s1 + $0x50] sm:$0xff] }
   0x5   :  { %3015 = vmatpush3.msra.mxu1 %v57_v4  ;;  %2997 = vmatprep.subr.mxu0 %v3603_v0  ;;  %v44_v13 = vld [vmem:[%s4964_s1 + $0x8] sm:$0xff]  ;;  %v43_v15 = vld [vmem:[%s4964_s1] sm:$0xff]  ;;  %v66_v19 = vld [vmem:[%s4964_s1 + $0xb8] sm:$0xff] }
   0x6   :  { %3016 = vmatprep.subr.mxu1 %v3603_v0  ;;  %2998 = vmatpush3.msra.mxu0 %v48_v5  ;;  %v52_v14 = vld [vmem:[%s4964_s1 + $0x48] sm:$0xff]  ;;  %v51_v16 = vld [vmem:[%s4964_s1 + $0x40] sm:$0xff]  ;;  %v74_v20 = vld [vmem:[%s4964_s1 + $0xf8] sm:$0xff] }
   0x7   :  { %3017 = vmatpush3.msra.mxu1 %v56_v6  ;;  %2999 = vmatprep.subr.mxu0 %v3603_v0  ;;  %v11_v17 = vld [vmem:[%s4965_s0] sm:$0x3]  ;;  %v12_v18 = vld [vmem:[%s4965_s0 + $0x2] sm:$0x3]  ;;  %v65_v21 = vld [vmem:[%s4964_s1 + $0xb0] sm:$0xff] }
   0x8   :  { %3018 = vmatprep.subr.mxu1 %v3603_v0  ;;  %3000 = vmatpush3.msra.mxu0 %v47_v7  ;;  %v73_v22 = vld [vmem:[%s4964_s1 + $0xf0] sm:$0xff]  ;;  %v64_v23 = vld [vmem:[%s4964_s1 + $0xa8] sm:$0xff]  ;;  %v63_v25 = vld [vmem:[%s4964_s1 + $0xa0] sm:$0xff] }
   0x9   :  { %3019 = vmatpush3.msra.mxu1 %v55_v8  ;;  %3001 = vmatprep.subr.mxu0 %v3603_v0  ;;  %v72_v24 = vld [vmem:[%s4964_s1 + $0xe8] sm:$0xff]  ;;  %v71_v26 = vld [vmem:[%s4964_s1 + $0xe0] sm:$0xff]  ;;  %v62_v27 = vld [vmem:[%s4964_s1 + $0x98] sm:$0xff] }
   0xa   :  { %3020 = vmatprep.subr.mxu1 %v3603_v0  ;;  %3002 = vmatpush3.msra.mxu0 %v46_v9  ;;  %v70_v28 = vld [vmem:[%s4964_s1 + $0xd8] sm:$0xff]  ;;  %v61_v29 = vld [vmem:[%s4964_s1 + $0x90] sm:$0xff]  ;;  %v60_v31 = vld [vmem:[%s4964_s1 + $0x88] sm:$0xff] }
   0xb   :  { %3021 = vmatpush3.msra.mxu1 %v54_v10  ;;  %3003 = vmatprep.subr.mxu0 %v3603_v0  ;;  %v69_v30 = vld [vmem:[%s4964_s1 + $0xd0] sm:$0xff]  ;;  %v68_v32 = vld [vmem:[%s4964_s1 + $0xc8] sm:$0xff]  ;;  %v59_v33 = vld [vmem:[%s4964_s1 + $0x80] sm:$0xff] }
   0xc   :  { %3022 = vmatprep.subr.mxu1 %v3603_v0  ;;  %3004 = vmatpush3.msra.mxu0 %v45_v11  ;;  %v67_v34 = vld [vmem:[%s4964_s1 + $0xc0] sm:$0xff]  ;;  %v82_v37 = vld [vmem:[%s4964_s1 + $0x138] sm:$0xff]  ;;  %v81_v39 = vld [vmem:[%s4964_s1 + $0x130] sm:$0xff] }
   0xd   :  { %3023 = vmatpush3.msra.mxu1 %v53_v12  ;;  %3005 = vmatprep.subr.mxu0 %v3603_v0  ;;  %v13_v35 = vld [vmem:[%s4965_s0 + $0x4] sm:$0x3]  ;;  %v14_v36 = vld [vmem:[%s4965_s0 + $0x6] sm:$0x3]  ;;  %v90_v38 = vld [vmem:[%s4964_s1 + $0x178] sm:$0xff] }
   0xe   :  { %3024 = vmatprep.subr.mxu1 %v3603_v0  ;;  %3006 = vmatpush3.msra.mxu0 %v44_v13  ;;  %v89_v40 = vld [vmem:[%s4964_s1 + $0x170] sm:$0xff]  ;;  %v80_v41 = vld [vmem:[%s4964_s1 + $0x128] sm:$0xff]  ;;  %v79_v43 = vld [vmem:[%s4964_s1 + $0x120] sm:$0xff] }
   0xf   :  { %3025 = vmatpush3.msra.mxu1 %v52_v14  ;;  %3007 = vmatprep.subr.mxu0 %v3603_v0  ;;  %v88_v42 = vld [vmem:[%s4964_s1 + $0x168] sm:$0xff]  ;;  %v87_v44 = vld [vmem:[%s4964_s1 + $0x160] sm:$0xff]  ;;  %v78_v45 = vld [vmem:[%s4964_s1 + $0x118] sm:$0xff] }
  0x10   :  { %3026 = vmatprep.subr.mxu1 %v3603_v0  ;;  %3008 = vmatpush3.msra.mxu0 %v43_v15  ;;  %v86_v46 = vld [vmem:[%s4964_s1 + $0x158] sm:$0xff]  ;;  %v77_v47 = vld [vmem:[%s4964_s1 + $0x110] sm:$0xff]  ;;  %v76_v49 = vld [vmem:[%s4964_s1 + $0x108] sm:$0xff] }
  0x11   :  { %3027 = vmatpush3.msra.mxu1 %v51_v16  ;;  %3028 = vmatprep.mubr.msk.f32.mxu1 %vm3604_vm1, %v3603_v0  ;;  %v85_v48 = vld [vmem:[%s4964_s1 + $0x150] sm:$0xff]  ;;  %v84_v50 = vld [vmem:[%s4964_s1 + $0x148] sm:$0xff]  ;;  %v75_v51 = vld [vmem:[%s4964_s1 + $0x100] sm:$0xff] }
  0x12   :  { %3010 = vmatmul.mubr.msk.f32.vlgmr.msra.gmra.mxu0 %vm299_vm0, %v11_v17  ;;  %3029 = vmatmul.mubr.msk.f32.vlgmr.msra.gmra.mxu1 %vm299_vm0, %v12_v18  ;;  %v83_v52 = vld [vmem:[%s4964_s1 + $0x140] sm:$0xff]  ;;  %v15_v53 = vld [vmem:[%s4965_s0 + $0x8] sm:$0x3]  ;;  %v16_v54 = vld [vmem:[%s4965_s0 + $0xa] sm:$0x3] }
  0x13   :  { %3031 = vmatprep.subr.mxu0 %v3603_v0  ;;  %3050 = vmatprep.subr.mxu1 %v3603_v0  ;;  %v98_v55 = vld [vmem:[%s4964_s1 + $0x1b8] sm:$0xff]  ;;  %v97_v57 = vld [vmem:[%s4964_s1 + $0x1b0] sm:$0xff]  ;;  %v96_v59 = vld [vmem:[%s4964_s1 + $0x1a8] sm:$0xff] }
  0x14   :  { %3032 = vmatpush3.msra.mxu0 %v66_v19  ;;  %3051 = vmatpush3.msra.mxu1 %v74_v20  ;;  %v106_v56 = vld [vmem:[%s4964_s1 + $0x1f8] sm:$0xff]  ;;  %v105_v58 = vld [vmem:[%s4964_s1 + $0x1f0] sm:$0xff]  ;;  %v104_v60 = vld [vmem:[%s4964_s1 + $0x1e8] sm:$0xff] }
  0x15   :  { %3033 = vmatprep.subr.mxu0 %v3603_v0  ;;  %3052 = vmatprep.subr.mxu1 %v3603_v0  ;;  %v95_v61 = vld [vmem:[%s4964_s1 + $0x1a0] sm:$0xff]  ;;  %v94_v63 = vld [vmem:[%s4964_s1 + $0x198] sm:$0xff]  ;;  %v93_v2 = vld [vmem:[%s4964_s1 + $0x190] sm:$0xff] }
  0x16   :  { %3034 = vmatpush3.msra.mxu0 %v65_v21  ;;  %3053 = vmatpush3.msra.mxu1 %v73_v22  ;;  %v103_v62 = vld [vmem:[%s4964_s1 + $0x1e0] sm:$0xff]  ;;  %v102_v1 = vld [vmem:[%s4964_s1 + $0x1d8] sm:$0xff]  ;;  %v101_v3 = vld [vmem:[%s4964_s1 + $0x1d0] sm:$0xff] }
  0x17   :  { %3035 = vmatprep.subr.mxu0 %v3603_v0  ;;  %3054 = vmatprep.subr.mxu1 %v3603_v0  ;;  %v92_v4 = vld [vmem:[%s4964_s1 + $0x188] sm:$0xff]  ;;  %v91_v6 = vld [vmem:[%s4964_s1 + $0x180] sm:$0xff]  ;;  %v114_v10 = vld [vmem:[%s4964_s1 + $0x238] sm:$0xff] }
  0x18   :  { %3036 = vmatpush3.msra.mxu0 %v64_v23  ;;  %3055 = vmatpush3.msra.mxu1 %v72_v24  ;;  %v100_v5 = vld [vmem:[%s4964_s1 + $0x1c8] sm:$0xff]  ;;  %v99_v7 = vld [vmem:[%s4964_s1 + $0x1c0] sm:$0xff]  ;;  %v122_v11 = vld [vmem:[%s4964_s1 + $0x278] sm:$0xff] }
  0x19   :  { %3037 = vmatprep.subr.mxu0 %v3603_v0  ;;  %3056 = vmatprep.subr.mxu1 %v3603_v0  ;;  %v17_v8 = vld [vmem:[%s4965_s0 + $0xc] sm:$0x3]  ;;  %v18_v9 = vld [vmem:[%s4965_s0 + $0xe] sm:$0x3]  ;;  %v113_v12 = vld [vmem:[%s4964_s1 + $0x230] sm:$0xff] }
  0x1a   :  { %3038 = vmatpush3.msra.mxu0 %v63_v25  ;;  %3057 = vmatpush3.msra.mxu1 %v71_v26  ;;  %v121_v13 = vld [vmem:[%s4964_s1 + $0x270] sm:$0xff]  ;;  %v112_v14 = vld [vmem:[%s4964_s1 + $0x228] sm:$0xff]  ;;  %v111_v16 = vld [vmem:[%s4964_s1 + $0x220] sm:$0xff] }
  0x1b   :  { %3039 = vmatprep.subr.mxu0 %v3603_v0  ;;  %3058 = vmatprep.subr.mxu1 %v3603_v0  ;;  %v120_v15 = vld [vmem:[%s4964_s1 + $0x268] sm:$0xff]  ;;  %v119_v17 = vld [vmem:[%s4964_s1 + $0x260] sm:$0xff]  ;;  %v110_v18 = vld [vmem:[%s4964_s1 + $0x218] sm:$0xff] }
  0x1c   :  { %3040 = vmatpush3.msra.mxu0 %v62_v27  ;;  %3059 = vmatpush3.msra.mxu1 %v70_v28  ;;  %v118_v19 = vld [vmem:[%s4964_s1 + $0x258] sm:$0xff]  ;;  %v109_v20 = vld [vmem:[%s4964_s1 + $0x210] sm:$0xff]  ;;  %v108_v22 = vld [vmem:[%s4964_s1 + $0x208] sm:$0xff] }
  0x1d   :  { %3041 = vmatprep.subr.mxu0 %v3603_v0  ;;  %3060 = vmatprep.subr.mxu1 %v3603_v0  ;;  %v117_v21 = vld [vmem:[%s4964_s1 + $0x250] sm:$0xff]  ;;  %v116_v23 = vld [vmem:[%s4964_s1 + $0x248] sm:$0xff]  ;;  %v107_v24 = vld [vmem:[%s4964_s1 + $0x200] sm:$0xff] }
  0x1e   :  { %3042 = vmatpush3.msra.mxu0 %v61_v29  ;;  %3061 = vmatpush3.msra.mxu1 %v69_v30  ;;  %v115_v25 = vld [vmem:[%s4964_s1 + $0x240] sm:$0xff]  ;;  %v19_v26 = vld [vmem:[%s4965_s0 + $0x10] sm:$0x3]  ;;  %v20_v27 = vld [vmem:[%s4965_s0 + $0x12] sm:$0x3] }
  0x1f   :  { %3043 = vmatprep.subr.mxu0 %v3603_v0  ;;  %3062 = vmatprep.subr.mxu1 %v3603_v0  ;;  %v130_v28 = vld [vmem:[%s4964_s1 + $0x2b8] sm:$0xff]  ;;  %v129_v30 = vld [vmem:[%s4964_s1 + $0x2b0] sm:$0xff] }
  0x20   :  { %3044 = vmatpush3.msra.mxu0 %v60_v31  ;;  %3063 = vmatpush3.msra.mxu1 %v68_v32  ;;  %v138_v29 = vld [vmem:[%s4964_s1 + $0x2f8] sm:$0xff]  ;;  %v137_v31 = vld [vmem:[%s4964_s1 + $0x2f0] sm:$0xff]  ;;  %v128_v32 = vld [vmem:[%s4964_s1 + $0x2a8] sm:$0xff] }
  0x21   :  { %3045 = vmatprep.subr.mxu0 %v3603_v0  ;;  %3064 = vmatprep.subr.mxu1 %v3603_v0 }
  0x22   :  { %3046 = vmatpush3.msra.mxu0 %v59_v33  ;;  %3047 = vmatprep.mubr.msk.f32.mxu0 %vm3604_vm1, %v3603_v0  ;;  %v136_v33 = vld [vmem:[%s4964_s1 + $0x2e8] sm:$0xff] }
  0x23   :  { %3065 = vmatpush3.msra.mxu1 %v67_v34  ;;  %3066 = vmatprep.mubr.msk.f32.mxu1 %vm3604_vm1, %v3603_v0  ;;  %v127_v34 = vld [vmem:[%s4964_s1 + $0x2a0] sm:$0xff] }
  0x24   :  { %3048 = vmatmul.mubr.msk.f32.vlgmr.msra.gmra.mxu0 %vm299_vm0, %v13_v35  ;;  %3067 = vmatmul.mubr.msk.f32.vlgmr.msra.gmra.mxu1 %vm299_vm0, %v14_v36  ;;  %v135_v35 = vld [vmem:[%s4964_s1 + $0x2e0] sm:$0xff]  ;;  %v126_v36 = vld [vmem:[%s4964_s1 + $0x298] sm:$0xff] }
  0x25   :  { %3069 = vmatprep.subr.mxu0 %v3603_v0  ;;  %3088 = vmatprep.subr.mxu1 %v3603_v0 }
  0x26   :  { %3070 = vmatpush3.msra.mxu0 %v82_v37  ;;  %3089 = vmatpush3.msra.mxu1 %v90_v38  ;;  %v134_v37 = vld [vmem:[%s4964_s1 + $0x2d8] sm:$0xff]  ;;  %v125_v38 = vld [vmem:[%s4964_s1 + $0x290] sm:$0xff] }
  0x27   :  { %3071 = vmatprep.subr.mxu0 %v3603_v0  ;;  %3090 = vmatprep.subr.mxu1 %v3603_v0 }
  0x28   :  { %3072 = vmatpush3.msra.mxu0 %v81_v39  ;;  %3091 = vmatpush3.msra.mxu1 %v89_v40  ;;  %v133_v39 = vld [vmem:[%s4964_s1 + $0x2d0] sm:$0xff]  ;;  %v124_v40 = vld [vmem:[%s4964_s1 + $0x288] sm:$0xff] }
  0x29   :  { %3073 = vmatprep.subr.mxu0 %v3603_v0  ;;  %3092 = vmatprep.subr.mxu1 %v3603_v0 }
  0x2a   :  { %3074 = vmatpush3.msra.mxu0 %v80_v41  ;;  %3093 = vmatpush3.msra.mxu1 %v88_v42  ;;  %v132_v41 = vld [vmem:[%s4964_s1 + $0x2c8] sm:$0xff]  ;;  %v123_v42 = vld [vmem:[%s4964_s1 + $0x280] sm:$0xff] }
  0x2b   :  { %3075 = vmatprep.subr.mxu0 %v3603_v0  ;;  %3094 = vmatprep.subr.mxu1 %v3603_v0 }
  0x2c   :  { %3076 = vmatpush3.msra.mxu0 %v79_v43  ;;  %3095 = vmatpush3.msra.mxu1 %v87_v44  ;;  %v131_v43 = vld [vmem:[%s4964_s1 + $0x2c0] sm:$0xff]  ;;  %v21_v44 = vld [vmem:[%s4965_s0 + $0x14] sm:$0x3] }
  0x2d   :  { %3077 = vmatprep.subr.mxu0 %v3603_v0  ;;  %3096 = vmatprep.subr.mxu1 %v3603_v0 }
  0x2e   :  { %3078 = vmatpush3.msra.mxu0 %v78_v45  ;;  %3097 = vmatpush3.msra.mxu1 %v86_v46  ;;  %v22_v45 = vld [vmem:[%s4965_s0 + $0x16] sm:$0x3]  ;;  %v146_v46 = vld [vmem:[%s4964_s1 + $0x338] sm:$0xff] }
  0x2f   :  { %3079 = vmatprep.subr.mxu0 %v3603_v0  ;;  %3098 = vmatprep.subr.mxu1 %v3603_v0 }
  0x30   :  { %3080 = vmatpush3.msra.mxu0 %v77_v47  ;;  %3099 = vmatpush3.msra.mxu1 %v85_v48  ;;  %v154_v47 = vld [vmem:[%s4964_s1 + $0x378] sm:$0xff]  ;;  %v145_v48 = vld [vmem:[%s4964_s1 + $0x330] sm:$0xff] }
  0x31   :  { %3081 = vmatprep.subr.mxu0 %v3603_v0  ;;  %3100 = vmatprep.subr.mxu1 %v3603_v0 }
  0x32   :  { %3082 = vmatpush3.msra.mxu0 %v76_v49  ;;  %3101 = vmatpush3.msra.mxu1 %v84_v50  ;;  %v153_v49 = vld [vmem:[%s4964_s1 + $0x370] sm:$0xff]  ;;  %v144_v50 = vld [vmem:[%s4964_s1 + $0x328] sm:$0xff] }
  0x33   :  { %3083 = vmatprep.subr.mxu0 %v3603_v0  ;;  %3102 = vmatprep.subr.mxu1 %v3603_v0 }
  0x34   :  { %3084 = vmatpush3.msra.mxu0 %v75_v51  ;;  %3085 = vmatprep.mubr.msk.f32.mxu0 %vm3604_vm1, %v3603_v0  ;;  %v152_v51 = vld [vmem:[%s4964_s1 + $0x368] sm:$0xff] }
  0x35   :  { %3103 = vmatpush3.msra.mxu1 %v83_v52  ;;  %3104 = vmatprep.mubr.msk.f32.mxu1 %vm3604_vm1, %v3603_v0  ;;  %v143_v52 = vld [vmem:[%s4964_s1 + $0x320] sm:$0xff] }
  0x36   :  { %3086 = vmatmul.mubr.msk.f32.vlgmr.msra.gmra.mxu0 %vm299_vm0, %v15_v53  ;;  %3105 = vmatmul.mubr.msk.f32.vlgmr.msra.gmra.mxu1 %vm299_vm0, %v16_v54  ;;  %v151_v53 = vld [vmem:[%s4964_s1 + $0x360] sm:$0xff]  ;;  %v142_v54 = vld [vmem:[%s4964_s1 + $0x318] sm:$0xff] }
  0x37   :  { %3107 = vmatprep.subr.mxu0 %v3603_v0  ;;  %3126 = vmatprep.subr.mxu1 %v3603_v0 }
  0x38   :  { %3108 = vmatpush3.msra.mxu0 %v98_v55  ;;  %3127 = vmatpush3.msra.mxu1 %v106_v56  ;;  %v150_v55 = vld [vmem:[%s4964_s1 + $0x358] sm:$0xff]  ;;  %v141_v56 = vld [vmem:[%s4964_s1 + $0x310] sm:$0xff] }
  0x39   :  { %3109 = vmatprep.subr.mxu0 %v3603_v0  ;;  %3128 = vmatprep.subr.mxu1 %v3603_v0 }
  0x3a   :  { %3110 = vmatpush3.msra.mxu0 %v97_v57  ;;  %3129 = vmatpush3.msra.mxu1 %v105_v58  ;;  %v149_v57 = vld [vmem:[%s4964_s1 + $0x350] sm:$0xff]  ;;  %v140_v58 = vld [vmem:[%s4964_s1 + $0x308] sm:$0xff] }
  0x3b   :  { %3111 = vmatprep.subr.mxu0 %v3603_v0  ;;  %3130 = vmatprep.subr.mxu1 %v3603_v0 }
  0x3c   :  { %3112 = vmatpush3.msra.mxu0 %v96_v59  ;;  %3131 = vmatpush3.msra.mxu1 %v104_v60  ;;  %v148_v59 = vld [vmem:[%s4964_s1 + $0x348] sm:$0xff]  ;;  %v139_v60 = vld [vmem:[%s4964_s1 + $0x300] sm:$0xff] }
  0x3d   :  { %3113 = vmatprep.subr.mxu0 %v3603_v0  ;;  %3132 = vmatprep.subr.mxu1 %v3603_v0 }
  0x3e   :  { %3114 = vmatpush3.msra.mxu0 %v95_v61  ;;  %3133 = vmatpush3.msra.mxu1 %v103_v62  ;;  %v147_v61 = vld [vmem:[%s4964_s1 + $0x340] sm:$0xff]  ;;  %v23_v62 = vld [vmem:[%s4965_s0 + $0x18] sm:$0x3] }
  0x3f   :  { %3115 = vmatprep.subr.mxu0 %v3603_v0  ;;  %3134 = vmatprep.subr.mxu1 %v3603_v0 }
  0x40   :  { %3116 = vmatpush3.msra.mxu0 %v94_v63  ;;  %3135 = vmatpush3.msra.mxu1 %v102_v1  ;;  %v24_v63 = vld [vmem:[%s4965_s0 + $0x1a] sm:$0x3] }
  0x41   :  { %3117 = vmatprep.subr.mxu0 %v3603_v0  ;;  %3136 = vmatprep.subr.mxu1 %v3603_v0  ;;  %v162_v1 = vld [vmem:[%s4964_s1 + $0x3b8] sm:$0xff] }
  0x42   :  { %3118 = vmatpush3.msra.mxu0 %v93_v2  ;;  %3137 = vmatpush3.msra.mxu1 %v101_v3  ;;  %v170_v2 = vld [vmem:[%s4964_s1 + $0x3f8] sm:$0xff]  ;;  %v161_v3 = vld [vmem:[%s4964_s1 + $0x3b0] sm:$0xff] }
  0x43   :  { %3119 = vmatprep.subr.mxu0 %v3603_v0  ;;  %3138 = vmatprep.subr.mxu1 %v3603_v0 }
  0x44   :  { %3120 = vmatpush3.msra.mxu0 %v92_v4  ;;  %3139 = vmatpush3.msra.mxu1 %v100_v5  ;;  %v169_v4 = vld [vmem:[%s4964_s1 + $0x3f0] sm:$0xff]  ;;  %v160_v5 = vld [vmem:[%s4964_s1 + $0x3a8] sm:$0xff] }
  0x45   :  { %3121 = vmatprep.subr.mxu0 %v3603_v0  ;;  %3140 = vmatprep.subr.mxu1 %v3603_v0 }
  0x46   :  { %3122 = vmatpush3.msra.mxu0 %v91_v6  ;;  %3123 = vmatprep.mubr.msk.f32.mxu0 %vm3604_vm1, %v3603_v0  ;;  %v168_v6 = vld [vmem:[%s4964_s1 + $0x3e8] sm:$0xff] }
  0x47   :  { %3141 = vmatpush3.msra.mxu1 %v99_v7  ;;  %3142 = vmatprep.mubr.msk.f32.mxu1 %vm3604_vm1, %v3603_v0  ;;  %v159_v7 = vld [vmem:[%s4964_s1 + $0x3a0] sm:$0xff] }
  0x48   :  { %3124 = vmatmul.mubr.msk.f32.vlgmr.msra.gmra.mxu0 %vm299_vm0, %v17_v8  ;;  %3143 = vmatmul.mubr.msk.f32.vlgmr.msra.gmra.mxu1 %vm299_vm0, %v18_v9  ;;  %v167_v8 = vld [vmem:[%s4964_s1 + $0x3e0] sm:$0xff]  ;;  %v158_v9 = vld [vmem:[%s4964_s1 + $0x398] sm:$0xff] }
  0x49   :  { %3145 = vmatprep.subr.mxu0 %v3603_v0  ;;  %3164 = vmatprep.subr.mxu1 %v3603_v0 }
  0x4a   :  { %3146 = vmatpush3.msra.mxu0 %v114_v10  ;;  %3165 = vmatpush3.msra.mxu1 %v122_v11  ;;  %v166_v10 = vld [vmem:[%s4964_s1 + $0x3d8] sm:$0xff]  ;;  %v157_v11 = vld [vmem:[%s4964_s1 + $0x390] sm:$0xff] }
  0x4b   :  { %3147 = vmatprep.subr.mxu0 %v3603_v0  ;;  %3166 = vmatprep.subr.mxu1 %v3603_v0 }
  0x4c   :  { %3148 = vmatpush3.msra.mxu0 %v113_v12  ;;  %3167 = vmatpush3.msra.mxu1 %v121_v13  ;;  %v165_v12 = vld [vmem:[%s4964_s1 + $0x3d0] sm:$0xff]  ;;  %v156_v13 = vld [vmem:[%s4964_s1 + $0x388] sm:$0xff] }
  0x4d   :  { %3149 = vmatprep.subr.mxu0 %v3603_v0  ;;  %3168 = vmatprep.subr.mxu1 %v3603_v0 }
  0x4e   :  { %3150 = vmatpush3.msra.mxu0 %v112_v14  ;;  %3169 = vmatpush3.msra.mxu1 %v120_v15  ;;  %v164_v14 = vld [vmem:[%s4964_s1 + $0x3c8] sm:$0xff]  ;;  %v155_v15 = vld [vmem:[%s4964_s1 + $0x380] sm:$0xff] }
  0x4f   :  { %3151 = vmatprep.subr.mxu0 %v3603_v0  ;;  %3170 = vmatprep.subr.mxu1 %v3603_v0 }
  0x50   :  { %3152 = vmatpush3.msra.mxu0 %v111_v16  ;;  %3171 = vmatpush3.msra.mxu1 %v119_v17  ;;  %v163_v16 = vld [vmem:[%s4964_s1 + $0x3c0] sm:$0xff]  ;;  %v25_v17 = vld [vmem:[%s4965_s0 + $0x1c] sm:$0x3] }
  0x51   :  { %3153 = vmatprep.subr.mxu0 %v3603_v0  ;;  %3172 = vmatprep.subr.mxu1 %v3603_v0 }
  0x52   :  { %3154 = vmatpush3.msra.mxu0 %v110_v18  ;;  %3173 = vmatpush3.msra.mxu1 %v118_v19  ;;  %v26_v18 = vld [vmem:[%s4965_s0 + $0x1e] sm:$0x3] }
  0x53   :  { %3155 = vmatprep.subr.mxu0 %v3603_v0  ;;  %3174 = vmatprep.subr.mxu1 %v3603_v0  ;;  %v178_v19 = vld [vmem:[%s4964_s1 + $0x438] sm:$0xff] }
  0x54   :  { %3156 = vmatpush3.msra.mxu0 %v109_v20  ;;  %3175 = vmatpush3.msra.mxu1 %v117_v21  ;;  %v186_v20 = vld [vmem:[%s4964_s1 + $0x478] sm:$0xff]  ;;  %v177_v21 = vld [vmem:[%s4964_s1 + $0x430] sm:$0xff] }
  0x55   :  { %3157 = vmatprep.subr.mxu0 %v3603_v0  ;;  %3176 = vmatprep.subr.mxu1 %v3603_v0 }
  0x56   :  { %3158 = vmatpush3.msra.mxu0 %v108_v22  ;;  %3177 = vmatpush3.msra.mxu1 %v116_v23  ;;  %v185_v22 = vld [vmem:[%s4964_s1 + $0x470] sm:$0xff]  ;;  %v176_v23 = vld [vmem:[%s4964_s1 + $0x428] sm:$0xff] }
  0x57   :  { %3159 = vmatprep.subr.mxu0 %v3603_v0  ;;  %3178 = vmatprep.subr.mxu1 %v3603_v0 }
  0x58   :  { %3160 = vmatpush3.msra.mxu0 %v107_v24  ;;  %3161 = vmatprep.mubr.msk.f32.mxu0 %vm3604_vm1, %v3603_v0  ;;  %v184_v24 = vld [vmem:[%s4964_s1 + $0x468] sm:$0xff] }
  0x59   :  { %3179 = vmatpush3.msra.mxu1 %v115_v25  ;;  %3180 = vmatprep.mubr.msk.f32.mxu1 %vm3604_vm1, %v3603_v0  ;;  %v175_v25 = vld [vmem:[%s4964_s1 + $0x420] sm:$0xff] }
  0x5a   :  { %3162 = vmatmul.mubr.msk.f32.vlgmr.msra.gmra.mxu0 %vm299_vm0, %v19_v26  ;;  %3181 = vmatmul.mubr.msk.f32.vlgmr.msra.gmra.mxu1 %vm299_vm0, %v20_v27  ;;  %v183_v26 = vld [vmem:[%s4964_s1 + $0x460] sm:$0xff]  ;;  %v174_v27 = vld [vmem:[%s4964_s1 + $0x418] sm:$0xff] }
  0x5b   :  { %3183 = vmatprep.subr.mxu0 %v3603_v0  ;;  %3202 = vmatprep.subr.mxu1 %v3603_v0 }
  0x5c   :  { %3184 = vmatpush3.msra.mxu0 %v130_v28  ;;  %3203 = vmatpush3.msra.mxu1 %v138_v29  ;;  %v182_v28 = vld [vmem:[%s4964_s1 + $0x458] sm:$0xff]  ;;  %v173_v29 = vld [vmem:[%s4964_s1 + $0x410] sm:$0xff] }
  0x5d   :  { %3185 = vmatprep.subr.mxu0 %v3603_v0  ;;  %3204 = vmatprep.subr.mxu1 %v3603_v0 }
  0x5e   :  { %3186 = vmatpush3.msra.mxu0 %v129_v30  ;;  %3205 = vmatpush3.msra.mxu1 %v137_v31  ;;  %v181_v30 = vld [vmem:[%s4964_s1 + $0x450] sm:$0xff]  ;;  %v172_v31 = vld [vmem:[%s4964_s1 + $0x408] sm:$0xff] }
  0x5f   :  { %3187 = vmatprep.subr.mxu0 %v3603_v0  ;;  %3206 = vmatprep.subr.mxu1 %v3603_v0 }
  0x60   :  { %3188 = vmatpush3.msra.mxu0 %v128_v32  ;;  %3207 = vmatpush3.msra.mxu1 %v136_v33  ;;  %v180_v32 = vld [vmem:[%s4964_s1 + $0x448] sm:$0xff]  ;;  %v171_v33 = vld [vmem:[%s4964_s1 + $0x400] sm:$0xff] }
  0x61   :  { %3189 = vmatprep.subr.mxu0 %v3603_v0  ;;  %3208 = vmatprep.subr.mxu1 %v3603_v0 }
  0x62   :  { %3190 = vmatpush3.msra.mxu0 %v127_v34  ;;  %3209 = vmatpush3.msra.mxu1 %v135_v35  ;;  %v179_v34 = vld [vmem:[%s4964_s1 + $0x440] sm:$0xff] }
  0x63   :  { %3191 = vmatprep.subr.mxu0 %v3603_v0  ;;  %3210 = vmatprep.subr.mxu1 %v3603_v0  ;;  %v27_v35 = vld [vmem:[%s4965_s0 + $0x20] sm:$0x3] }
  0x64   :  { %3192 = vmatpush3.msra.mxu0 %v126_v36  ;;  %3211 = vmatpush3.msra.mxu1 %v134_v37  ;;  %v28_v36 = vld [vmem:[%s4965_s0 + $0x22] sm:$0x3]  ;;  %v194_v37 = vld [vmem:[%s4964_s1 + $0x4b8] sm:$0xff] }
  0x65   :  { %3193 = vmatprep.subr.mxu0 %v3603_v0  ;;  %3212 = vmatprep.subr.mxu1 %v3603_v0 }
  0x66   :  { %3194 = vmatpush3.msra.mxu0 %v125_v38  ;;  %3213 = vmatpush3.msra.mxu1 %v133_v39  ;;  %v202_v38 = vld [vmem:[%s4964_s1 + $0x4f8] sm:$0xff]  ;;  %v193_v39 = vld [vmem:[%s4964_s1 + $0x4b0] sm:$0xff] }
  0x67   :  { %3195 = vmatprep.subr.mxu0 %v3603_v0  ;;  %3214 = vmatprep.subr.mxu1 %v3603_v0 }
  0x68   :  { %3196 = vmatpush3.msra.mxu0 %v124_v40  ;;  %3215 = vmatpush3.msra.mxu1 %v132_v41  ;;  %v201_v40 = vld [vmem:[%s4964_s1 + $0x4f0] sm:$0xff]  ;;  %v192_v41 = vld [vmem:[%s4964_s1 + $0x4a8] sm:$0xff] }
  0x69   :  { %3197 = vmatprep.subr.mxu0 %v3603_v0  ;;  %3216 = vmatprep.subr.mxu1 %v3603_v0 }
  0x6a   :  { %3198 = vmatpush3.msra.mxu0 %v123_v42  ;;  %3199 = vmatprep.mubr.msk.f32.mxu0 %vm3604_vm1, %v3603_v0  ;;  %v200_v42 = vld [vmem:[%s4964_s1 + $0x4e8] sm:$0xff] }
  0x6b   :  { %3217 = vmatpush3.msra.mxu1 %v131_v43  ;;  %3218 = vmatprep.mubr.msk.f32.mxu1 %vm3604_vm1, %v3603_v0  ;;  %v191_v43 = vld [vmem:[%s4964_s1 + $0x4a0] sm:$0xff] }
  0x6c   :  { %3200 = vmatmul.mubr.msk.f32.vlgmr.msra.gmra.mxu0 %vm299_vm0, %v21_v44  ;;  %3219 = vmatmul.mubr.msk.f32.vlgmr.msra.gmra.mxu1 %vm299_vm0, %v22_v45  ;;  %v199_v44 = vld [vmem:[%s4964_s1 + $0x4e0] sm:$0xff]  ;;  %v190_v45 = vld [vmem:[%s4964_s1 + $0x498] sm:$0xff] }
  0x6d   :  { %3221 = vmatprep.subr.mxu0 %v3603_v0  ;;  %3240 = vmatprep.subr.mxu1 %v3603_v0 }
  0x6e   :  { %3222 = vmatpush3.msra.mxu0 %v146_v46  ;;  %3241 = vmatpush3.msra.mxu1 %v154_v47  ;;  %v198_v46 = vld [vmem:[%s4964_s1 + $0x4d8] sm:$0xff]  ;;  %v189_v47 = vld [vmem:[%s4964_s1 + $0x490] sm:$0xff] }
  0x6f   :  { %3223 = vmatprep.subr.mxu0 %v3603_v0  ;;  %3242 = vmatprep.subr.mxu1 %v3603_v0 }
  0x70   :  { %3224 = vmatpush3.msra.mxu0 %v145_v48  ;;  %3243 = vmatpush3.msra.mxu1 %v153_v49  ;;  %v197_v48 = vld [vmem:[%s4964_s1 + $0x4d0] sm:$0xff]  ;;  %v188_v49 = vld [vmem:[%s4964_s1 + $0x488] sm:$0xff] }
  0x71   :  { %3225 = vmatprep.subr.mxu0 %v3603_v0  ;;  %3244 = vmatprep.subr.mxu1 %v3603_v0 }
  0x72   :  { %3226 = vmatpush3.msra.mxu0 %v144_v50  ;;  %3245 = vmatpush3.msra.mxu1 %v152_v51  ;;  %v196_v50 = vld [vmem:[%s4964_s1 + $0x4c8] sm:$0xff]  ;;  %v187_v51 = vld [vmem:[%s4964_s1 + $0x480] sm:$0xff] }
  0x73   :  { %3227 = vmatprep.subr.mxu0 %v3603_v0  ;;  %3246 = vmatprep.subr.mxu1 %v3603_v0 }
  0x74   :  { %3228 = vmatpush3.msra.mxu0 %v143_v52  ;;  %3247 = vmatpush3.msra.mxu1 %v151_v53  ;;  %v195_v52 = vld [vmem:[%s4964_s1 + $0x4c0] sm:$0xff] }
  0x75   :  { %3229 = vmatprep.subr.mxu0 %v3603_v0  ;;  %3248 = vmatprep.subr.mxu1 %v3603_v0  ;;  %v29_v53 = vld [vmem:[%s4965_s0 + $0x24] sm:$0x3] }
  0x76   :  { %3230 = vmatpush3.msra.mxu0 %v142_v54  ;;  %3249 = vmatpush3.msra.mxu1 %v150_v55  ;;  %v30_v54 = vld [vmem:[%s4965_s0 + $0x26] sm:$0x3]  ;;  %v210_v55 = vld [vmem:[%s4964_s1 + $0x538] sm:$0xff] }
  0x77   :  { %3231 = vmatprep.subr.mxu0 %v3603_v0  ;;  %3250 = vmatprep.subr.mxu1 %v3603_v0 }
  0x78   :  { %3232 = vmatpush3.msra.mxu0 %v141_v56  ;;  %3251 = vmatpush3.msra.mxu1 %v149_v57  ;;  %v218_v56 = vld [vmem:[%s4964_s1 + $0x578] sm:$0xff]  ;;  %v209_v57 = vld [vmem:[%s4964_s1 + $0x530] sm:$0xff] }
  0x79   :  { %3233 = vmatprep.subr.mxu0 %v3603_v0  ;;  %3252 = vmatprep.subr.mxu1 %v3603_v0 }
  0x7a   :  { %3234 = vmatpush3.msra.mxu0 %v140_v58  ;;  %3253 = vmatpush3.msra.mxu1 %v148_v59  ;;  %v217_v58 = vld [vmem:[%s4964_s1 + $0x570] sm:$0xff]  ;;  %v208_v59 = vld [vmem:[%s4964_s1 + $0x528] sm:$0xff] }
  0x7b   :  { %3235 = vmatprep.subr.mxu0 %v3603_v0  ;;  %3254 = vmatprep.subr.mxu1 %v3603_v0 }
  0x7c   :  { %3236 = vmatpush3.msra.mxu0 %v139_v60  ;;  %3237 = vmatprep.mubr.msk.f32.mxu0 %vm3604_vm1, %v3603_v0  ;;  %v216_v60 = vld [vmem:[%s4964_s1 + $0x568] sm:$0xff] }
  0x7d   :  { %3255 = vmatpush3.msra.mxu1 %v147_v61  ;;  %3256 = vmatprep.mubr.msk.f32.mxu1 %vm3604_vm1, %v3603_v0  ;;  %v207_v61 = vld [vmem:[%s4964_s1 + $0x520] sm:$0xff] }
  0x7e   :  { %3238 = vmatmul.mubr.msk.f32.vlgmr.msra.gmra.mxu0 %vm299_vm0, %v23_v62  ;;  %3257 = vmatmul.mubr.msk.f32.vlgmr.msra.gmra.mxu1 %vm299_vm0, %v24_v63  ;;  %v215_v62 = vld [vmem:[%s4964_s1 + $0x560] sm:$0xff]  ;;  %v206_v63 = vld [vmem:[%s4964_s1 + $0x518] sm:$0xff] }
  0x7f   :  { %3259 = vmatprep.subr.mxu0 %v3603_v0  ;;  %3278 = vmatprep.subr.mxu1 %v3603_v0 }
  0x80   :  { %3260 = vmatpush3.msra.mxu0 %v162_v1  ;;  %3279 = vmatpush3.msra.mxu1 %v170_v2  ;;  %v214_v1 = vld [vmem:[%s4964_s1 + $0x558] sm:$0xff]  ;;  %v205_v2 = vld [vmem:[%s4964_s1 + $0x510] sm:$0xff] }
  0x81   :  { %3261 = vmatprep.subr.mxu0 %v3603_v0  ;;  %3280 = vmatprep.subr.mxu1 %v3603_v0 }
  0x82   :  { %3262 = vmatpush3.msra.mxu0 %v161_v3  ;;  %3281 = vmatpush3.msra.mxu1 %v169_v4  ;;  %v213_v3 = vld [vmem:[%s4964_s1 + $0x550] sm:$0xff]  ;;  %v204_v4 = vld [vmem:[%s4964_s1 + $0x508] sm:$0xff] }
  0x83   :  { %3263 = vmatprep.subr.mxu0 %v3603_v0  ;;  %3282 = vmatprep.subr.mxu1 %v3603_v0 }
  0x84   :  { %3264 = vmatpush3.msra.mxu0 %v160_v5  ;;  %3283 = vmatpush3.msra.mxu1 %v168_v6  ;;  %v212_v5 = vld [vmem:[%s4964_s1 + $0x548] sm:$0xff]  ;;  %v203_v6 = vld [vmem:[%s4964_s1 + $0x500] sm:$0xff] }
  0x85   :  { %3265 = vmatprep.subr.mxu0 %v3603_v0  ;;  %3284 = vmatprep.subr.mxu1 %v3603_v0 }
  0x86   :  { %3266 = vmatpush3.msra.mxu0 %v159_v7  ;;  %3285 = vmatpush3.msra.mxu1 %v167_v8  ;;  %v211_v7 = vld [vmem:[%s4964_s1 + $0x540] sm:$0xff]  ;;  %v31_v8 = vld [vmem:[%s4965_s0 + $0x28] sm:$0x3] }
  0x87   :  { %3267 = vmatprep.subr.mxu0 %v3603_v0  ;;  %3286 = vmatprep.subr.mxu1 %v3603_v0 }
  0x88   :  { %3268 = vmatpush3.msra.mxu0 %v158_v9  ;;  %3287 = vmatpush3.msra.mxu1 %v166_v10  ;;  %v32_v9 = vld [vmem:[%s4965_s0 + $0x2a] sm:$0x3]  ;;  %v226_v10 = vld [vmem:[%s4964_s1 + $0x5b8] sm:$0xff] }
  0x89   :  { %3269 = vmatprep.subr.mxu0 %v3603_v0  ;;  %3288 = vmatprep.subr.mxu1 %v3603_v0 }
  0x8a   :  { %3270 = vmatpush3.msra.mxu0 %v157_v11  ;;  %3289 = vmatpush3.msra.mxu1 %v165_v12  ;;  %v234_v11 = vld [vmem:[%s4964_s1 + $0x5f8] sm:$0xff]  ;;  %v225_v12 = vld [vmem:[%s4964_s1 + $0x5b0] sm:$0xff] }
  0x8b   :  { %3271 = vmatprep.subr.mxu0 %v3603_v0  ;;  %3290 = vmatprep.subr.mxu1 %v3603_v0 }
  0x8c   :  { %3272 = vmatpush3.msra.mxu0 %v156_v13  ;;  %3291 = vmatpush3.msra.mxu1 %v164_v14  ;;  %v233_v13 = vld [vmem:[%s4964_s1 + $0x5f0] sm:$0xff]  ;;  %v224_v14 = vld [vmem:[%s4964_s1 + $0x5a8] sm:$0xff] }
  0x8d   :  { %3273 = vmatprep.subr.mxu0 %v3603_v0  ;;  %3292 = vmatprep.subr.mxu1 %v3603_v0 }
  0x8e   :  { %3274 = vmatpush3.msra.mxu0 %v155_v15  ;;  %3275 = vmatprep.mubr.msk.f32.mxu0 %vm3604_vm1, %v3603_v0  ;;  %v232_v15 = vld [vmem:[%s4964_s1 + $0x5e8] sm:$0xff] }
  0x8f   :  { %3293 = vmatpush3.msra.mxu1 %v163_v16  ;;  %3294 = vmatprep.mubr.msk.f32.mxu1 %vm3604_vm1, %v3603_v0  ;;  %v223_v16 = vld [vmem:[%s4964_s1 + $0x5a0] sm:$0xff] }
  0x90   :  { %3276 = vmatmul.mubr.msk.f32.vlgmr.msra.gmra.mxu0 %vm299_vm0, %v25_v17  ;;  %3295 = vmatmul.mubr.msk.f32.vlgmr.msra.gmra.mxu1 %vm299_vm0, %v26_v18  ;;  %v231_v17 = vld [vmem:[%s4964_s1 + $0x5e0] sm:$0xff]  ;;  %v222_v18 = vld [vmem:[%s4964_s1 + $0x598] sm:$0xff] }
  0x91   :  { %3297 = vmatprep.subr.mxu0 %v3603_v0  ;;  %3316 = vmatprep.subr.mxu1 %v3603_v0 }
  0x92   :  { %3298 = vmatpush3.msra.mxu0 %v178_v19  ;;  %3317 = vmatpush3.msra.mxu1 %v186_v20  ;;  %v230_v19 = vld [vmem:[%s4964_s1 + $0x5d8] sm:$0xff]  ;;  %v221_v20 = vld [vmem:[%s4964_s1 + $0x590] sm:$0xff] }
  0x93   :  { %3299 = vmatprep.subr.mxu0 %v3603_v0  ;;  %3318 = vmatprep.subr.mxu1 %v3603_v0 }
  0x94   :  { %3300 = vmatpush3.msra.mxu0 %v177_v21  ;;  %3319 = vmatpush3.msra.mxu1 %v185_v22  ;;  %v229_v21 = vld [vmem:[%s4964_s1 + $0x5d0] sm:$0xff]  ;;  %v220_v22 = vld [vmem:[%s4964_s1 + $0x588] sm:$0xff] }
  0x95   :  { %3301 = vmatprep.subr.mxu0 %v3603_v0  ;;  %3320 = vmatprep.subr.mxu1 %v3603_v0 }
  0x96   :  { %3302 = vmatpush3.msra.mxu0 %v176_v23  ;;  %3321 = vmatpush3.msra.mxu1 %v184_v24  ;;  %v228_v23 = vld [vmem:[%s4964_s1 + $0x5c8] sm:$0xff] }
  0x97   :  { %3303 = vmatprep.subr.mxu0 %v3603_v0  ;;  %3322 = vmatprep.subr.mxu1 %v3603_v0 }
  0x98   :  { %3304 = vmatpush3.msra.mxu0 %v175_v25  ;;  %3323 = vmatpush3.msra.mxu1 %v183_v26  ;;  %v219_v26 = vld [vmem:[%s4964_s1 + $0x580] sm:$0xff] }
  0x99   :  { %3305 = vmatprep.subr.mxu0 %v3603_v0  ;;  %3324 = vmatprep.subr.mxu1 %v3603_v0 }
  0x9a   :  { %3306 = vmatpush3.msra.mxu0 %v174_v27  ;;  %3325 = vmatpush3.msra.mxu1 %v182_v28  ;;  %v227_v27 = vld [vmem:[%s4964_s1 + $0x5c0] sm:$0xff] }
  0x9b   :  { %3307 = vmatprep.subr.mxu0 %v3603_v0  ;;  %3326 = vmatprep.subr.mxu1 %v3603_v0 }
  0x9c   :  { %3308 = vmatpush3.msra.mxu0 %v173_v29  ;;  %3327 = vmatpush3.msra.mxu1 %v181_v30  ;;  %v33_v30 = vld [vmem:[%s4965_s0 + $0x2c] sm:$0x3] }
  0x9d   :  { %3309 = vmatprep.subr.mxu0 %v3603_v0  ;;  %3328 = vmatprep.subr.mxu1 %v3603_v0 }
  0x9e   :  { %3310 = vmatpush3.msra.mxu0 %v172_v31  ;;  %3329 = vmatpush3.msra.mxu1 %v180_v32  ;;  %v34_v31 = vld [vmem:[%s4965_s0 + $0x2e] sm:$0x3]  ;;  %v242_v32 = vld [vmem:[%s4964_s1 + $0x638] sm:$0xff] }
  0x9f   :  { %3311 = vmatprep.subr.mxu0 %v3603_v0  ;;  %3330 = vmatprep.subr.mxu1 %v3603_v0 }
  0xa0   :  { %3312 = vmatpush3.msra.mxu0 %v171_v33  ;;  %3313 = vmatprep.mubr.msk.f32.mxu0 %vm3604_vm1, %v3603_v0  ;;  %v250_v33 = vld [vmem:[%s4964_s1 + $0x678] sm:$0xff] }
  0xa1   :  { %3331 = vmatpush3.msra.mxu1 %v179_v34  ;;  %3332 = vmatprep.mubr.msk.f32.mxu1 %vm3604_vm1, %v3603_v0  ;;  %v241_v34 = vld [vmem:[%s4964_s1 + $0x630] sm:$0xff] }
  0xa2   :  { %3314 = vmatmul.mubr.msk.f32.vlgmr.msra.gmra.mxu0 %vm299_vm0, %v27_v35  ;;  %3333 = vmatmul.mubr.msk.f32.vlgmr.msra.gmra.mxu1 %vm299_vm0, %v28_v36  ;;  %v249_v35 = vld [vmem:[%s4964_s1 + $0x670] sm:$0xff]  ;;  %v240_v36 = vld [vmem:[%s4964_s1 + $0x628] sm:$0xff] }
  0xa3   :  { %3335 = vmatprep.subr.mxu0 %v3603_v0  ;;  %3354 = vmatprep.subr.mxu1 %v3603_v0 }
  0xa4   :  { %3336 = vmatpush3.msra.mxu0 %v194_v37  ;;  %3355 = vmatpush3.msra.mxu1 %v202_v38  ;;  %v248_v37 = vld [vmem:[%s4964_s1 + $0x668] sm:$0xff]  ;;  %v239_v38 = vld [vmem:[%s4964_s1 + $0x620] sm:$0xff] }
  0xa5   :  { %3337 = vmatprep.subr.mxu0 %v3603_v0  ;;  %3356 = vmatprep.subr.mxu1 %v3603_v0 }
  0xa6   :  { %3338 = vmatpush3.msra.mxu0 %v193_v39  ;;  %3357 = vmatpush3.msra.mxu1 %v201_v40  ;;  %v247_v39 = vld [vmem:[%s4964_s1 + $0x660] sm:$0xff]  ;;  %v238_v40 = vld [vmem:[%s4964_s1 + $0x618] sm:$0xff] }
  0xa7   :  { %3339 = vmatprep.subr.mxu0 %v3603_v0  ;;  %3358 = vmatprep.subr.mxu1 %v3603_v0 }
  0xa8   :  { %3340 = vmatpush3.msra.mxu0 %v192_v41  ;;  %3359 = vmatpush3.msra.mxu1 %v200_v42  ;;  %v246_v41 = vld [vmem:[%s4964_s1 + $0x658] sm:$0xff]  ;;  %v237_v42 = vld [vmem:[%s4964_s1 + $0x610] sm:$0xff] }
  0xa9   :  { %3341 = vmatprep.subr.mxu0 %v3603_v0  ;;  %3360 = vmatprep.subr.mxu1 %v3603_v0 }
  0xaa   :  { %3342 = vmatpush3.msra.mxu0 %v191_v43  ;;  %3361 = vmatpush3.msra.mxu1 %v199_v44  ;;  %v245_v43 = vld [vmem:[%s4964_s1 + $0x650] sm:$0xff]  ;;  %v236_v44 = vld [vmem:[%s4964_s1 + $0x608] sm:$0xff] }
  0xab   :  { %3343 = vmatprep.subr.mxu0 %v3603_v0  ;;  %3362 = vmatprep.subr.mxu1 %v3603_v0 }
  0xac   :  { %3344 = vmatpush3.msra.mxu0 %v190_v45  ;;  %3363 = vmatpush3.msra.mxu1 %v198_v46  ;;  %v244_v45 = vld [vmem:[%s4964_s1 + $0x648] sm:$0xff] }
  0xad   :  { %3345 = vmatprep.subr.mxu0 %v3603_v0  ;;  %3364 = vmatprep.subr.mxu1 %v3603_v0 }
  0xae   :  { %3346 = vmatpush3.msra.mxu0 %v189_v47  ;;  %3365 = vmatpush3.msra.mxu1 %v197_v48  ;;  %v235_v48 = vld [vmem:[%s4964_s1 + $0x600] sm:$0xff] }
  0xaf   :  { %3347 = vmatprep.subr.mxu0 %v3603_v0  ;;  %3366 = vmatprep.subr.mxu1 %v3603_v0 }
  0xb0   :  { %3348 = vmatpush3.msra.mxu0 %v188_v49  ;;  %3367 = vmatpush3.msra.mxu1 %v196_v50  ;;  %v243_v49 = vld [vmem:[%s4964_s1 + $0x640] sm:$0xff] }
  0xb1   :  { %3349 = vmatprep.subr.mxu0 %v3603_v0  ;;  %3368 = vmatprep.subr.mxu1 %v3603_v0 }
  0xb2   :  { %3350 = vmatpush3.msra.mxu0 %v187_v51  ;;  %3351 = vmatprep.mubr.msk.f32.mxu0 %vm3604_vm1, %v3603_v0 }
  0xb3   :  { %3369 = vmatpush3.msra.mxu1 %v195_v52  ;;  %3370 = vmatprep.mubr.msk.f32.mxu1 %vm3604_vm1, %v3603_v0  ;;  %v35_v52 = vld [vmem:[%s4965_s0 + $0x30] sm:$0x3] }
  0xb4   :  { %3352 = vmatmul.mubr.msk.f32.vlgmr.msra.gmra.mxu0 %vm299_vm0, %v29_v53  ;;  %3371 = vmatmul.mubr.msk.f32.vlgmr.msra.gmra.mxu1 %vm299_vm0, %v30_v54  ;;  %v36_v53 = vld [vmem:[%s4965_s0 + $0x32] sm:$0x3]  ;;  %v258_v54 = vld [vmem:[%s4964_s1 + $0x6b8] sm:$0xff] }
  0xb5   :  { %3373 = vmatprep.subr.mxu0 %v3603_v0  ;;  %3392 = vmatprep.subr.mxu1 %v3603_v0 }
  0xb6   :  { %3374 = vmatpush3.msra.mxu0 %v210_v55  ;;  %3393 = vmatpush3.msra.mxu1 %v218_v56  ;;  %v266_v55 = vld [vmem:[%s4964_s1 + $0x6f8] sm:$0xff]  ;;  %v257_v56 = vld [vmem:[%s4964_s1 + $0x6b0] sm:$0xff] }
  0xb7   :  { %3375 = vmatprep.subr.mxu0 %v3603_v0  ;;  %3394 = vmatprep.subr.mxu1 %v3603_v0 }
  0xb8   :  { %3376 = vmatpush3.msra.mxu0 %v209_v57  ;;  %3395 = vmatpush3.msra.mxu1 %v217_v58  ;;  %v265_v57 = vld [vmem:[%s4964_s1 + $0x6f0] sm:$0xff]  ;;  %v256_v58 = vld [vmem:[%s4964_s1 + $0x6a8] sm:$0xff] }
  0xb9   :  { %3377 = vmatprep.subr.mxu0 %v3603_v0  ;;  %3396 = vmatprep.subr.mxu1 %v3603_v0 }
  0xba   :  { %3378 = vmatpush3.msra.mxu0 %v208_v59  ;;  %3397 = vmatpush3.msra.mxu1 %v216_v60  ;;  %v264_v59 = vld [vmem:[%s4964_s1 + $0x6e8] sm:$0xff]  ;;  %v255_v60 = vld [vmem:[%s4964_s1 + $0x6a0] sm:$0xff] }
  0xbb   :  { %3379 = vmatprep.subr.mxu0 %v3603_v0  ;;  %3398 = vmatprep.subr.mxu1 %v3603_v0 }
  0xbc   :  { %3380 = vmatpush3.msra.mxu0 %v207_v61  ;;  %3399 = vmatpush3.msra.mxu1 %v215_v62  ;;  %v263_v61 = vld [vmem:[%s4964_s1 + $0x6e0] sm:$0xff]  ;;  %v254_v62 = vld [vmem:[%s4964_s1 + $0x698] sm:$0xff] }
  0xbd   :  { %3381 = vmatprep.subr.mxu0 %v3603_v0  ;;  %3400 = vmatprep.subr.mxu1 %v3603_v0 }
  0xbe   :  { %3382 = vmatpush3.msra.mxu0 %v206_v63  ;;  %3401 = vmatpush3.msra.mxu1 %v214_v1  ;;  %v262_v63 = vld [vmem:[%s4964_s1 + $0x6d8] sm:$0xff]  ;;  %v253_v1 = vld [vmem:[%s4964_s1 + $0x690] sm:$0xff] }
  0xbf   :  { %3383 = vmatprep.subr.mxu0 %v3603_v0  ;;  %3402 = vmatprep.subr.mxu1 %v3603_v0 }
  0xc0   :  { %3384 = vmatpush3.msra.mxu0 %v205_v2  ;;  %3403 = vmatpush3.msra.mxu1 %v213_v3  ;;  %v261_v2 = vld [vmem:[%s4964_s1 + $0x6d0] sm:$0xff]  ;;  %v252_v3 = vld [vmem:[%s4964_s1 + $0x688] sm:$0xff] }
  0xc1   :  { %3385 = vmatprep.subr.mxu0 %v3603_v0  ;;  %3404 = vmatprep.subr.mxu1 %v3603_v0 }
  0xc2   :  { %3386 = vmatpush3.msra.mxu0 %v204_v4  ;;  %3405 = vmatpush3.msra.mxu1 %v212_v5  ;;  %v260_v4 = vld [vmem:[%s4964_s1 + $0x6c8] sm:$0xff] }
  0xc3   :  { %3387 = vmatprep.subr.mxu0 %v3603_v0  ;;  %3406 = vmatprep.subr.mxu1 %v3603_v0 }
  0xc4   :  { %3388 = vmatpush3.msra.mxu0 %v203_v6  ;;  %3389 = vmatprep.mubr.msk.f32.mxu0 %vm3604_vm1, %v3603_v0 }
  0xc5   :  { %3407 = vmatpush3.msra.mxu1 %v211_v7  ;;  %3408 = vmatprep.mubr.msk.f32.mxu1 %vm3604_vm1, %v3603_v0  ;;  %v251_v7 = vld [vmem:[%s4964_s1 + $0x680] sm:$0xff] }
  0xc6   :  { %3390 = vmatmul.mubr.msk.f32.vlgmr.msra.gmra.mxu0 %vm299_vm0, %v31_v8  ;;  %3409 = vmatmul.mubr.msk.f32.vlgmr.msra.gmra.mxu1 %vm299_vm0, %v32_v9  ;;  %v259_v8 = vld [vmem:[%s4964_s1 + $0x6c0] sm:$0xff] }
  0xc7   :  { %3411 = vmatprep.subr.mxu0 %v3603_v0  ;;  %3430 = vmatprep.subr.mxu1 %v3603_v0 }
  0xc8   :  { %3412 = vmatpush3.msra.mxu0 %v226_v10  ;;  %3431 = vmatpush3.msra.mxu1 %v234_v11  ;;  %v37_v11 = vld [vmem:[%s4965_s0 + $0x34] sm:$0x3] }
  0xc9   :  { %3413 = vmatprep.subr.mxu0 %v3603_v0  ;;  %3432 = vmatprep.subr.mxu1 %v3603_v0 }
  0xca   :  { %3414 = vmatpush3.msra.mxu0 %v225_v12  ;;  %3433 = vmatpush3.msra.mxu1 %v233_v13  ;;  %v38_v12 = vld [vmem:[%s4965_s0 + $0x36] sm:$0x3]  ;;  %v274_v13 = vld [vmem:[%s4964_s1 + $0x738] sm:$0xff] }
  0xcb   :  { %3415 = vmatprep.subr.mxu0 %v3603_v0  ;;  %3434 = vmatprep.subr.mxu1 %v3603_v0 }
  0xcc   :  { %3416 = vmatpush3.msra.mxu0 %v224_v14  ;;  %3435 = vmatpush3.msra.mxu1 %v232_v15  ;;  %v282_v14 = vld [vmem:[%s4964_s1 + $0x778] sm:$0xff]  ;;  %v273_v15 = vld [vmem:[%s4964_s1 + $0x730] sm:$0xff] }
  0xcd   :  { %3417 = vmatprep.subr.mxu0 %v3603_v0  ;;  %3436 = vmatprep.subr.mxu1 %v3603_v0 }
  0xce   :  { %3418 = vmatpush3.msra.mxu0 %v223_v16  ;;  %3437 = vmatpush3.msra.mxu1 %v231_v17  ;;  %v281_v16 = vld [vmem:[%s4964_s1 + $0x770] sm:$0xff]  ;;  %v272_v17 = vld [vmem:[%s4964_s1 + $0x728] sm:$0xff] }
  0xcf   :  { %3419 = vmatprep.subr.mxu0 %v3603_v0  ;;  %3438 = vmatprep.subr.mxu1 %v3603_v0 }
  0xd0   :  { %3420 = vmatpush3.msra.mxu0 %v222_v18  ;;  %3439 = vmatpush3.msra.mxu1 %v230_v19  ;;  %v280_v18 = vld [vmem:[%s4964_s1 + $0x768] sm:$0xff]  ;;  %v271_v19 = vld [vmem:[%s4964_s1 + $0x720] sm:$0xff] }
  0xd1   :  { %3421 = vmatprep.subr.mxu0 %v3603_v0  ;;  %3440 = vmatprep.subr.mxu1 %v3603_v0 }
  0xd2   :  { %3422 = vmatpush3.msra.mxu0 %v221_v20  ;;  %3441 = vmatpush3.msra.mxu1 %v229_v21  ;;  %v369_v24 = vpop.f32.mrf.mxu0  ;;  %v442_v25 = vpop.f32.mrf.mxu1  ;;  %v279_v20 = vld [vmem:[%s4964_s1 + $0x760] sm:$0xff]  ;;  %v270_v21 = vld [vmem:[%s4964_s1 + $0x718] sm:$0xff] }
  0xd3   :  { %3423 = vmatprep.subr.mxu0 %v3603_v0  ;;  %3442 = vmatprep.subr.mxu1 %v3603_v0  ;;  %2637 = vst.msk [vmem:[%s4966_s2] sm:$0x3] %vm2636_vm2, %v369_v24  ;;  %2638 = vst.msk [vmem:[%s4966_s2 + $0x2] sm:$0x3] %vm2636_vm2, %v442_v25  ;;  %v277_v24 = vld [vmem:[%s4964_s1 + $0x750] sm:$0xff]  ;;  %v268_v25 = vld [vmem:[%s4964_s1 + $0x708] sm:$0xff] }
  0xd4   :  { %3424 = vmatpush3.msra.mxu0 %v220_v22  ;;  %3443 = vmatpush3.msra.mxu1 %v228_v23  ;;  %v3011_v28 = vpop.f32.mrf.mxu0  ;;  %v3030_v29 = vpop.f32.mrf.mxu1  ;;  %v278_v22 = vld [vmem:[%s4964_s1 + $0x758] sm:$0xff]  ;;  %v269_v23 = vld [vmem:[%s4964_s1 + $0x710] sm:$0xff] }
  0xd5   :  { %3425 = vmatprep.subr.mxu0 %v3603_v0  ;;  %3444 = vmatprep.subr.mxu1 %v3603_v0  ;;  %v267_v29 = vld [vmem:[%s4964_s1 + $0x700] sm:$0xff] }
  0xd6   :  { %3426 = vmatpush3.msra.mxu0 %v219_v26  ;;  %3427 = vmatprep.mubr.msk.f32.mxu0 %vm3604_vm1, %v3603_v0  ;;  %v276_v26 = vld [vmem:[%s4964_s1 + $0x748] sm:$0xff] }
  0xd7   :  { %3445 = vmatpush3.msra.mxu1 %v227_v27  ;;  %3446 = vmatprep.mubr.msk.f32.mxu1 %vm3604_vm1, %v3603_v0 }
  0xd8   :  { %3428 = vmatmul.mubr.msk.f32.vlgmr.msra.gmra.mxu0 %vm299_vm0, %v33_v30  ;;  %3447 = vmatmul.mubr.msk.f32.vlgmr.msra.gmra.mxu1 %vm299_vm0, %v34_v31  ;;  %v275_v30 = vld [vmem:[%s4964_s1 + $0x740] sm:$0xff] }
  0xd9   :  { %3449 = vmatprep.subr.mxu0 %v3603_v0  ;;  %3468 = vmatprep.subr.mxu1 %v3603_v0 }
  0xda   :  { %3450 = vmatpush3.msra.mxu0 %v242_v32  ;;  %3469 = vmatpush3.msra.mxu1 %v250_v33  ;;  %v39_v33 = vld [vmem:[%s4965_s0 + $0x38] sm:$0x3] }
  0xdb   :  { %3451 = vmatprep.subr.mxu0 %v3603_v0  ;;  %3470 = vmatprep.subr.mxu1 %v3603_v0 }
  0xdc   :  { %3452 = vmatpush3.msra.mxu0 %v241_v34  ;;  %3471 = vmatpush3.msra.mxu1 %v249_v35  ;;  %v40_v34 = vld [vmem:[%s4965_s0 + $0x3a] sm:$0x3] }
  0xdd   :  { %3453 = vmatprep.subr.mxu0 %v3603_v0  ;;  %3472 = vmatprep.subr.mxu1 %v3603_v0  ;;  %v290_v35 = vld [vmem:[%s4964_s1 + $0x7b8] sm:$0xff] }
  0xde   :  { %3454 = vmatpush3.msra.mxu0 %v240_v36  ;;  %3473 = vmatpush3.msra.mxu1 %v248_v37  ;;  %v298_v36 = vld [vmem:[%s4964_s1 + $0x7f8] sm:$0xff]  ;;  %v289_v37 = vld [vmem:[%s4964_s1 + $0x7b0] sm:$0xff] }
  0xdf   :  { %3455 = vmatprep.subr.mxu0 %v3603_v0  ;;  %3474 = vmatprep.subr.mxu1 %v3603_v0 }
  0xe0   :  { %3456 = vmatpush3.msra.mxu0 %v239_v38  ;;  %3475 = vmatpush3.msra.mxu1 %v247_v39  ;;  %v297_v38 = vld [vmem:[%s4964_s1 + $0x7f0] sm:$0xff]  ;;  %v288_v39 = vld [vmem:[%s4964_s1 + $0x7a8] sm:$0xff] }
  0xe1   :  { %3457 = vmatprep.subr.mxu0 %v3603_v0  ;;  %3476 = vmatprep.subr.mxu1 %v3603_v0 }
  0xe2   :  { %3458 = vmatpush3.msra.mxu0 %v238_v40  ;;  %3477 = vmatpush3.msra.mxu1 %v246_v41  ;;  %v296_v40 = vld [vmem:[%s4964_s1 + $0x7e8] sm:$0xff]  ;;  %v287_v41 = vld [vmem:[%s4964_s1 + $0x7a0] sm:$0xff] }
  0xe3   :  { %3459 = vmatprep.subr.mxu0 %v3603_v0  ;;  %3478 = vmatprep.subr.mxu1 %v3603_v0 }
  0xe4   :  { %3460 = vmatpush3.msra.mxu0 %v237_v42  ;;  %3479 = vmatpush3.msra.mxu1 %v245_v43  ;;  %v515_v46 = vpop.f32.mrf.mxu0  ;;  %v588_v47 = vpop.f32.mrf.mxu1  ;;  %v295_v42 = vld [vmem:[%s4964_s1 + $0x7e0] sm:$0xff]  ;;  %v286_v43 = vld [vmem:[%s4964_s1 + $0x798] sm:$0xff] }
  0xe5   :  { %3461 = vmatprep.subr.mxu0 %v3603_v0  ;;  %3480 = vmatprep.subr.mxu1 %v3603_v0  ;;  %2639 = vst.msk [vmem:[%s4966_s2 + $0x4] sm:$0x3] %vm2636_vm2, %v515_v46  ;;  %2640 = vst.msk [vmem:[%s4966_s2 + $0x6] sm:$0x3] %vm2636_vm2, %v588_v47  ;;  %v293_v46 = vld [vmem:[%s4964_s1 + $0x7d0] sm:$0xff]  ;;  %v284_v47 = vld [vmem:[%s4964_s1 + $0x788] sm:$0xff] }
  0xe6   :  { %3462 = vmatpush3.msra.mxu0 %v236_v44  ;;  %3481 = vmatpush3.msra.mxu1 %v244_v45  ;;  %v3049_v50 = vpop.f32.mrf.mxu0  ;;  %v3068_v51 = vpop.f32.mrf.mxu1  ;;  %v294_v44 = vld [vmem:[%s4964_s1 + $0x7d8] sm:$0xff]  ;;  %v285_v45 = vld [vmem:[%s4964_s1 + $0x790] sm:$0xff] }
  0xe7   :  { %3463 = vmatprep.subr.mxu0 %v3603_v0  ;;  %3482 = vmatprep.subr.mxu1 %v3603_v0  ;;  %v283_v51 = vld [vmem:[%s4964_s1 + $0x780] sm:$0xff] }
  0xe8   :  { %3464 = vmatpush3.msra.mxu0 %v235_v48  ;;  %3465 = vmatprep.mubr.msk.f32.mxu0 %vm3604_vm1, %v3603_v0  ;;  %v292_v48 = vld [vmem:[%s4964_s1 + $0x7c8] sm:$0xff] }
  0xe9   :  { %3483 = vmatpush3.msra.mxu1 %v243_v49  ;;  %3484 = vmatprep.mubr.msk.f32.mxu1 %vm3604_vm1, %v3603_v0 }
  0xea   :  { %3466 = vmatmul.mubr.msk.f32.vlgmr.msra.gmra.mxu0 %vm299_vm0, %v35_v52  ;;  %3485 = vmatmul.mubr.msk.f32.vlgmr.msra.gmra.mxu1 %vm299_vm0, %v36_v53  ;;  %v291_v52 = vld [vmem:[%s4964_s1 + $0x7c0] sm:$0xff] }
  0xeb   :  { %3487 = vmatprep.subr.mxu0 %v3603_v0  ;;  %3506 = vmatprep.subr.mxu1 %v3603_v0 }
  0xec   :  { %3488 = vmatpush3.msra.mxu0 %v258_v54  ;;  %3507 = vmatpush3.msra.mxu1 %v266_v55  ;;  %v41_v55 = vld [vmem:[%s4965_s0 + $0x3c] sm:$0x3] }
  0xed   :  { %3489 = vmatprep.subr.mxu0 %v3603_v0  ;;  %3508 = vmatprep.subr.mxu1 %v3603_v0 }
  0xee   :  { %3490 = vmatpush3.msra.mxu0 %v257_v56  ;;  %3509 = vmatpush3.msra.mxu1 %v265_v57  ;;  %v42_v56 = vld [vmem:[%s4965_s0 + $0x3e] sm:$0x3] }
  0xef   :  { %3491 = vmatprep.subr.mxu0 %v3603_v0  ;;  %3510 = vmatprep.subr.mxu1 %v3603_v0 }
  0xf0   :  { %3492 = vmatpush3.msra.mxu0 %v256_v58  ;;  %3511 = vmatpush3.msra.mxu1 %v264_v59 }
  0xf1   :  { %3493 = vmatprep.subr.mxu0 %v3603_v0  ;;  %3512 = vmatprep.subr.mxu1 %v3603_v0 }
  0xf2   :  { %3494 = vmatpush3.msra.mxu0 %v255_v60  ;;  %3513 = vmatpush3.msra.mxu1 %v263_v61 }
  0xf3   :  { %3495 = vmatprep.subr.mxu0 %v3603_v0  ;;  %3514 = vmatprep.subr.mxu1 %v3603_v0 }
  0xf4   :  { %3496 = vmatpush3.msra.mxu0 %v254_v62  ;;  %3515 = vmatpush3.msra.mxu1 %v262_v63 }
  0xf5   :  { %3497 = vmatprep.subr.mxu0 %v3603_v0  ;;  %3516 = vmatprep.subr.mxu1 %v3603_v0 }
  0xf6   :  { %3498 = vmatpush3.msra.mxu0 %v253_v1  ;;  %3517 = vmatpush3.msra.mxu1 %v261_v2  ;;  %v661_v5 = vpop.f32.mrf.mxu0  ;;  %v734_v6 = vpop.f32.mrf.mxu1 }
  0xf7   :  { %3499 = vmatprep.subr.mxu0 %v3603_v0  ;;  %3518 = vmatprep.subr.mxu1 %v3603_v0  ;;  %2641 = vst.msk [vmem:[%s4966_s2 + $0x8] sm:$0x3] %vm2636_vm2, %v661_v5  ;;  %2642 = vst.msk [vmem:[%s4966_s2 + $0xa] sm:$0x3] %vm2636_vm2, %v734_v6 }
  0xf8   :  { %3500 = vmatpush3.msra.mxu0 %v252_v3  ;;  %3519 = vmatpush3.msra.mxu1 %v260_v4  ;;  %v3087_v9 = vpop.f32.mrf.mxu0  ;;  %v3106_v10 = vpop.f32.mrf.mxu1 }
  0xf9   :  { %3501 = vmatprep.subr.mxu0 %v3603_v0  ;;  %3520 = vmatprep.subr.mxu1 %v3603_v0 }
  0xfa   :  { %3502 = vmatpush3.msra.mxu0 %v251_v7  ;;  %3503 = vmatprep.mubr.msk.f32.mxu0 %vm3604_vm1, %v3603_v0 }
  0xfb   :  { %3521 = vmatpush3.msra.mxu1 %v259_v8  ;;  %3522 = vmatprep.mubr.msk.f32.mxu1 %vm3604_vm1, %v3603_v0 }
  0xfc   :  { %3504 = vmatmul.mubr.msk.f32.vlgmr.msra.gmra.mxu0 %vm299_vm0, %v37_v11  ;;  %3523 = vmatmul.mubr.msk.f32.vlgmr.msra.gmra.mxu1 %vm299_vm0, %v38_v12 }
  0xfd   :  { %3525 = vmatprep.subr.mxu0 %v3603_v0  ;;  %3544 = vmatprep.subr.mxu1 %v3603_v0 }
  0xfe   :  { %3526 = vmatpush3.msra.mxu0 %v274_v13  ;;  %3545 = vmatpush3.msra.mxu1 %v282_v14 }
  0xff   :  { %3527 = vmatprep.subr.mxu0 %v3603_v0  ;;  %3546 = vmatprep.subr.mxu1 %v3603_v0 }
 0x100   :  { %3528 = vmatpush3.msra.mxu0 %v273_v15  ;;  %3547 = vmatpush3.msra.mxu1 %v281_v16 }
 0x101   :  { %3529 = vmatprep.subr.mxu0 %v3603_v0  ;;  %3548 = vmatprep.subr.mxu1 %v3603_v0 }
 0x102   :  { %3530 = vmatpush3.msra.mxu0 %v272_v17  ;;  %3549 = vmatpush3.msra.mxu1 %v280_v18 }
 0x103   :  { %3531 = vmatprep.subr.mxu0 %v3603_v0  ;;  %3550 = vmatprep.subr.mxu1 %v3603_v0 }
 0x104   :  { %3532 = vmatpush3.msra.mxu0 %v271_v19  ;;  %3551 = vmatpush3.msra.mxu1 %v279_v20 }
 0x105   :  { %3533 = vmatprep.subr.mxu0 %v3603_v0  ;;  %3552 = vmatprep.subr.mxu1 %v3603_v0 }
 0x106   :  { %3534 = vmatpush3.msra.mxu0 %v270_v21  ;;  %3553 = vmatpush3.msra.mxu1 %v278_v22 }
 0x107   :  { %3535 = vmatprep.subr.mxu0 %v3603_v0  ;;  %3554 = vmatprep.subr.mxu1 %v3603_v0 }
 0x108   :  { %3536 = vmatpush3.msra.mxu0 %v269_v23  ;;  %3555 = vmatpush3.msra.mxu1 %v277_v24  ;;  %v807_v27 = vpop.f32.mrf.mxu0  ;;  %v880_v28 = vpop.f32.mrf.mxu1 }
 0x109   :  { %3537 = vmatprep.subr.mxu0 %v3603_v0  ;;  %3556 = vmatprep.subr.mxu1 %v3603_v0  ;;  %2643 = vst.msk [vmem:[%s4966_s2 + $0xc] sm:$0x3] %vm2636_vm2, %v807_v27  ;;  %2644 = vst.msk [vmem:[%s4966_s2 + $0xe] sm:$0x3] %vm2636_vm2, %v880_v28 }
 0x10a   :  { %3538 = vmatpush3.msra.mxu0 %v268_v25  ;;  %3557 = vmatpush3.msra.mxu1 %v276_v26  ;;  %v3125_v31 = vpop.f32.mrf.mxu0  ;;  %v3144_v32 = vpop.f32.mrf.mxu1 }
 0x10b   :  { %3539 = vmatprep.subr.mxu0 %v3603_v0  ;;  %3558 = vmatprep.subr.mxu1 %v3603_v0 }
 0x10c   :  { %3540 = vmatpush3.msra.mxu0 %v267_v29  ;;  %3541 = vmatprep.mubr.msk.f32.mxu0 %vm3604_vm1, %v3603_v0 }
 0x10d   :  { %3559 = vmatpush3.msra.mxu1 %v275_v30  ;;  %3560 = vmatprep.mubr.msk.f32.mxu1 %vm3604_vm1, %v3603_v0 }
 0x10e   :  { %3542 = vmatmul.mubr.msk.f32.vlgmr.msra.gmra.mxu0 %vm299_vm0, %v39_v33  ;;  %3561 = vmatmul.mubr.msk.f32.vlgmr.msra.gmra.mxu1 %vm299_vm0, %v40_v34 }
 0x10f   :  { %3563 = vmatprep.subr.mxu0 %v3603_v0  ;;  %3582 = vmatprep.subr.mxu1 %v3603_v0 }
 0x110   :  { %3564 = vmatpush3.msra.mxu0 %v290_v35  ;;  %3583 = vmatpush3.msra.mxu1 %v298_v36 }
 0x111   :  { %3565 = vmatprep.subr.mxu0 %v3603_v0  ;;  %3584 = vmatprep.subr.mxu1 %v3603_v0 }
 0x112   :  { %3566 = vmatpush3.msra.mxu0 %v289_v37  ;;  %3585 = vmatpush3.msra.mxu1 %v297_v38 }
 0x113   :  { %3567 = vmatprep.subr.mxu0 %v3603_v0  ;;  %3586 = vmatprep.subr.mxu1 %v3603_v0 }
 0x114   :  { %3568 = vmatpush3.msra.mxu0 %v288_v39  ;;  %3587 = vmatpush3.msra.mxu1 %v296_v40 }
 0x115   :  { %3569 = vmatprep.subr.mxu0 %v3603_v0  ;;  %3588 = vmatprep.subr.mxu1 %v3603_v0 }
 0x116   :  { %3570 = vmatpush3.msra.mxu0 %v287_v41  ;;  %3589 = vmatpush3.msra.mxu1 %v295_v42 }
 0x117   :  { %3571 = vmatprep.subr.mxu0 %v3603_v0  ;;  %3590 = vmatprep.subr.mxu1 %v3603_v0 }
 0x118   :  { %3572 = vmatpush3.msra.mxu0 %v286_v43  ;;  %3591 = vmatpush3.msra.mxu1 %v294_v44 }
 0x119   :  { %3573 = vmatprep.subr.mxu0 %v3603_v0  ;;  %3592 = vmatprep.subr.mxu1 %v3603_v0 }
 0x11a   :  { %3574 = vmatpush3.msra.mxu0 %v285_v45  ;;  %3593 = vmatpush3.msra.mxu1 %v293_v46  ;;  %v953_v49 = vpop.f32.mrf.mxu0  ;;  %v1026_v50 = vpop.f32.mrf.mxu1 }
 0x11b   :  { %3575 = vmatprep.subr.mxu0 %v3603_v0  ;;  %3594 = vmatprep.subr.mxu1 %v3603_v0  ;;  %2645 = vst.msk [vmem:[%s4966_s2 + $0x10] sm:$0x3] %vm2636_vm2, %v953_v49  ;;  %2646 = vst.msk [vmem:[%s4966_s2 + $0x12] sm:$0x3] %vm2636_vm2, %v1026_v50 }
 0x11c   :  { %3576 = vmatpush3.msra.mxu0 %v284_v47  ;;  %3595 = vmatpush3.msra.mxu1 %v292_v48  ;;  %v3163_v53 = vpop.f32.mrf.mxu0  ;;  %v3182_v54 = vpop.f32.mrf.mxu1 }
 0x11d   :  { %3577 = vmatprep.subr.mxu0 %v3603_v0  ;;  %3596 = vmatprep.subr.mxu1 %v3603_v0 }
 0x11e   :  { %3578 = vmatpush3.msra.mxu0 %v283_v51  ;;  %3579 = vmatprep.mubr.msk.f32.mxu0 %vm3604_vm1, %v3603_v0 }
 0x11f   :  { %3597 = vmatpush3.msra.mxu1 %v291_v52  ;;  %3598 = vmatprep.mubr.msk.f32.mxu1 %vm3604_vm1, %v3603_v0 }
 0x120   :  { %3580 = vmatmul.mubr.msk.f32.vlgmr.msra.gmra.mxu0 %vm299_vm0, %v41_v55  ;;  %3599 = vmatmul.mubr.msk.f32.vlgmr.msra.gmra.mxu1 %vm299_vm0, %v42_v56 }
 0x12c   :  { %v1099_v57 = vpop.f32.mrf.mxu0  ;;  %v1172_v58 = vpop.f32.mrf.mxu1 }
 0x12d   :  { %2647 = vst.msk [vmem:[%s4966_s2 + $0x14] sm:$0x3] %vm2636_vm2, %v1099_v57  ;;  %2648 = vst.msk [vmem:[%s4966_s2 + $0x16] sm:$0x3] %vm2636_vm2, %v1172_v58 }
 0x12e   :  { %v3201_v59 = vpop.f32.mrf.mxu0  ;;  %v3220_v60 = vpop.f32.mrf.mxu1 }
 0x13e   :  { %v1245_v61 = vpop.f32.mrf.mxu0  ;;  %v1318_v0 = vpop.f32.mrf.mxu1 }
 0x13f   :  { %2649 = vst.msk [vmem:[%s4966_s2 + $0x18] sm:$0x3] %vm2636_vm2, %v1245_v61  ;;  %2650 = vst.msk [vmem:[%s4966_s2 + $0x1a] sm:$0x3] %vm2636_vm2, %v1318_v0 }
 0x140   :  { %v3239_v62 = vpop.f32.mrf.mxu0  ;;  %v3258_v63 = vpop.f32.mrf.mxu1 }
 0x150   :  { %v1391_v1 = vpop.f32.mrf.mxu0  ;;  %v1464_v2 = vpop.f32.mrf.mxu1 }
 0x151   :  { %2651 = vst.msk [vmem:[%s4966_s2 + $0x1c] sm:$0x3] %vm2636_vm2, %v1391_v1  ;;  %2652 = vst.msk [vmem:[%s4966_s2 + $0x1e] sm:$0x3] %vm2636_vm2, %v1464_v2 }
 0x152   :  { %v3277_v3 = vpop.f32.mrf.mxu0  ;;  %v3296_v4 = vpop.f32.mrf.mxu1 }
 0x162   :  { %v1537_v5 = vpop.f32.mrf.mxu0  ;;  %v1610_v6 = vpop.f32.mrf.mxu1 }
 0x163   :  { %2653 = vst.msk [vmem:[%s4966_s2 + $0x20] sm:$0x3] %vm2636_vm2, %v1537_v5  ;;  %2654 = vst.msk [vmem:[%s4966_s2 + $0x22] sm:$0x3] %vm2636_vm2, %v1610_v6 }
 0x164   :  { %v3315_v7 = vpop.f32.mrf.mxu0  ;;  %v3334_v8 = vpop.f32.mrf.mxu1 }
 0x174   :  { %v1683_v9 = vpop.f32.mrf.mxu0  ;;  %v1756_v10 = vpop.f32.mrf.mxu1 }
 0x175   :  { %2655 = vst.msk [vmem:[%s4966_s2 + $0x24] sm:$0x3] %vm2636_vm2, %v1683_v9  ;;  %2656 = vst.msk [vmem:[%s4966_s2 + $0x26] sm:$0x3] %vm2636_vm2, %v1756_v10 }
 0x176   :  { %v3353_v11 = vpop.f32.mrf.mxu0  ;;  %v3372_v12 = vpop.f32.mrf.mxu1 }
 0x186   :  { %v1829_v13 = vpop.f32.mrf.mxu0  ;;  %v1902_v14 = vpop.f32.mrf.mxu1 }
 0x187   :  { %2657 = vst.msk [vmem:[%s4966_s2 + $0x28] sm:$0x3] %vm2636_vm2, %v1829_v13  ;;  %2658 = vst.msk [vmem:[%s4966_s2 + $0x2a] sm:$0x3] %vm2636_vm2, %v1902_v14 }
 0x188   :  { %v3391_v15 = vpop.f32.mrf.mxu0  ;;  %v3410_v16 = vpop.f32.mrf.mxu1 }
 0x198   :  { %v1975_v17 = vpop.f32.mrf.mxu0  ;;  %v2048_v18 = vpop.f32.mrf.mxu1 }
 0x199   :  { %2659 = vst.msk [vmem:[%s4966_s2 + $0x2c] sm:$0x3] %vm2636_vm2, %v1975_v17  ;;  %2660 = vst.msk [vmem:[%s4966_s2 + $0x2e] sm:$0x3] %vm2636_vm2, %v2048_v18 }
 0x19a   :  { %v3429_v19 = vpop.f32.mrf.mxu0  ;;  %v3448_v20 = vpop.f32.mrf.mxu1 }
 0x1aa   :  { %v2121_v21 = vpop.f32.mrf.mxu0  ;;  %v2194_v22 = vpop.f32.mrf.mxu1 }
 0x1ab   :  { %2661 = vst.msk [vmem:[%s4966_s2 + $0x30] sm:$0x3] %vm2636_vm2, %v2121_v21  ;;  %2662 = vst.msk [vmem:[%s4966_s2 + $0x32] sm:$0x3] %vm2636_vm2, %v2194_v22 }
 0x1ac   :  { %v3467_v23 = vpop.f32.mrf.mxu0  ;;  %v3486_v24 = vpop.f32.mrf.mxu1 }
 0x1bc   :  { %v2267_v25 = vpop.f32.mrf.mxu0  ;;  %v2340_v26 = vpop.f32.mrf.mxu1 }
 0x1bd   :  { %2663 = vst.msk [vmem:[%s4966_s2 + $0x34] sm:$0x3] %vm2636_vm2, %v2267_v25  ;;  %2664 = vst.msk [vmem:[%s4966_s2 + $0x36] sm:$0x3] %vm2636_vm2, %v2340_v26 }
 0x1be   :  { %v3505_v27 = vpop.f32.mrf.mxu0  ;;  %v3524_v28 = vpop.f32.mrf.mxu1 }
 0x1ce   :  { %v2413_v29 = vpop.f32.mrf.mxu0  ;;  %v2486_v30 = vpop.f32.mrf.mxu1 }
 0x1cf   :  { %2665 = vst.msk [vmem:[%s4966_s2 + $0x38] sm:$0x3] %vm2636_vm2, %v2413_v29  ;;  %2666 = vst.msk [vmem:[%s4966_s2 + $0x3a] sm:$0x3] %vm2636_vm2, %v2486_v30 }
 0x1d0   :  { %v3543_v31 = vpop.f32.mrf.mxu0  ;;  %v3562_v32 = vpop.f32.mrf.mxu1 }
 0x1e0   :  { %v2559_v33 = vpop.f32.mrf.mxu0  ;;  %v2632_v34 = vpop.f32.mrf.mxu1 }
 0x1e1   :  { %2667 = vst.msk [vmem:[%s4966_s2 + $0x3c] sm:$0x3] %vm2636_vm2, %v2559_v33  ;;  %2668 = vst.msk [vmem:[%s4966_s2 + $0x3e] sm:$0x3] %vm2636_vm2, %v2632_v34 }
 0x1e2   :  { %v3581_v35 = vpop.f32.mrf.mxu0  ;;  %v3600_v36 = vpop.f32.mrf.mxu1 }

// kernel: reverse.4
= control target key start
LH: loop header
LB: loop body
LE: loop exit
PB: predicated region body
PF: predicated region fallthrough
CT: control target
= control target key end

     0   :  { %s800_s0 = inlined_call_operand.vmem [shape: f32[32,2,24,11], index: 0, kind: input, shape index: {}]   ;;  %s801_s1 = inlined_call_operand.vmem [shape: f32[32,2,24,11], index: 1, kind: output, shape index: {}]  }
   0x1   :  { %v264_v0 = vld [vmem:[%s800_s0 + $0xf0] sm:$0xff]  ;;  %v265_v1 = vld [vmem:[%s800_s0 + $0x1f8] sm:$0xff]  ;;  %v269_v3 = vld [vmem:[%s800_s0 + $0x1e0] sm:$0xff] }
   0x2   :  { %v267_v2 = vld [vmem:[%s800_s0 + $0xd8] sm:$0xff]  ;;  %4 = vst [vmem:[%s801_s1] sm:$0xff] %v264_v0  ;;  %266 = vst [vmem:[%s801_s1 + $0x108] sm:$0xff] %v265_v1  ;;  %v271_v4 = vld [vmem:[%s800_s0 + $0xc0] sm:$0xff] }
   0x3   :  { %268 = vst [vmem:[%s801_s1 + $0x18] sm:$0xff] %v267_v2  ;;  %v273_v5 = vld [vmem:[%s800_s0 + $0x1c8] sm:$0xff]  ;;  %270 = vst [vmem:[%s801_s1 + $0x120] sm:$0xff] %v269_v3  ;;  %v277_v7 = vld [vmem:[%s800_s0 + $0x1b0] sm:$0xff] }
   0x4   :  { %272 = vst [vmem:[%s801_s1 + $0x30] sm:$0xff] %v271_v4  ;;  %274 = vst [vmem:[%s801_s1 + $0x138] sm:$0xff] %v273_v5  ;;  %v275_v6 = vld [vmem:[%s800_s0 + $0xa8] sm:$0xff]  ;;  %v279_v8 = vld [vmem:[%s800_s0 + $0x90] sm:$0xff] }
   0x5   :  { %276 = vst [vmem:[%s801_s1 + $0x48] sm:$0xff] %v275_v6  ;;  %278 = vst [vmem:[%s801_s1 + $0x150] sm:$0xff] %v277_v7  ;;  %v281_v9 = vld [vmem:[%s800_s0 + $0x198] sm:$0xff]  ;;  %v285_v11 = vld [vmem:[%s800_s0 + $0x180] sm:$0xff] }
   0x6   :  { %280 = vst [vmem:[%s801_s1 + $0x60] sm:$0xff] %v279_v8  ;;  %v283_v10 = vld [vmem:[%s800_s0 + $0x78] sm:$0xff]  ;;  %282 = vst [vmem:[%s801_s1 + $0x168] sm:$0xff] %v281_v9  ;;  %v287_v12 = vld [vmem:[%s800_s0 + $0x60] sm:$0xff] }
   0x7   :  { %284 = vst [vmem:[%s801_s1 + $0x78] sm:$0xff] %v283_v10  ;;  %286 = vst [vmem:[%s801_s1 + $0x180] sm:$0xff] %v285_v11  ;;  %v289_v13 = vld [vmem:[%s800_s0 + $0x168] sm:$0xff]  ;;  %v293_v15 = vld [vmem:[%s800_s0 + $0x150] sm:$0xff] }
   0x8   :  { %v291_v14 = vld [vmem:[%s800_s0 + $0x48] sm:$0xff]  ;;  %288 = vst [vmem:[%s801_s1 + $0x90] sm:$0xff] %v287_v12  ;;  %290 = vst [vmem:[%s801_s1 + $0x198] sm:$0xff] %v289_v13  ;;  %v295_v16 = vld [vmem:[%s800_s0 + $0x30] sm:$0xff] }
   0x9   :  { %292 = vst [vmem:[%s801_s1 + $0xa8] sm:$0xff] %v291_v14  ;;  %v297_v17 = vld [vmem:[%s800_s0 + $0x138] sm:$0xff]  ;;  %294 = vst [vmem:[%s801_s1 + $0x1b0] sm:$0xff] %v293_v15  ;;  %v301_v19 = vld [vmem:[%s800_s0 + $0x120] sm:$0xff] }
   0xa   :  { %296 = vst [vmem:[%s801_s1 + $0xc0] sm:$0xff] %v295_v16  ;;  %298 = vst [vmem:[%s801_s1 + $0x1c8] sm:$0xff] %v297_v17  ;;  %v299_v18 = vld [vmem:[%s800_s0 + $0x18] sm:$0xff]  ;;  %v81_v20 = vld [vmem:[%s800_s0] sm:$0xff] }
   0xb   :  { %300 = vst [vmem:[%s801_s1 + $0xd8] sm:$0xff] %v299_v18  ;;  %302 = vst [vmem:[%s801_s1 + $0x1e0] sm:$0xff] %v301_v19  ;;  %v304_v21 = vld [vmem:[%s800_s0 + $0x108] sm:$0xff]  ;;  %v306_v22 = vld [vmem:[%s800_s0 + $0xf8] sm:$0xff] }
   0xc   :  { %303 = vst [vmem:[%s801_s1 + $0xf0] sm:$0xff] %v81_v20  ;;  %v308_v23 = vld [vmem:[%s800_s0 + $0x200] sm:$0xff]  ;;  %305 = vst [vmem:[%s801_s1 + $0x1f8] sm:$0xff] %v304_v21  ;;  %v312_v25 = vld [vmem:[%s800_s0 + $0x1e8] sm:$0xff] }
   0xd   :  { %307 = vst [vmem:[%s801_s1 + $0x8] sm:$0xff] %v306_v22  ;;  %309 = vst [vmem:[%s801_s1 + $0x110] sm:$0xff] %v308_v23  ;;  %v310_v24 = vld [vmem:[%s800_s0 + $0xe0] sm:$0xff]  ;;  %v314_v26 = vld [vmem:[%s800_s0 + $0xc8] sm:$0xff] }
   0xe   :  { %311 = vst [vmem:[%s801_s1 + $0x20] sm:$0xff] %v310_v24  ;;  %313 = vst [vmem:[%s801_s1 + $0x128] sm:$0xff] %v312_v25  ;;  %v316_v27 = vld [vmem:[%s800_s0 + $0x1d0] sm:$0xff]  ;;  %v320_v29 = vld [vmem:[%s800_s0 + $0x1b8] sm:$0xff] }
   0xf   :  { %315 = vst [vmem:[%s801_s1 + $0x38] sm:$0xff] %v314_v26  ;;  %v318_v28 = vld [vmem:[%s800_s0 + $0xb0] sm:$0xff]  ;;  %317 = vst [vmem:[%s801_s1 + $0x140] sm:$0xff] %v316_v27  ;;  %v322_v30 = vld [vmem:[%s800_s0 + $0x98] sm:$0xff] }
  0x10   :  { %319 = vst [vmem:[%s801_s1 + $0x50] sm:$0xff] %v318_v28  ;;  %321 = vst [vmem:[%s801_s1 + $0x158] sm:$0xff] %v320_v29  ;;  %v324_v31 = vld [vmem:[%s800_s0 + $0x1a0] sm:$0xff]  ;;  %v328_v33 = vld [vmem:[%s800_s0 + $0x188] sm:$0xff] }
  0x11   :  { %v326_v32 = vld [vmem:[%s800_s0 + $0x80] sm:$0xff]  ;;  %323 = vst [vmem:[%s801_s1 + $0x68] sm:$0xff] %v322_v30  ;;  %325 = vst [vmem:[%s801_s1 + $0x170] sm:$0xff] %v324_v31  ;;  %v330_v34 = vld [vmem:[%s800_s0 + $0x68] sm:$0xff] }
  0x12   :  { %327 = vst [vmem:[%s801_s1 + $0x80] sm:$0xff] %v326_v32  ;;  %v332_v35 = vld [vmem:[%s800_s0 + $0x170] sm:$0xff]  ;;  %329 = vst [vmem:[%s801_s1 + $0x188] sm:$0xff] %v328_v33  ;;  %v336_v37 = vld [vmem:[%s800_s0 + $0x158] sm:$0xff] }
  0x13   :  { %331 = vst [vmem:[%s801_s1 + $0x98] sm:$0xff] %v330_v34  ;;  %333 = vst [vmem:[%s801_s1 + $0x1a0] sm:$0xff] %v332_v35  ;;  %v334_v36 = vld [vmem:[%s800_s0 + $0x50] sm:$0xff]  ;;  %v338_v38 = vld [vmem:[%s800_s0 + $0x38] sm:$0xff] }
  0x14   :  { %335 = vst [vmem:[%s801_s1 + $0xb0] sm:$0xff] %v334_v36  ;;  %337 = vst [vmem:[%s801_s1 + $0x1b8] sm:$0xff] %v336_v37  ;;  %v340_v39 = vld [vmem:[%s800_s0 + $0x140] sm:$0xff]  ;;  %v344_v41 = vld [vmem:[%s800_s0 + $0x128] sm:$0xff] }
  0x15   :  { %339 = vst [vmem:[%s801_s1 + $0xc8] sm:$0xff] %v338_v38  ;;  %v342_v40 = vld [vmem:[%s800_s0 + $0x20] sm:$0xff]  ;;  %341 = vst [vmem:[%s801_s1 + $0x1d0] sm:$0xff] %v340_v39  ;;  %v346_v42 = vld [vmem:[%s800_s0 + $0x8] sm:$0xff] }
  0x16   :  { %343 = vst [vmem:[%s801_s1 + $0xe0] sm:$0xff] %v342_v40  ;;  %345 = vst [vmem:[%s801_s1 + $0x1e8] sm:$0xff] %v344_v41  ;;  %v348_v43 = vld [vmem:[%s800_s0 + $0x110] sm:$0xff]  ;;  %v350_v44 = vld [vmem:[%s800_s0 + $0x100] sm:$0xff] }
  0x17   :  { %347 = vst [vmem:[%s801_s1 + $0xf8] sm:$0xff] %v346_v42  ;;  %349 = vst [vmem:[%s801_s1 + $0x200] sm:$0xff] %v348_v43  ;;  %v352_v45 = vld [vmem:[%s800_s0 + $0x208] sm:$0xff]  ;;  %v356_v47 = vld [vmem:[%s800_s0 + $0x1f0] sm:$0xff] }
  0x18   :  { %351 = vst [vmem:[%s801_s1 + $0x10] sm:$0xff] %v350_v44  ;;  %v354_v46 = vld [vmem:[%s800_s0 + $0xe8] sm:$0xff]  ;;  %353 = vst [vmem:[%s801_s1 + $0x118] sm:$0xff] %v352_v45  ;;  %v358_v48 = vld [vmem:[%s800_s0 + $0xd0] sm:$0xff] }
  0x19   :  { %355 = vst [vmem:[%s801_s1 + $0x28] sm:$0xff] %v354_v46  ;;  %357 = vst [vmem:[%s801_s1 + $0x130] sm:$0xff] %v356_v47  ;;  %v360_v49 = vld [vmem:[%s800_s0 + $0x1d8] sm:$0xff]  ;;  %v364_v51 = vld [vmem:[%s800_s0 + $0x1c0] sm:$0xff] }
  0x1a   :  { %v362_v50 = vld [vmem:[%s800_s0 + $0xb8] sm:$0xff]  ;;  %359 = vst [vmem:[%s801_s1 + $0x40] sm:$0xff] %v358_v48  ;;  %361 = vst [vmem:[%s801_s1 + $0x148] sm:$0xff] %v360_v49  ;;  %v366_v52 = vld [vmem:[%s800_s0 + $0xa0] sm:$0xff] }
  0x1b   :  { %363 = vst [vmem:[%s801_s1 + $0x58] sm:$0xff] %v362_v50  ;;  %v368_v53 = vld [vmem:[%s800_s0 + $0x1a8] sm:$0xff]  ;;  %365 = vst [vmem:[%s801_s1 + $0x160] sm:$0xff] %v364_v51  ;;  %v372_v55 = vld [vmem:[%s800_s0 + $0x190] sm:$0xff] }
  0x1c   :  { %367 = vst [vmem:[%s801_s1 + $0x70] sm:$0xff] %v366_v52  ;;  %369 = vst [vmem:[%s801_s1 + $0x178] sm:$0xff] %v368_v53  ;;  %v370_v54 = vld [vmem:[%s800_s0 + $0x88] sm:$0xff]  ;;  %v374_v56 = vld [vmem:[%s800_s0 + $0x70] sm:$0xff] }
  0x1d   :  { %371 = vst [vmem:[%s801_s1 + $0x88] sm:$0xff] %v370_v54  ;;  %373 = vst [vmem:[%s801_s1 + $0x190] sm:$0xff] %v372_v55  ;;  %v376_v57 = vld [vmem:[%s800_s0 + $0x178] sm:$0xff]  ;;  %v380_v59 = vld [vmem:[%s800_s0 + $0x160] sm:$0xff] }
  0x1e   :  { %375 = vst [vmem:[%s801_s1 + $0xa0] sm:$0xff] %v374_v56  ;;  %v378_v58 = vld [vmem:[%s800_s0 + $0x58] sm:$0xff]  ;;  %377 = vst [vmem:[%s801_s1 + $0x1a8] sm:$0xff] %v376_v57  ;;  %v382_v60 = vld [vmem:[%s800_s0 + $0x40] sm:$0xff] }
  0x1f   :  { %379 = vst [vmem:[%s801_s1 + $0xb8] sm:$0xff] %v378_v58  ;;  %381 = vst [vmem:[%s801_s1 + $0x1c0] sm:$0xff] %v380_v59  ;;  %v384_v61 = vld [vmem:[%s800_s0 + $0x148] sm:$0xff]  ;;  %v388_v63 = vld [vmem:[%s800_s0 + $0x130] sm:$0xff] }
  0x20   :  { %v386_v62 = vld [vmem:[%s800_s0 + $0x28] sm:$0xff]  ;;  %383 = vst [vmem:[%s801_s1 + $0xd0] sm:$0xff] %v382_v60  ;;  %385 = vst [vmem:[%s801_s1 + $0x1d8] sm:$0xff] %v384_v61  ;;  %v390_v0 = vld [vmem:[%s800_s0 + $0x10] sm:$0xff] }
  0x21   :  { %387 = vst [vmem:[%s801_s1 + $0xe8] sm:$0xff] %v386_v62  ;;  %v392_v1 = vld [vmem:[%s800_s0 + $0x118] sm:$0xff]  ;;  %389 = vst [vmem:[%s801_s1 + $0x1f0] sm:$0xff] %v388_v63 }
  0x22   :  { %391 = vst [vmem:[%s801_s1 + $0x100] sm:$0xff] %v390_v0  ;;  %393 = vst [vmem:[%s801_s1 + $0x208] sm:$0xff] %v392_v1 }

// kernel: fno_forward.8
= control target key start
LH: loop header
LB: loop body
LE: loop exit
PB: predicated region body
PF: predicated region fallthrough
CT: control target
= control target key end

     0   :  { %v953_v3 = vmov 0.0   ;;  %vm81_vm0 = vcmask 261120   ;;  %v954_v43 = vmov 0   ;;  %s1561_s0 = inlined_call_operand.vmem [shape: f32[32,1152], index: 0, kind: input, shape index: {}]   ;;  %s1562_s1 = inlined_call_operand.vmem [shape: f32[32,32], index: 1, kind: input, shape index: {}]   ;;  %s1563_s2 = inlined_call_operand.vmem [shape: f32[32,1], index: 2, kind: input, shape index: {}]   ;;  %s1564_s3 = inlined_call_operand.vmem [shape: f32[32,1152], index: 3, kind: input, shape index: {}]   ;;  %s1565_s4 = inlined_call_operand.vmem [shape: f32[32,1152], index: 4, kind: output, shape index: {}]  }
   0x1   :  { %v45_v0 = vld [vmem:[%s1561_s0 + $0xe0] sm:$0xff]  ;;  %v47_v1 = vld [vmem:[%s1561_s0 + $0xf0] sm:$0xff]  ;;  %v44_v2 = vld [vmem:[%s1561_s0 + $0xd8] sm:$0xff]  ;;  %158 = vmatprep.mubr.f32.mxu0 %v953_v3  ;;  %247 = vmatprep.mubr.f32.mxu1 %v953_v3 }
   0x2   :  { %118 = vmatprep.subr.mxu0 %v45_v0  ;;  %207 = vmatprep.subr.mxu1 %v47_v1  ;;  %v46_v4 = vld [vmem:[%s1561_s0 + $0xe8] sm:$0xff]  ;;  %v36_v5 = vld [vmem:[%s1561_s0 + $0x98] sm:$0xff]  ;;  %v35_v7 = vld [vmem:[%s1561_s0 + $0x90] sm:$0xff] }
   0x3   :  { %v38_v6 = vld [vmem:[%s1561_s0 + $0xa8] sm:$0xff]  ;;  %119 = vmatpush1.msra.mxu0 %v44_v2  ;;  %208 = vmatpush1.msra.mxu1 %v46_v4  ;;  %v37_v8 = vld [vmem:[%s1561_s0 + $0xa0] sm:$0xff]  ;;  %v27_v9 = vld [vmem:[%s1561_s0 + $0x50] sm:$0xff] }
   0x4   :  { %120 = vmatprep.subr.mxu0 %v36_v5  ;;  %209 = vmatprep.subr.mxu1 %v38_v6  ;;  %v29_v10 = vld [vmem:[%s1561_s0 + $0x60] sm:$0xff]  ;;  %v26_v11 = vld [vmem:[%s1561_s0 + $0x48] sm:$0xff]  ;;  %v28_v12 = vld [vmem:[%s1561_s0 + $0x58] sm:$0xff] }
   0x5   :  { %121 = vmatpush1.msra.mxu0 %v35_v7  ;;  %210 = vmatpush1.msra.mxu1 %v37_v8  ;;  %v18_v13 = vld [vmem:[%s1561_s0 + $0x8] sm:$0xff]  ;;  %v20_v14 = vld [vmem:[%s1561_s0 + $0x18] sm:$0xff]  ;;  %v17_v15 = vld [vmem:[%s1561_s0] sm:$0xff] }
   0x6   :  { %122 = vmatprep.subr.mxu0 %v27_v9  ;;  %211 = vmatprep.subr.mxu1 %v29_v10  ;;  %v19_v16 = vld [vmem:[%s1561_s0 + $0x10] sm:$0xff]  ;;  %v1033_v17 = vld [vmem:[%s1562_s1] sm:$0xff]  ;;  %v48_v20 = vld [vmem:[%s1561_s0 + $0xf8] sm:$0xff] }
   0x7   :  { %123 = vmatpush1.msra.mxu0 %v26_v11  ;;  %212 = vmatpush1.msra.mxu1 %v28_v12  ;;  %v49_v18 = vld [vmem:[%s1561_s0 + $0x100] sm:$0xff]  ;;  %v51_v19 = vld [vmem:[%s1561_s0 + $0x110] sm:$0xff]  ;;  %v50_v21 = vld [vmem:[%s1561_s0 + $0x108] sm:$0xff] }
   0x8   :  { %124 = vmatprep.subr.mxu0 %v18_v13  ;;  %213 = vmatprep.subr.mxu1 %v20_v14  ;;  %v1054_v22 = vld [vmem:[%s1562_s1 + $0x8] sm:$0xff]  ;;  %v40_v23 = vld [vmem:[%s1561_s0 + $0xb8] sm:$0xff]  ;;  %v39_v25 = vld [vmem:[%s1561_s0 + $0xb0] sm:$0xff] }
   0x9   :  { %125 = vmatpush1.msra.mxu0 %v17_v15  ;;  %214 = vmatpush1.msra.mxu1 %v19_v16  ;;  %v42_v24 = vld [vmem:[%s1561_s0 + $0xc8] sm:$0xff]  ;;  %v41_v26 = vld [vmem:[%s1561_s0 + $0xc0] sm:$0xff]  ;;  %v1077_v27 = vld [vmem:[%s1562_s1 + $0x10] sm:$0xff] }
   0xa   :  { %827 = vmatmul.mubr.msk.f32.vlgmr.msra.gmra.mxu0 %vm81_vm0, %v1033_v17  ;;  %831 = vmatmul.mubr.msk.f32.vlgmr.msra.gmra.mxu1 %vm81_vm0, %v1033_v17  ;;  %v31_v28 = vld [vmem:[%s1561_s0 + $0x70] sm:$0xff]  ;;  %v33_v29 = vld [vmem:[%s1561_s0 + $0x80] sm:$0xff]  ;;  %v30_v30 = vld [vmem:[%s1561_s0 + $0x68] sm:$0xff] }
   0xb   :  { %296 = vmatprep.subr.mxu0 %v49_v18  ;;  %385 = vmatprep.subr.mxu1 %v51_v19  ;;  %v32_v31 = vld [vmem:[%s1561_s0 + $0x78] sm:$0xff]  ;;  %v22_v33 = vld [vmem:[%s1561_s0 + $0x28] sm:$0xff]  ;;  %v21_v35 = vld [vmem:[%s1561_s0 + $0x20] sm:$0xff] }
   0xc   :  { %297 = vmatpush1.msra.mxu0 %v48_v20  ;;  %386 = vmatpush1.msra.mxu1 %v50_v21  ;;  %v56_v32 = vld [vmem:[%s1562_s1 + $0x18] sm:$0xff]  ;;  %v23_v36 = vld [vmem:[%s1561_s0 + $0x30] sm:$0xff]  ;;  %v34_v39 = vld [vmem:[%s1561_s0 + $0x88] sm:$0xff] }
   0xd   :  { %164 = vmatprep.mubr.f32.mxu0 %v953_v3  ;;  %253 = vmatprep.mubr.f32.mxu1 %v953_v3  ;;  %v24_v34 = vld [vmem:[%s1561_s0 + $0x38] sm:$0xff]  ;;  %v43_v38 = vld [vmem:[%s1561_s0 + $0xd0] sm:$0xff]  ;;  %v25_v40 = vld [vmem:[%s1561_s0 + $0x40] sm:$0xff] }
   0xe   :  { %828 = vmatmul.mubr.msk.f32.gmra.mxu0 %vm81_vm0, %v1054_v22  ;;  %832 = vmatmul.mubr.msk.f32.gmra.mxu1 %vm81_vm0, %v1054_v22  ;;  %v52_v37 = vld [vmem:[%s1561_s0 + $0x118] sm:$0xff]  ;;  %v57_v41 = vld [vmem:[%s1563_s2] sm:$0xff]  ;;  %v59_v42 = vld [vmem:[%s1563_s2 + $0x10] sm:$0xff] }
   0xf   :  { %298 = vmatprep.subr.mxu0 %v40_v23  ;;  %387 = vmatprep.subr.mxu1 %v42_v24  ;;  %v58_v44 = vld [vmem:[%s1563_s2 + $0x8] sm:$0xff]  ;;  %v60_v45 = vld [vmem:[%s1563_s2 + $0x18] sm:$0xff]  ;;  %v535_v48 = vld [vmem:[%s1564_s3] sm:$0xff] }
  0x10   :  { %299 = vmatpush1.msra.mxu0 %v39_v25  ;;  %388 = vmatpush1.msra.mxu1 %v41_v26  ;;  %v537_v50 = vld [vmem:[%s1564_s3 + $0x10] sm:$0xff]  ;;  %v536_v58 = vld [vmem:[%s1564_s3 + $0x8] sm:$0xff]  ;;  %v538_v60 = vld [vmem:[%s1564_s3 + $0x18] sm:$0xff] }
  0x11   :  { %170 = vmatprep.mubr.f32.mxu0 %v953_v3  ;;  %259 = vmatprep.mubr.f32.mxu1 %v953_v3  ;;  %v544_v6 = vld [vmem:[%s1564_s3 + $0x48] sm:$0xff]  ;;  %v546_v8 = vld [vmem:[%s1564_s3 + $0x58] sm:$0xff]  ;;  %v545_v10 = vld [vmem:[%s1564_s3 + $0x50] sm:$0xff] }
  0x12   :  { %829 = vmatmul.mubr.msk.f32.gmra.mxu0 %vm81_vm0, %v1077_v27  ;;  %833 = vmatmul.mubr.msk.f32.gmra.mxu1 %vm81_vm0, %v1077_v27  ;;  %v547_v14 = vld [vmem:[%s1564_s3 + $0x60] sm:$0xff]  ;;  %v553_v24 = vld [vmem:[%s1564_s3 + $0x90] sm:$0xff] }
  0x13   :  { %300 = vmatprep.subr.mxu0 %v31_v28  ;;  %389 = vmatprep.subr.mxu1 %v33_v29  ;;  %v555_v26 = vld [vmem:[%s1564_s3 + $0xa0] sm:$0xff] }
  0x14   :  { %301 = vmatpush1.msra.mxu0 %v30_v30  ;;  %390 = vmatpush1.msra.mxu1 %v32_v31 }
  0x15   :  { %176 = vmatprep.mubr.f32.mxu0 %v953_v3  ;;  %265 = vmatprep.mubr.f32.mxu1 %v953_v3 }
  0x16   :  { %830 = vmatmul.mubr.msk.f32.gmra.mxu0 %vm81_vm0, %v56_v32  ;;  %834 = vmatmul.mubr.msk.f32.gmra.mxu1 %vm81_vm0, %v56_v32 }
  0x17   :  { %302 = vmatprep.subr.mxu0 %v22_v33  ;;  %391 = vmatprep.subr.mxu1 %v24_v34 }
  0x18   :  { %303 = vmatpush1.msra.mxu0 %v21_v35  ;;  %392 = vmatpush1.msra.mxu1 %v23_v36 }
  0x19   :  { %336 = vmatprep.mubr.f32.mxu0 %v953_v3  ;;  %425 = vmatprep.mubr.f32.mxu1 %v953_v3 }
  0x1a   :  { %835 = vmatmul.mubr.msk.f32.vlgmr.msra.gmra.mxu0 %vm81_vm0, %v1033_v17  ;;  %839 = vmatmul.mubr.msk.f32.vlgmr.msra.gmra.mxu1 %vm81_vm0, %v1033_v17 }
  0x1b   :  { %855 = vmatprep.subr.mxu0 %v52_v37  ;;  %869 = vmatprep.subr.mxu1 %v52_v37 }
  0x1c   :  { %856 = vmatpush3.msra.mxu0 %v52_v37  ;;  %873 = vmatpush3.msra.mxu1 %v52_v37 }
  0x1d   :  { %342 = vmatprep.mubr.f32.mxu0 %v953_v3  ;;  %431 = vmatprep.mubr.f32.mxu1 %v953_v3 }
  0x1e   :  { %836 = vmatmul.mubr.msk.f32.gmra.mxu0 %vm81_vm0, %v1054_v22  ;;  %840 = vmatmul.mubr.msk.f32.gmra.mxu1 %vm81_vm0, %v1054_v22 }
  0x1f   :  { %857 = vmatprep.subr.mxu0 %v43_v38  ;;  %870 = vmatprep.subr.mxu1 %v43_v38 }
  0x20   :  { %858 = vmatpush3.msra.mxu0 %v43_v38  ;;  %874 = vmatpush3.msra.mxu1 %v43_v38 }
  0x21   :  { %348 = vmatprep.mubr.f32.mxu0 %v953_v3  ;;  %437 = vmatprep.mubr.f32.mxu1 %v953_v3 }
  0x22   :  { %837 = vmatmul.mubr.msk.f32.gmra.mxu0 %vm81_vm0, %v1077_v27  ;;  %841 = vmatmul.mubr.msk.f32.gmra.mxu1 %vm81_vm0, %v1077_v27 }
  0x23   :  { %859 = vmatprep.subr.mxu0 %v34_v39  ;;  %871 = vmatprep.subr.mxu1 %v34_v39 }
  0x24   :  { %860 = vmatpush3.msra.mxu0 %v34_v39  ;;  %875 = vmatpush3.msra.mxu1 %v34_v39  ;;  %v554_v39 = vld [vmem:[%s1564_s3 + $0x98] sm:$0xff] }
  0x25   :  { %354 = vmatprep.mubr.f32.mxu0 %v953_v3  ;;  %443 = vmatprep.mubr.f32.mxu1 %v953_v3 }
  0x26   :  { %838 = vmatmul.mubr.msk.f32.gmra.mxu0 %vm81_vm0, %v56_v32  ;;  %842 = vmatmul.mubr.msk.f32.gmra.mxu1 %vm81_vm0, %v56_v32 }
  0x27   :  { %861 = vmatprep.subr.mxu0 %v25_v40  ;;  %872 = vmatprep.subr.mxu1 %v25_v40 }
  0x28   :  { %862 = vmatpush3.msra.mxu0 %v25_v40  ;;  %876 = vmatpush3.msra.mxu1 %v25_v40  ;;  %v556_v40 = vld [vmem:[%s1564_s3 + $0xa8] sm:$0xff] }
  0x29   :  { %863 = vmatprep.mubr.msk.f32.mxu0 %vm81_vm0, %v1033_v17  ;;  %866 = vmatprep.mubr.msk.f32.mxu1 %vm81_vm0, %v1077_v27 }
  0x2a   :  { %864 = vmatmul.mubr.msk.f32.vlgmr.msra.gmra.mxu0 %vm81_vm0, %v1054_v22  ;;  %867 = vmatmul.mubr.msk.f32.vlgmr.msra.gmra.mxu1 %vm81_vm0, %v56_v32 }
  0x2b   :  { %879 = vset.pattern.permute.xlu0 %v954_v43  ;;  %880 = vset.pattern.permute.xlu1 %v954_v43 }
  0x2c   :  { %63 = vperm.xlu0 %879, %v57_v41   ;;  %73 = vperm.xlu1 %880, %v59_v42  }
  0x30   :  { %68 = vperm.xlu0 %879, %v58_v44   ;;  %78 = vperm.xlu1 %880, %v60_v45   ;;  %v562_v44 = vld [vmem:[%s1564_s3 + $0xd8] sm:$0xff] }
  0xa7   :  { %v1169_v46 = vpop.permute.xlu0 %63  ;;  %v1189_v2 = vpop.permute.xlu1 %73 }
  0xab   :  { %v1187_v61 = vpop.permute.xlu0 %68  ;;  %v1222_v30 = vpop.permute.xlu1 %78 }
  0xca   :  { %v160_v47 = vpop.f32.mrf.mxu0  ;;  %v249_v49 = vpop.f32.mrf.mxu1 }
  0xcb   :  { %v161_v51 = vadd.f32 %v160_v47, %v1169_v46  ;;  %v250_v52 = vadd.f32 %v249_v49, %v1169_v46 }
  0xcc   :  { %v162_v53 = vpop.f32.mrf.mxu0  ;;  %v251_v54 = vpop.f32.mrf.mxu1 }
  0xcd   :  { %v571_v55 = vadd.f32 %v535_v48, %v161_v51  ;;  %v573_v56 = vadd.f32 %v537_v50, %v250_v52  ;;  %v163_v57 = vadd.f32 %v162_v53, %v1169_v46  ;;  %v252_v59 = vadd.f32 %v251_v54, %v1169_v46  ;;  %v564_v54 = vld [vmem:[%s1564_s3 + $0xe8] sm:$0xff] }
  0xce   :  { %v166_v62 = vpop.f32.mrf.mxu0  ;;  %v255_v63 = vpop.f32.mrf.mxu1 }
  0xcf   :  { %v643_v0 = vmul.f32 0.70710677, %v571_v55  ;;  %v645_v1 = vmul.f32 0.70710677, %v573_v56  ;;  %v572_v3 = vadd.f32 %v536_v58, %v163_v57  ;;  %v1191_v4 = vadd.f32 %v538_v60, %v252_v59  ;;  %v563_v59 = vld [vmem:[%s1564_s3 + $0xe0] sm:$0xff] }
  0xd0   :  { %v167_v5 = vadd.f32 %v166_v62, %v1187_v61  ;;  %v256_v7 = vadd.f32 %v255_v63, %v1187_v61  ;;  %v168_v9 = vpop.f32.mrf.mxu0  ;;  %v257_v11 = vpop.f32.mrf.mxu1  ;;  %v1224_v31 = vmul.f32 0.5, %v571_v55  ;;  %v609_v48 = vmul.f32 0.5, %v573_v56 }
  0xd1   :  { %881 = verf.f32 %v643_v0  ;;  %v169_v12 = vadd.f32 %v168_v9, %v1187_v61  ;;  %v258_v13 = vadd.f32 %v257_v11, %v1187_v61  ;;  %v644_v15 = vmul.f32 0.70710677, %v572_v3 }
  0xd2   :  { %883 = verf.f32 %v645_v1  ;;  %v172_v16 = vpop.f32.mrf.mxu0  ;;  %v261_v17 = vpop.f32.mrf.mxu1  ;;  %v646_v18 = vmul.f32 0.70710677, %v1191_v4  ;;  %v580_v19 = vadd.f32 %v544_v6, %v167_v5  ;;  %v582_v20 = vadd.f32 %v546_v8, %v256_v7 }
  0xd3   :  { %v1210_v21 = vadd.f32 %v545_v10, %v169_v12  ;;  %885 = verf.f32 %v644_v15  ;;  %v1212_v22 = vadd.f32 %v547_v14, %v258_v13  ;;  %v173_v23 = vadd.f32 %v172_v16, %v1189_v2  ;;  %v565_v10 = vld [vmem:[%s1564_s3 + $0xf0] sm:$0xff]  ;;  %v539_v12 = vld [vmem:[%s1564_s3 + $0x20] sm:$0xff] }
  0xd4   :  { %v262_v25 = vadd.f32 %v261_v17, %v1189_v2  ;;  %v174_v27 = vpop.f32.mrf.mxu0  ;;  %v263_v28 = vpop.f32.mrf.mxu1  ;;  %887 = verf.f32 %v646_v18  ;;  %v652_v29 = vmul.f32 0.70710677, %v580_v19  ;;  %v654_v32 = vmul.f32 0.70710677, %v582_v20 }
  0xd5   :  { %v653_v33 = vmul.f32 0.70710677, %v1210_v21  ;;  %v655_v36 = vmul.f32 0.70710677, %v1212_v22  ;;  %v1228_v37 = vadd.f32 %v553_v24, %v173_v23  ;;  %v175_v41 = vadd.f32 %v174_v27, %v1189_v2 }
  0xd6   :  { %v178_v34 = vpop.f32.mrf.mxu0  ;;  %v267_v35 = vpop.f32.mrf.mxu1  ;;  %889 = verf.f32 %v652_v29  ;;  %v1230_v38 = vadd.f32 %v555_v26, %v262_v25  ;;  %v264_v42 = vadd.f32 %v263_v28, %v1189_v2  ;;  %v608_v49 = vmul.f32 0.5, %v572_v3 }
  0xd7   :  { %891 = verf.f32 %v654_v32  ;;  %v179_v43 = vadd.f32 %v178_v34, %v1222_v30  ;;  %v661_v50 = vmul.f32 0.70710677, %v1228_v37  ;;  %v1246_v52 = vadd.f32 %v554_v39, %v175_v41 }
  0xd8   :  { %v180_v45 = vpop.f32.mrf.mxu0  ;;  %v269_v47 = vpop.f32.mrf.mxu1  ;;  %893 = verf.f32 %v653_v33  ;;  %v663_v51 = vmul.f32 0.70710677, %v1230_v38  ;;  %v1248_v53 = vadd.f32 %v556_v40, %v264_v42  ;;  %v268_v56 = vadd.f32 %v267_v35, %v1222_v30 }
  0xd9   :  { %895 = verf.f32 %v655_v36  ;;  %v1253_v57 = vadd.f32 %v562_v44, %v179_v43  ;;  %v181_v58 = vadd.f32 %v180_v45, %v1222_v30  ;;  %v610_v62 = vmul.f32 0.5, %v1191_v4 }
  0xda   :  { %v338_v55 = vpop.f32.mrf.mxu0  ;;  %897 = verf.f32 %v661_v50  ;;  %v427_v60 = vpop.f32.mrf.mxu1  ;;  %v1261_v63 = vmul.f32 0.5, %v580_v19  ;;  %v662_v0 = vmul.f32 0.70710677, %v1246_v52  ;;  %v1264_v3 = vmul.f32 0.5, %v582_v20 }
  0xdb   :  { %899 = verf.f32 %v663_v51  ;;  %v664_v5 = vmul.f32 0.70710677, %v1248_v53  ;;  %v670_v6 = vmul.f32 0.70710677, %v1253_v57  ;;  %v1268_v7 = vadd.f32 %v564_v54, %v268_v56 }
  0xdc   :  { %v340_v1 = vpop.f32.mrf.mxu0  ;;  %901 = verf.f32 %v662_v0  ;;  %v1270_v9 = vadd.f32 %v563_v59, %v181_v58  ;;  %v270_v4 = vadd.f32 %v269_v47, %v1222_v30  ;;  %v339_v11 = vadd.f32 %v338_v55, %v1169_v46  ;;  %v429_v17 = vpop.f32.mrf.mxu1 }
  0xdd   :  { %v1281_v15 = vmul.f32 0.5, %v1210_v21  ;;  %903 = verf.f32 %v664_v5  ;;  %v672_v16 = vmul.f32 0.70710677, %v1268_v7  ;;  %v619_v19 = vmul.f32 0.5, %v1212_v22  ;;  %v541_v21 = vld [vmem:[%s1564_s3 + $0x30] sm:$0xff] }
  0xde   :  { %v882_v8 = vpop.eup %881  ;;  %905 = verf.f32 %v670_v6  ;;  %v671_v20 = vmul.f32 0.70710677, %v1270_v9  ;;  %v344_v23 = vpop.f32.mrf.mxu0  ;;  %v1287_v26 = vadd.f32 %v565_v10, %v270_v4  ;;  %v1289_v27 = vadd.f32 %v539_v12, %v339_v11 }
  0xdf   :  { %v884_v13 = vpop.eup %883  ;;  %v715_v14 = vadd.f32 1.0, %v882_v8  ;;  %907 = verf.f32 %v672_v16  ;;  %v428_v22 = vadd.f32 %v427_v60, %v1169_v46  ;;  %v625_v33 = vmul.f32 0.5, %v1228_v37  ;;  %v433_v36 = vpop.f32.mrf.mxu1  ;;  %v540_v37 = vld [vmem:[%s1564_s3 + $0x28] sm:$0xff] }
  0xe0   :  { %v717_v18 = vadd.f32 1.0, %v884_v13  ;;  %v886_v24 = vpop.eup %885  ;;  %909 = verf.f32 %v671_v20  ;;  %v627_v34 = vmul.f32 0.5, %v1230_v38  ;;  %v673_v35 = vmul.f32 0.70710677, %v1287_v26  ;;  %v542_v38 = vld [vmem:[%s1564_s3 + $0x38] sm:$0xff]  ;;  %v346_v44 = vpop.f32.mrf.mxu0  ;;  %v548_v8 = vld [vmem:[%s1564_s3 + $0x68] sm:$0xff] }
  0xe1   :  { %v751_v25 = vmul.f32 %v715_v14, %v1224_v31  ;;  %v888_v28 = vpop.eup %887  ;;  %v716_v32 = vadd.f32 1.0, %v886_v24  ;;  %v647_v41 = vmul.f32 0.70710677, %v1289_v27  ;;  %v1305_v42 = vadd.f32 %v541_v21, %v428_v22  ;;  %v435_v0 = vpop.f32.mrf.mxu1 }
  0xe2   :  { %v753_v29 = vmul.f32 %v717_v18, %v609_v48  ;;  %v718_v31 = vadd.f32 1.0, %v888_v28  ;;  %v341_v43 = vadd.f32 %v340_v1, %v1169_v46  ;;  %911 = verf.f32 %v673_v35  ;;  %v350_v4 = vpop.f32.mrf.mxu0  ;;  %v550_v18 = vld [vmem:[%s1564_s3 + $0x78] sm:$0xff] }
  0xe3   :  { %787 = vst [vmem:[%s1565_s4] sm:$0xff] %v751_v25  ;;  %v890_v39 = vpop.eup %889  ;;  %v752_v40 = vmul.f32 %v716_v32, %v608_v49  ;;  %v430_v49 = vadd.f32 %v429_v17, %v1169_v46  ;;  %v626_v54 = vmul.f32 0.5, %v1246_v52  ;;  %913 = verf.f32 %v647_v41 }
  0xe4   :  { %789 = vst [vmem:[%s1565_s4 + $0x10] sm:$0xff] %v753_v29  ;;  %v892_v45 = vpop.eup %891  ;;  %v754_v47 = vmul.f32 %v718_v31, %v610_v62  ;;  %v724_v48 = vadd.f32 1.0, %v890_v39  ;;  %v649_v55 = vmul.f32 0.70710677, %v1305_v42  ;;  %v1324_v60 = vadd.f32 %v540_v37, %v341_v43  ;;  %v352_v29 = vpop.f32.mrf.mxu0  ;;  %v551_v43 = vld [vmem:[%s1564_s3 + $0x80] sm:$0xff] }
  0xe5   :  { %v894_v50 = vpop.eup %893  ;;  %788 = vst [vmem:[%s1565_s4 + $0x8] sm:$0xff] %v752_v40  ;;  %v726_v51 = vadd.f32 1.0, %v892_v45  ;;  %v1326_v62 = vadd.f32 %v542_v38, %v430_v49  ;;  %v345_v6 = vadd.f32 %v344_v23, %v1187_v61  ;;  %v628_v12 = vmul.f32 0.5, %v1248_v53  ;;  %v439_v23 = vpop.f32.mrf.mxu1 }
  0xe6   :  { %v896_v56 = vpop.eup %895  ;;  %790 = vst [vmem:[%s1565_s4 + $0x18] sm:$0xff] %v754_v47  ;;  %v760_v58 = vmul.f32 %v724_v48, %v1261_v63  ;;  %v725_v59 = vadd.f32 1.0, %v894_v50  ;;  %915 = verf.f32 %v649_v55  ;;  %v634_v16 = vmul.f32 0.5, %v1253_v57  ;;  %v549_v57 = vld [vmem:[%s1564_s3 + $0x70] sm:$0xff] }
  0xe7   :  { %v898_v1 = vpop.eup %897  ;;  %v762_v5 = vmul.f32 %v726_v51, %v1264_v3  ;;  %v727_v52 = vadd.f32 1.0, %v896_v56  ;;  %v648_v3 = vmul.f32 0.70710677, %v1324_v60  ;;  %v650_v17 = vmul.f32 0.70710677, %v1326_v62  ;;  %v441_v45 = vpop.f32.mrf.mxu1 }
  0xe8   :  { %v900_v10 = vpop.eup %899  ;;  %796 = vst [vmem:[%s1565_s4 + $0x48] sm:$0xff] %v760_v58  ;;  %v761_v63 = vmul.f32 %v725_v59, %v1281_v15  ;;  %v733_v11 = vadd.f32 1.0, %v898_v1  ;;  %v1350_v20 = vadd.f32 %v548_v8, %v345_v6  ;;  %v347_v28 = vadd.f32 %v346_v44, %v1187_v61  ;;  %v356_v51 = vpop.f32.mrf.mxu0  ;;  %v557_v58 = vld [vmem:[%s1564_s3 + $0xb0] sm:$0xff]  ;;  %v558_v59 = vld [vmem:[%s1564_s3 + $0xb8] sm:$0xff] }
  0xe9   :  { %798 = vst [vmem:[%s1565_s4 + $0x58] sm:$0xff] %v762_v5  ;;  %v763_v13 = vmul.f32 %v727_v52, %v619_v19  ;;  %v735_v14 = vadd.f32 1.0, %v900_v10  ;;  %v902_v15 = vpop.eup %901  ;;  %917 = verf.f32 %v648_v3  ;;  %v434_v19 = vadd.f32 %v433_v36, %v1187_v61 }
  0xea   :  { %797 = vst [vmem:[%s1565_s4 + $0x50] sm:$0xff] %v761_v63  ;;  %v769_v53 = vmul.f32 %v733_v11, %v625_v33  ;;  %v904_v24 = vpop.eup %903  ;;  %v734_v21 = vadd.f32 1.0, %v902_v15  ;;  %919 = verf.f32 %v650_v17  ;;  %v636_v31 = vmul.f32 0.5, %v1268_v7  ;;  %v445_v63 = vpop.f32.mrf.mxu1 }
  0xeb   :  { %799 = vst [vmem:[%s1565_s4 + $0x60] sm:$0xff] %v763_v13  ;;  %v771_v25 = vmul.f32 %v735_v14, %v627_v34  ;;  %v906_v32 = vpop.eup %905  ;;  %v736_v22 = vadd.f32 1.0, %v904_v24  ;;  %v656_v33 = vmul.f32 0.70710677, %v1350_v20  ;;  %v1365_v35 = vadd.f32 %v550_v18, %v434_v19  ;;  %v358_v14 = vpop.f32.mrf.mxu0  ;;  %v560_v18 = vld [vmem:[%s1564_s3 + $0xc8] sm:$0xff] }
  0xec   :  { %805 = vst [vmem:[%s1565_s4 + $0x90] sm:$0xff] %v769_v53  ;;  %v908_v36 = vpop.eup %907  ;;  %v770_v34 = vmul.f32 %v734_v21, %v626_v54  ;;  %v742_v39 = vadd.f32 1.0, %v906_v32  ;;  %v1370_v40 = vadd.f32 %v549_v57, %v347_v28  ;;  %v436_v41 = vadd.f32 %v435_v0, %v1187_v61  ;;  %v566_v53 = vld [vmem:[%s1564_s3 + $0xf8] sm:$0xff] }
  0xed   :  { %807 = vst [vmem:[%s1565_s4 + $0xa0] sm:$0xff] %v771_v25  ;;  %v910_v7 = vpop.eup %909  ;;  %v772_v37 = vmul.f32 %v736_v22, %v628_v12  ;;  %v744_v38 = vadd.f32 1.0, %v908_v36  ;;  %v635_v44 = vmul.f32 0.5, %v1270_v9  ;;  %921 = verf.f32 %v656_v33  ;;  %v865_v33 = vpop.f32.mrf.mxu0 }
  0xee   :  { %806 = vst [vmem:[%s1565_s4 + $0x98] sm:$0xff] %v770_v34  ;;  %v778_v47 = vmul.f32 %v742_v39, %v634_v16  ;;  %v743_v48 = vadd.f32 1.0, %v910_v7  ;;  %v637_v49 = vmul.f32 0.5, %v1287_v26  ;;  %v658_v50 = vmul.f32 0.70710677, %v1365_v35  ;;  %v559_v26 = vld [vmem:[%s1564_s3 + $0xc0] sm:$0xff] }
  0xef   :  { %808 = vst [vmem:[%s1565_s4 + $0xa8] sm:$0xff] %v772_v37  ;;  %v780_v54 = vmul.f32 %v744_v38, %v636_v31  ;;  %v657_v9 = vmul.f32 0.70710677, %v1370_v40  ;;  %v1386_v55 = vadd.f32 %v551_v43, %v436_v41  ;;  %v351_v56 = vadd.f32 %v350_v4, %v1189_v2  ;;  %v912_v0 = vpop.eup %911  ;;  %v567_v43 = vld [vmem:[%s1564_s3 + $0x100] sm:$0xff] }
  0xf0   :  { %814 = vst [vmem:[%s1565_s4 + $0xd8] sm:$0xff] %v778_v47  ;;  %v779_v1 = vmul.f32 %v743_v48, %v635_v44  ;;  %923 = verf.f32 %v658_v50  ;;  %v440_v5 = vadd.f32 %v439_v23, %v1189_v2  ;;  %v353_v52 = vadd.f32 %v352_v29, %v1189_v2  ;;  %v914_v6 = vpop.eup %913  ;;  %v447_v29 = vpop.f32.mrf.mxu1  ;;  %v569_v48 = vld [vmem:[%s1564_s3 + $0x110] sm:$0xff] }
  0xf1   :  { %816 = vst [vmem:[%s1565_s4 + $0xe8] sm:$0xff] %v780_v54  ;;  %v745_v8 = vadd.f32 1.0, %v912_v0  ;;  %v611_v4 = vmul.f32 0.5, %v1289_v27  ;;  %925 = verf.f32 %v657_v9  ;;  %v659_v10 = vmul.f32 0.70710677, %v1386_v55  ;;  %v516_v9 = vpop.f32.mrf.mxu0 }
  0xf2   :  { %815 = vst [vmem:[%s1565_s4 + $0xe0] sm:$0xff] %v779_v1  ;;  %v719_v11 = vadd.f32 1.0, %v914_v6  ;;  %v1411_v12 = vadd.f32 %v557_v58, %v351_v56  ;;  %v1413_v3 = vadd.f32 %v559_v26, %v440_v5  ;;  %v1415_v13 = vadd.f32 %v558_v59, %v353_v52  ;;  %v570_v52 = vld [vmem:[%s1564_s3 + $0x118] sm:$0xff]  ;;  %v543_v6 = vld [vmem:[%s1564_s3 + $0x40] sm:$0xff] }
  0xf3   :  { %v916_v16 = vpop.eup %915  ;;  %v781_v17 = vmul.f32 %v745_v8, %v637_v49  ;;  %927 = verf.f32 %v659_v10  ;;  %v442_v27 = vadd.f32 %v441_v45, %v1189_v2  ;;  %v357_v15 = vadd.f32 %v356_v51, %v1222_v30  ;;  %v868_v49 = vpop.f32.mrf.mxu1 }
  0xf4   :  { %v755_v19 = vmul.f32 %v719_v11, %v611_v4  ;;  %v613_v57 = vmul.f32 0.5, %v1305_v42  ;;  %v721_v23 = vadd.f32 1.0, %v916_v16  ;;  %v665_v24 = vmul.f32 0.70710677, %v1411_v12 }
  0xf5   :  { %817 = vst [vmem:[%s1565_s4 + $0xf0] sm:$0xff] %v781_v17  ;;  %v612_v25 = vmul.f32 0.5, %v1324_v60  ;;  %v667_v21 = vmul.f32 0.70710677, %v1413_v3  ;;  %v666_v28 = vmul.f32 0.70710677, %v1415_v13  ;;  %v1436_v22 = vadd.f32 %v560_v18, %v442_v27 }
  0xf6   :  { %v918_v32 = vpop.eup %917  ;;  %791 = vst [vmem:[%s1565_s4 + $0x20] sm:$0xff] %v755_v19  ;;  %v757_v42 = vmul.f32 %v721_v23, %v613_v57  ;;  %929 = verf.f32 %v665_v24  ;;  %v1438_v31 = vadd.f32 %v566_v53, %v357_v15  ;;  %v568_v60 = vld [vmem:[%s1564_s3 + $0x108] sm:$0xff]  ;;  %v446_v39 = vadd.f32 %v445_v63, %v1222_v30 }
  0xf7   :  { %v920_v36 = vpop.eup %919  ;;  %v720_v34 = vadd.f32 1.0, %v918_v32  ;;  %931 = verf.f32 %v667_v21  ;;  %v359_v41 = vadd.f32 %v358_v14, %v1222_v30  ;;  %v614_v7 = vmul.f32 0.5, %v1326_v62 }
  0xf8   :  { %793 = vst [vmem:[%s1565_s4 + $0x30] sm:$0xff] %v757_v42  ;;  %v722_v37 = vadd.f32 1.0, %v920_v36  ;;  %933 = verf.f32 %v666_v28  ;;  %v668_v38 = vmul.f32 0.70710677, %v1436_v22  ;;  %v674_v45 = vmul.f32 0.70710677, %v1438_v31 }
  0xf9   :  { %v756_v44 = vmul.f32 %v720_v34, %v612_v25  ;;  %v1454_v47 = vadd.f32 %v568_v60, %v446_v39  ;;  %v1459_v54 = vadd.f32 %v567_v43, %v359_v41  ;;  %v448_v62 = vadd.f32 %v447_v29, %v1222_v30 }
  0xfa   :  { %v922_v50 = vpop.eup %921  ;;  %v758_v51 = vmul.f32 %v722_v37, %v614_v7  ;;  %935 = verf.f32 %v668_v38  ;;  %v620_v56 = vmul.f32 0.5, %v1350_v20  ;;  %v622_v59 = vmul.f32 0.5, %v1365_v35  ;;  %v552_v20 = vld [vmem:[%s1564_s3 + $0x88] sm:$0xff] }
  0xfb   :  { %792 = vst [vmem:[%s1565_s4 + $0x28] sm:$0xff] %v756_v44  ;;  %v728_v58 = vadd.f32 1.0, %v922_v50  ;;  %937 = verf.f32 %v674_v45  ;;  %v676_v26 = vmul.f32 0.70710677, %v1454_v47  ;;  %v675_v0 = vmul.f32 0.70710677, %v1459_v54 }
  0xfc   :  { %794 = vst [vmem:[%s1565_s4 + $0x38] sm:$0xff] %v758_v51  ;;  %v1472_v1 = vadd.f32 %v569_v48, %v448_v62  ;;  %v522_v5 = vadd.f32 %v865_v33, %v1187_v61  ;;  %v532_v4 = vadd.f32 %v868_v49, %v1222_v30  ;;  %v517_v10 = vadd.f32 %v516_v9, %v1169_v46  ;;  %v526_v61 = vpop.f32.mrf.mxu1 }
  0xfd   :  { %v924_v8 = vpop.eup %923  ;;  %v764_v35 = vmul.f32 %v728_v58, %v620_v56  ;;  %939 = verf.f32 %v676_v26  ;;  %v621_v14 = vmul.f32 0.5, %v1370_v40  ;;  %v527_v53 = vadd.f32 %v526_v61, %v1189_v2  ;;  %v561_v40 = vld [vmem:[%s1564_s3 + $0xd0] sm:$0xff] }
  0xfe   :  { %v926_v63 = vpop.eup %925  ;;  %v730_v11 = vadd.f32 1.0, %v924_v8  ;;  %941 = verf.f32 %v675_v0  ;;  %v677_v16 = vmul.f32 0.70710677, %v1472_v1  ;;  %v1491_v27 = vadd.f32 %v552_v20, %v522_v5 }
  0xff   :  { %800 = vst [vmem:[%s1565_s4 + $0x68] sm:$0xff] %v764_v35  ;;  %v729_v17 = vadd.f32 1.0, %v926_v63  ;;  %v1493_v18 = vadd.f32 %v570_v52, %v532_v4  ;;  %v1495_v30 = vadd.f32 %v543_v6, %v517_v10  ;;  %v623_v57 = vmul.f32 0.5, %v1386_v55 }
 0x100   :  { %v928_v46 = vpop.eup %927  ;;  %v766_v15 = vmul.f32 %v730_v11, %v622_v59  ;;  %943 = verf.f32 %v677_v16  ;;  %v660_v24 = vmul.f32 0.70710677, %v1491_v27  ;;  %v597_v29 = vadd.f32 %v561_v40, %v527_v53 }
 0x101   :  { %v765_v19 = vmul.f32 %v729_v17, %v621_v14  ;;  %v731_v23 = vadd.f32 1.0, %v928_v46  ;;  %v678_v25 = vmul.f32 0.70710677, %v1493_v18  ;;  %v651_v21 = vmul.f32 0.70710677, %v1495_v30 }
 0x102   :  { %802 = vst [vmem:[%s1565_s4 + $0x78] sm:$0xff] %v766_v15  ;;  %945 = verf.f32 %v660_v24  ;;  %v629_v32 = vmul.f32 0.5, %v1411_v12  ;;  %v631_v33 = vmul.f32 0.5, %v1413_v3  ;;  %v669_v34 = vmul.f32 0.70710677, %v597_v29 }
 0x103   :  { %v930_v28 = vpop.eup %929  ;;  %801 = vst [vmem:[%s1565_s4 + $0x70] sm:$0xff] %v765_v19  ;;  %v767_v2 = vmul.f32 %v731_v23, %v623_v57  ;;  %947 = verf.f32 %v678_v25  ;;  %v630_v41 = vmul.f32 0.5, %v1415_v13  ;;  %v632_v44 = vmul.f32 0.5, %v1436_v22 }
 0x104   :  { %v932_v55 = vpop.eup %931  ;;  %v737_v42 = vadd.f32 1.0, %v930_v28  ;;  %949 = verf.f32 %v651_v21  ;;  %v638_v3 = vmul.f32 0.5, %v1438_v31  ;;  %v640_v62 = vmul.f32 0.5, %v1454_v47 }
 0x105   :  { %v934_v60 = vpop.eup %933  ;;  %803 = vst [vmem:[%s1565_s4 + $0x80] sm:$0xff] %v767_v2  ;;  %v739_v36 = vadd.f32 1.0, %v932_v55  ;;  %951 = verf.f32 %v669_v34  ;;  %v639_v22 = vmul.f32 0.5, %v1459_v54  ;;  %v641_v59 = vmul.f32 0.5, %v1472_v1 }
 0x106   :  { %v773_v39 = vmul.f32 %v737_v42, %v629_v32  ;;  %v738_v43 = vadd.f32 1.0, %v934_v60  ;;  %v624_v20 = vmul.f32 0.5, %v1491_v27  ;;  %v642_v1 = vmul.f32 0.5, %v1493_v18 }
 0x107   :  { %v936_v7 = vpop.eup %935  ;;  %v775_v37 = vmul.f32 %v739_v36, %v631_v33  ;;  %v615_v4 = vmul.f32 0.5, %v1495_v30  ;;  %v633_v14 = vmul.f32 0.5, %v597_v29 }
 0x108   :  { %v938_v12 = vpop.eup %937  ;;  %809 = vst [vmem:[%s1565_s4 + $0xb0] sm:$0xff] %v773_v39  ;;  %v774_v38 = vmul.f32 %v738_v43, %v630_v41  ;;  %v740_v45 = vadd.f32 1.0, %v936_v7 }
 0x109   :  { %811 = vst [vmem:[%s1565_s4 + $0xc0] sm:$0xff] %v775_v37  ;;  %v746_v13 = vadd.f32 1.0, %v938_v12 }
 0x10a   :  { %v940_v48 = vpop.eup %939  ;;  %810 = vst [vmem:[%s1565_s4 + $0xb8] sm:$0xff] %v774_v38  ;;  %v776_v49 = vmul.f32 %v740_v45, %v632_v44 }
 0x10b   :  { %v942_v50 = vpop.eup %941  ;;  %v782_v51 = vmul.f32 %v746_v13, %v638_v3  ;;  %v748_v9 = vadd.f32 1.0, %v940_v48 }
 0x10c   :  { %812 = vst [vmem:[%s1565_s4 + $0xc8] sm:$0xff] %v776_v49  ;;  %v747_v56 = vadd.f32 1.0, %v942_v50 }
 0x10d   :  { %v944_v31 = vpop.eup %943  ;;  %818 = vst [vmem:[%s1565_s4 + $0xf8] sm:$0xff] %v782_v51  ;;  %v784_v58 = vmul.f32 %v748_v9, %v640_v62 }
 0x10e   :  { %v783_v26 = vmul.f32 %v747_v56, %v639_v22  ;;  %v749_v0 = vadd.f32 1.0, %v944_v31 }
 0x10f   :  { %820 = vst [vmem:[%s1565_s4 + $0x108] sm:$0xff] %v784_v58  ;;  %v946_v47 = vpop.eup %945 }
 0x110   :  { %819 = vst [vmem:[%s1565_s4 + $0x100] sm:$0xff] %v783_v26  ;;  %v785_v54 = vmul.f32 %v749_v0, %v641_v59  ;;  %v948_v5 = vpop.eup %947  ;;  %v732_v52 = vadd.f32 1.0, %v946_v47 }
 0x111   :  { %v950_v6 = vpop.eup %949  ;;  %v750_v8 = vadd.f32 1.0, %v948_v5 }
 0x112   :  { %821 = vst [vmem:[%s1565_s4 + $0x110] sm:$0xff] %v785_v54  ;;  %v768_v35 = vmul.f32 %v732_v52, %v624_v20  ;;  %v723_v10 = vadd.f32 1.0, %v950_v6  ;;  %v952_v61 = vpop.eup %951 }
 0x113   :  { %v786_v63 = vmul.f32 %v750_v8, %v642_v1  ;;  %v741_v16 = vadd.f32 1.0, %v952_v61 }
 0x114   :  { %804 = vst [vmem:[%s1565_s4 + $0x88] sm:$0xff] %v768_v35  ;;  %v759_v11 = vmul.f32 %v723_v10, %v615_v4 }
 0x115   :  { %822 = vst [vmem:[%s1565_s4 + $0x118] sm:$0xff] %v786_v63  ;;  %v777_v17 = vmul.f32 %v741_v16, %v633_v14 }
 0x116   :  { %795 = vst [vmem:[%s1565_s4 + $0x40] sm:$0xff] %v759_v11 }
 0x117   :  { %813 = vst [vmem:[%s1565_s4 + $0xd0] sm:$0xff] %v777_v17 }

// kernel: fno_forward.10
= control target key start
LH: loop header
LB: loop body
LE: loop exit
PB: predicated region body
PF: predicated region fallthrough
CT: control target
= control target key end

     0   :  { %v701_v3 = vmov 0.0   ;;  %vm81_vm0 = vcmask 261120   ;;  %v702_v43 = vmov 0   ;;  %s1177_s0 = inlined_call_operand.vmem [shape: f32[32,1152], index: 0, kind: input, shape index: {}]   ;;  %s1178_s1 = inlined_call_operand.vmem [shape: f32[32,32], index: 1, kind: input, shape index: {}]   ;;  %s1179_s2 = inlined_call_operand.vmem [shape: f32[32,1], index: 2, kind: input, shape index: {}]   ;;  %s1180_s3 = inlined_call_operand.vmem [shape: f32[32,1152], index: 3, kind: input, shape index: {}]   ;;  %s1181_s4 = inlined_call_operand.vmem [shape: f32[32,1152], index: 4, kind: output, shape index: {}]  }
   0x1   :  { %v45_v0 = vld [vmem:[%s1177_s0 + $0xe0] sm:$0xff]  ;;  %v47_v1 = vld [vmem:[%s1177_s0 + $0xf0] sm:$0xff]  ;;  %v44_v2 = vld [vmem:[%s1177_s0 + $0xd8] sm:$0xff]  ;;  %158 = vmatprep.mubr.f32.mxu0 %v701_v3  ;;  %247 = vmatprep.mubr.f32.mxu1 %v701_v3 }
   0x2   :  { %118 = vmatprep.subr.mxu0 %v45_v0  ;;  %207 = vmatprep.subr.mxu1 %v47_v1  ;;  %v46_v4 = vld [vmem:[%s1177_s0 + $0xe8] sm:$0xff]  ;;  %v36_v5 = vld [vmem:[%s1177_s0 + $0x98] sm:$0xff]  ;;  %v35_v7 = vld [vmem:[%s1177_s0 + $0x90] sm:$0xff] }
   0x3   :  { %v38_v6 = vld [vmem:[%s1177_s0 + $0xa8] sm:$0xff]  ;;  %119 = vmatpush1.msra.mxu0 %v44_v2  ;;  %208 = vmatpush1.msra.mxu1 %v46_v4  ;;  %v37_v8 = vld [vmem:[%s1177_s0 + $0xa0] sm:$0xff]  ;;  %v27_v9 = vld [vmem:[%s1177_s0 + $0x50] sm:$0xff] }
   0x4   :  { %120 = vmatprep.subr.mxu0 %v36_v5  ;;  %209 = vmatprep.subr.mxu1 %v38_v6  ;;  %v29_v10 = vld [vmem:[%s1177_s0 + $0x60] sm:$0xff]  ;;  %v26_v11 = vld [vmem:[%s1177_s0 + $0x48] sm:$0xff]  ;;  %v28_v12 = vld [vmem:[%s1177_s0 + $0x58] sm:$0xff] }
   0x5   :  { %121 = vmatpush1.msra.mxu0 %v35_v7  ;;  %210 = vmatpush1.msra.mxu1 %v37_v8  ;;  %v18_v13 = vld [vmem:[%s1177_s0 + $0x8] sm:$0xff]  ;;  %v20_v14 = vld [vmem:[%s1177_s0 + $0x18] sm:$0xff]  ;;  %v17_v15 = vld [vmem:[%s1177_s0] sm:$0xff] }
   0x6   :  { %122 = vmatprep.subr.mxu0 %v27_v9  ;;  %211 = vmatprep.subr.mxu1 %v29_v10  ;;  %v19_v16 = vld [vmem:[%s1177_s0 + $0x10] sm:$0xff]  ;;  %v781_v17 = vld [vmem:[%s1178_s1] sm:$0xff]  ;;  %v48_v20 = vld [vmem:[%s1177_s0 + $0xf8] sm:$0xff] }
   0x7   :  { %123 = vmatpush1.msra.mxu0 %v26_v11  ;;  %212 = vmatpush1.msra.mxu1 %v28_v12  ;;  %v49_v18 = vld [vmem:[%s1177_s0 + $0x100] sm:$0xff]  ;;  %v51_v19 = vld [vmem:[%s1177_s0 + $0x110] sm:$0xff]  ;;  %v50_v21 = vld [vmem:[%s1177_s0 + $0x108] sm:$0xff] }
   0x8   :  { %124 = vmatprep.subr.mxu0 %v18_v13  ;;  %213 = vmatprep.subr.mxu1 %v20_v14  ;;  %v802_v22 = vld [vmem:[%s1178_s1 + $0x8] sm:$0xff]  ;;  %v40_v23 = vld [vmem:[%s1177_s0 + $0xb8] sm:$0xff]  ;;  %v39_v25 = vld [vmem:[%s1177_s0 + $0xb0] sm:$0xff] }
   0x9   :  { %125 = vmatpush1.msra.mxu0 %v17_v15  ;;  %214 = vmatpush1.msra.mxu1 %v19_v16  ;;  %v42_v24 = vld [vmem:[%s1177_s0 + $0xc8] sm:$0xff]  ;;  %v41_v26 = vld [vmem:[%s1177_s0 + $0xc0] sm:$0xff]  ;;  %v825_v27 = vld [vmem:[%s1178_s1 + $0x10] sm:$0xff] }
   0xa   :  { %647 = vmatmul.mubr.msk.f32.vlgmr.msra.gmra.mxu0 %vm81_vm0, %v781_v17  ;;  %651 = vmatmul.mubr.msk.f32.vlgmr.msra.gmra.mxu1 %vm81_vm0, %v781_v17  ;;  %v31_v28 = vld [vmem:[%s1177_s0 + $0x70] sm:$0xff]  ;;  %v33_v29 = vld [vmem:[%s1177_s0 + $0x80] sm:$0xff]  ;;  %v30_v30 = vld [vmem:[%s1177_s0 + $0x68] sm:$0xff] }
   0xb   :  { %296 = vmatprep.subr.mxu0 %v49_v18  ;;  %385 = vmatprep.subr.mxu1 %v51_v19  ;;  %v32_v31 = vld [vmem:[%s1177_s0 + $0x78] sm:$0xff]  ;;  %v22_v33 = vld [vmem:[%s1177_s0 + $0x28] sm:$0xff]  ;;  %v21_v35 = vld [vmem:[%s1177_s0 + $0x20] sm:$0xff] }
   0xc   :  { %297 = vmatpush1.msra.mxu0 %v48_v20  ;;  %386 = vmatpush1.msra.mxu1 %v50_v21  ;;  %v56_v32 = vld [vmem:[%s1178_s1 + $0x18] sm:$0xff]  ;;  %v23_v36 = vld [vmem:[%s1177_s0 + $0x30] sm:$0xff]  ;;  %v34_v39 = vld [vmem:[%s1177_s0 + $0x88] sm:$0xff] }
   0xd   :  { %164 = vmatprep.mubr.f32.mxu0 %v701_v3  ;;  %253 = vmatprep.mubr.f32.mxu1 %v701_v3  ;;  %v24_v34 = vld [vmem:[%s1177_s0 + $0x38] sm:$0xff]  ;;  %v43_v38 = vld [vmem:[%s1177_s0 + $0xd0] sm:$0xff]  ;;  %v25_v40 = vld [vmem:[%s1177_s0 + $0x40] sm:$0xff] }
   0xe   :  { %648 = vmatmul.mubr.msk.f32.gmra.mxu0 %vm81_vm0, %v802_v22  ;;  %652 = vmatmul.mubr.msk.f32.gmra.mxu1 %vm81_vm0, %v802_v22  ;;  %v52_v37 = vld [vmem:[%s1177_s0 + $0x118] sm:$0xff]  ;;  %v57_v41 = vld [vmem:[%s1179_s2] sm:$0xff]  ;;  %v59_v42 = vld [vmem:[%s1179_s2 + $0x10] sm:$0xff] }
   0xf   :  { %298 = vmatprep.subr.mxu0 %v40_v23  ;;  %387 = vmatprep.subr.mxu1 %v42_v24  ;;  %v58_v44 = vld [vmem:[%s1179_s2 + $0x8] sm:$0xff]  ;;  %v60_v45 = vld [vmem:[%s1179_s2 + $0x18] sm:$0xff]  ;;  %v535_v49 = vld [vmem:[%s1180_s3] sm:$0xff] }
  0x10   :  { %299 = vmatpush1.msra.mxu0 %v39_v25  ;;  %388 = vmatpush1.msra.mxu1 %v41_v26  ;;  %v537_v50 = vld [vmem:[%s1180_s3 + $0x10] sm:$0xff]  ;;  %v536_v55 = vld [vmem:[%s1180_s3 + $0x8] sm:$0xff]  ;;  %v538_v57 = vld [vmem:[%s1180_s3 + $0x18] sm:$0xff] }
  0x11   :  { %170 = vmatprep.mubr.f32.mxu0 %v701_v3  ;;  %259 = vmatprep.mubr.f32.mxu1 %v701_v3  ;;  %v544_v1 = vld [vmem:[%s1180_s3 + $0x48] sm:$0xff]  ;;  %v546_v2 = vld [vmem:[%s1180_s3 + $0x58] sm:$0xff]  ;;  %v545_v8 = vld [vmem:[%s1180_s3 + $0x50] sm:$0xff] }
  0x12   :  { %649 = vmatmul.mubr.msk.f32.gmra.mxu0 %vm81_vm0, %v825_v27  ;;  %653 = vmatmul.mubr.msk.f32.gmra.mxu1 %vm81_vm0, %v825_v27  ;;  %v547_v10 = vld [vmem:[%s1180_s3 + $0x60] sm:$0xff]  ;;  %v554_v25 = vld [vmem:[%s1180_s3 + $0x98] sm:$0xff] }
  0x13   :  { %300 = vmatprep.subr.mxu0 %v31_v28  ;;  %389 = vmatprep.subr.mxu1 %v33_v29  ;;  %v555_v18 = vld [vmem:[%s1180_s3 + $0xa0] sm:$0xff] }
  0x14   :  { %301 = vmatpush1.msra.mxu0 %v30_v30  ;;  %390 = vmatpush1.msra.mxu1 %v32_v31 }
  0x15   :  { %176 = vmatprep.mubr.f32.mxu0 %v701_v3  ;;  %265 = vmatprep.mubr.f32.mxu1 %v701_v3 }
  0x16   :  { %650 = vmatmul.mubr.msk.f32.gmra.mxu0 %vm81_vm0, %v56_v32  ;;  %654 = vmatmul.mubr.msk.f32.gmra.mxu1 %vm81_vm0, %v56_v32 }
  0x17   :  { %302 = vmatprep.subr.mxu0 %v22_v33  ;;  %391 = vmatprep.subr.mxu1 %v24_v34  ;;  %v562_v34 = vld [vmem:[%s1180_s3 + $0xd8] sm:$0xff] }
  0x18   :  { %303 = vmatpush1.msra.mxu0 %v21_v35  ;;  %392 = vmatpush1.msra.mxu1 %v23_v36  ;;  %v564_v35 = vld [vmem:[%s1180_s3 + $0xe8] sm:$0xff] }
  0x19   :  { %336 = vmatprep.mubr.f32.mxu0 %v701_v3  ;;  %425 = vmatprep.mubr.f32.mxu1 %v701_v3 }
  0x1a   :  { %655 = vmatmul.mubr.msk.f32.vlgmr.msra.gmra.mxu0 %vm81_vm0, %v781_v17  ;;  %659 = vmatmul.mubr.msk.f32.vlgmr.msra.gmra.mxu1 %vm81_vm0, %v781_v17 }
  0x1b   :  { %675 = vmatprep.subr.mxu0 %v52_v37  ;;  %689 = vmatprep.subr.mxu1 %v52_v37 }
  0x1c   :  { %676 = vmatpush3.msra.mxu0 %v52_v37  ;;  %693 = vmatpush3.msra.mxu1 %v52_v37 }
  0x1d   :  { %342 = vmatprep.mubr.f32.mxu0 %v701_v3  ;;  %431 = vmatprep.mubr.f32.mxu1 %v701_v3 }
  0x1e   :  { %656 = vmatmul.mubr.msk.f32.gmra.mxu0 %vm81_vm0, %v802_v22  ;;  %660 = vmatmul.mubr.msk.f32.gmra.mxu1 %vm81_vm0, %v802_v22 }
  0x1f   :  { %677 = vmatprep.subr.mxu0 %v43_v38  ;;  %690 = vmatprep.subr.mxu1 %v43_v38 }
  0x20   :  { %678 = vmatpush3.msra.mxu0 %v43_v38  ;;  %694 = vmatpush3.msra.mxu1 %v43_v38 }
  0x21   :  { %348 = vmatprep.mubr.f32.mxu0 %v701_v3  ;;  %437 = vmatprep.mubr.f32.mxu1 %v701_v3 }
  0x22   :  { %657 = vmatmul.mubr.msk.f32.gmra.mxu0 %vm81_vm0, %v825_v27  ;;  %661 = vmatmul.mubr.msk.f32.gmra.mxu1 %vm81_vm0, %v825_v27 }
  0x23   :  { %679 = vmatprep.subr.mxu0 %v34_v39  ;;  %691 = vmatprep.subr.mxu1 %v34_v39 }
  0x24   :  { %680 = vmatpush3.msra.mxu0 %v34_v39  ;;  %695 = vmatpush3.msra.mxu1 %v34_v39 }
  0x25   :  { %354 = vmatprep.mubr.f32.mxu0 %v701_v3  ;;  %443 = vmatprep.mubr.f32.mxu1 %v701_v3 }
  0x26   :  { %658 = vmatmul.mubr.msk.f32.gmra.mxu0 %vm81_vm0, %v56_v32  ;;  %662 = vmatmul.mubr.msk.f32.gmra.mxu1 %vm81_vm0, %v56_v32 }
  0x27   :  { %681 = vmatprep.subr.mxu0 %v25_v40  ;;  %692 = vmatprep.subr.mxu1 %v25_v40 }
  0x28   :  { %682 = vmatpush3.msra.mxu0 %v25_v40  ;;  %696 = vmatpush3.msra.mxu1 %v25_v40 }
  0x29   :  { %683 = vmatprep.mubr.msk.f32.mxu0 %vm81_vm0, %v781_v17  ;;  %686 = vmatprep.mubr.msk.f32.mxu1 %vm81_vm0, %v825_v27  ;;  %v553_v17 = vld [vmem:[%s1180_s3 + $0x90] sm:$0xff]  ;;  %v556_v27 = vld [vmem:[%s1180_s3 + $0xa8] sm:$0xff] }
  0x2a   :  { %684 = vmatmul.mubr.msk.f32.vlgmr.msra.gmra.mxu0 %vm81_vm0, %v802_v22  ;;  %687 = vmatmul.mubr.msk.f32.vlgmr.msra.gmra.mxu1 %vm81_vm0, %v56_v32 }
  0x2b   :  { %699 = vset.pattern.permute.xlu0 %v702_v43  ;;  %700 = vset.pattern.permute.xlu1 %v702_v43  ;;  %v565_v43 = vld [vmem:[%s1180_s3 + $0xf0] sm:$0xff] }
  0x2c   :  { %63 = vperm.xlu0 %699, %v57_v41   ;;  %73 = vperm.xlu1 %700, %v59_v42   ;;  %v563_v41 = vld [vmem:[%s1180_s3 + $0xe0] sm:$0xff] }
  0x30   :  { %68 = vperm.xlu0 %699, %v58_v44   ;;  %78 = vperm.xlu1 %700, %v60_v45  }
  0xa7   :  { %v917_v46 = vpop.permute.xlu0 %63  ;;  %v937_v62 = vpop.permute.xlu1 %73 }
  0xab   :  { %v927_v53 = vpop.permute.xlu0 %68  ;;  %v981_v23 = vpop.permute.xlu1 %78 }
  0xca   :  { %v160_v47 = vpop.f32.mrf.mxu0  ;;  %v249_v48 = vpop.f32.mrf.mxu1 }
  0xcb   :  { %v161_v51 = vadd.f32 %v160_v47, %v917_v46  ;;  %v250_v52 = vadd.f32 %v249_v48, %v917_v46 }
  0xcc   :  { %v162_v54 = vpop.f32.mrf.mxu0  ;;  %v251_v56 = vpop.f32.mrf.mxu1 }
  0xcd   :  { %v571_v58 = vadd.f32 %v535_v49, %v161_v51  ;;  %v573_v59 = vadd.f32 %v537_v50, %v250_v52  ;;  %v163_v60 = vadd.f32 %v162_v54, %v917_v46  ;;  %v252_v61 = vadd.f32 %v251_v56, %v917_v46  ;;  %v539_v50 = vld [vmem:[%s1180_s3 + $0x20] sm:$0xff]  ;;  %v541_v52 = vld [vmem:[%s1180_s3 + $0x30] sm:$0xff] }
  0xce   :  { %v166_v63 = vpop.f32.mrf.mxu0  ;;  %v255_v0 = vpop.f32.mrf.mxu1 }
  0xcf   :  { %607 = vst [vmem:[%s1181_s4] sm:$0xff] %v571_v58  ;;  %609 = vst [vmem:[%s1181_s4 + $0x10] sm:$0xff] %v573_v59  ;;  %v572_v3 = vadd.f32 %v536_v55, %v163_v60  ;;  %v574_v4 = vadd.f32 %v538_v57, %v252_v61  ;;  %v167_v5 = vadd.f32 %v166_v63, %v927_v53  ;;  %v540_v59 = vld [vmem:[%s1180_s3 + $0x28] sm:$0xff]  ;;  %v542_v61 = vld [vmem:[%s1180_s3 + $0x38] sm:$0xff] }
  0xd0   :  { %v256_v6 = vadd.f32 %v255_v0, %v927_v53  ;;  %v168_v7 = vpop.f32.mrf.mxu0  ;;  %v257_v9 = vpop.f32.mrf.mxu1 }
  0xd1   :  { %608 = vst [vmem:[%s1181_s4 + $0x8] sm:$0xff] %v572_v3  ;;  %610 = vst [vmem:[%s1181_s4 + $0x18] sm:$0xff] %v574_v4  ;;  %v580_v11 = vadd.f32 %v544_v1, %v167_v5  ;;  %v169_v13 = vadd.f32 %v168_v7, %v927_v53  ;;  %v258_v14 = vadd.f32 %v257_v9, %v927_v53  ;;  %v548_v4 = vld [vmem:[%s1180_s3 + $0x68] sm:$0xff] }
  0xd2   :  { %v582_v12 = vadd.f32 %v546_v2, %v256_v6  ;;  %v172_v15 = vpop.f32.mrf.mxu0  ;;  %v261_v16 = vpop.f32.mrf.mxu1  ;;  %v550_v6 = vld [vmem:[%s1180_s3 + $0x78] sm:$0xff] }
  0xd3   :  { %616 = vst [vmem:[%s1181_s4 + $0x48] sm:$0xff] %v580_v11  ;;  %v581_v19 = vadd.f32 %v545_v8, %v169_v13  ;;  %v583_v20 = vadd.f32 %v547_v10, %v258_v14  ;;  %v173_v21 = vadd.f32 %v172_v15, %v937_v62  ;;  %v262_v22 = vadd.f32 %v261_v16, %v937_v62  ;;  %v551_v14 = vld [vmem:[%s1180_s3 + $0x80] sm:$0xff] }
  0xd4   :  { %618 = vst [vmem:[%s1181_s4 + $0x58] sm:$0xff] %v582_v12  ;;  %v174_v24 = vpop.f32.mrf.mxu0  ;;  %v263_v26 = vpop.f32.mrf.mxu1  ;;  %v549_v12 = vld [vmem:[%s1180_s3 + $0x70] sm:$0xff] }
  0xd5   :  { %617 = vst [vmem:[%s1181_s4 + $0x50] sm:$0xff] %v581_v19  ;;  %619 = vst [vmem:[%s1181_s4 + $0x60] sm:$0xff] %v583_v20  ;;  %v589_v28 = vadd.f32 %v553_v17, %v173_v21  ;;  %v591_v29 = vadd.f32 %v555_v18, %v262_v22  ;;  %v175_v30 = vadd.f32 %v174_v24, %v937_v62  ;;  %v557_v20 = vld [vmem:[%s1180_s3 + $0xb0] sm:$0xff]  ;;  %v559_v22 = vld [vmem:[%s1180_s3 + $0xc0] sm:$0xff] }
  0xd6   :  { %v264_v31 = vadd.f32 %v263_v26, %v937_v62  ;;  %v178_v32 = vpop.f32.mrf.mxu0  ;;  %v267_v33 = vpop.f32.mrf.mxu1 }
  0xd7   :  { %625 = vst [vmem:[%s1181_s4 + $0x90] sm:$0xff] %v589_v28  ;;  %627 = vst [vmem:[%s1181_s4 + $0xa0] sm:$0xff] %v591_v29  ;;  %v590_v36 = vadd.f32 %v554_v25, %v175_v30  ;;  %v179_v38 = vadd.f32 %v178_v32, %v981_v23  ;;  %v268_v39 = vadd.f32 %v267_v33, %v981_v23  ;;  %v558_v29 = vld [vmem:[%s1180_s3 + $0xb8] sm:$0xff] }
  0xd8   :  { %v592_v37 = vadd.f32 %v556_v27, %v264_v31  ;;  %v180_v40 = vpop.f32.mrf.mxu0  ;;  %v269_v42 = vpop.f32.mrf.mxu1  ;;  %v560_v31 = vld [vmem:[%s1180_s3 + $0xc8] sm:$0xff] }
  0xd9   :  { %626 = vst [vmem:[%s1181_s4 + $0x98] sm:$0xff] %v590_v36  ;;  %v598_v44 = vadd.f32 %v562_v34, %v179_v38  ;;  %v600_v45 = vadd.f32 %v564_v35, %v268_v39  ;;  %v181_v47 = vadd.f32 %v180_v40, %v981_v23  ;;  %v270_v48 = vadd.f32 %v269_v42, %v981_v23  ;;  %v568_v39 = vld [vmem:[%s1180_s3 + $0x108] sm:$0xff] }
  0xda   :  { %628 = vst [vmem:[%s1181_s4 + $0xa8] sm:$0xff] %v592_v37  ;;  %v338_v49 = vpop.f32.mrf.mxu0  ;;  %v427_v51 = vpop.f32.mrf.mxu1  ;;  %v566_v37 = vld [vmem:[%s1180_s3 + $0xf8] sm:$0xff] }
  0xdb   :  { %634 = vst [vmem:[%s1181_s4 + $0xd8] sm:$0xff] %v598_v44  ;;  %636 = vst [vmem:[%s1181_s4 + $0xe8] sm:$0xff] %v600_v45  ;;  %v599_v54 = vadd.f32 %v563_v41, %v181_v47  ;;  %v601_v55 = vadd.f32 %v565_v43, %v270_v48  ;;  %v339_v56 = vadd.f32 %v338_v49, %v917_v46  ;;  %v567_v45 = vld [vmem:[%s1180_s3 + $0x100] sm:$0xff]  ;;  %v569_v48 = vld [vmem:[%s1180_s3 + $0x110] sm:$0xff] }
  0xdc   :  { %v428_v57 = vadd.f32 %v427_v51, %v917_v46  ;;  %v340_v58 = vpop.f32.mrf.mxu0  ;;  %v429_v60 = vpop.f32.mrf.mxu1 }
  0xdd   :  { %635 = vst [vmem:[%s1181_s4 + $0xe0] sm:$0xff] %v599_v54  ;;  %637 = vst [vmem:[%s1181_s4 + $0xf0] sm:$0xff] %v601_v55  ;;  %v575_v63 = vadd.f32 %v539_v50, %v339_v56  ;;  %v341_v1 = vadd.f32 %v340_v58, %v917_v46  ;;  %v430_v2 = vadd.f32 %v429_v60, %v917_v46  ;;  %v552_v55 = vld [vmem:[%s1180_s3 + $0x88] sm:$0xff] }
  0xde   :  { %v577_v0 = vadd.f32 %v541_v52, %v428_v57  ;;  %v344_v3 = vpop.f32.mrf.mxu0  ;;  %v433_v5 = vpop.f32.mrf.mxu1  ;;  %v570_v57 = vld [vmem:[%s1180_s3 + $0x118] sm:$0xff] }
  0xdf   :  { %611 = vst [vmem:[%s1181_s4 + $0x20] sm:$0xff] %v575_v63  ;;  %v576_v7 = vadd.f32 %v540_v59, %v341_v1  ;;  %v578_v8 = vadd.f32 %v542_v61, %v430_v2  ;;  %v345_v9 = vadd.f32 %v344_v3, %v927_v53  ;;  %v434_v10 = vadd.f32 %v433_v5, %v927_v53  ;;  %v561_v2 = vld [vmem:[%s1180_s3 + $0xd0] sm:$0xff] }
  0xe0   :  { %613 = vst [vmem:[%s1181_s4 + $0x30] sm:$0xff] %v577_v0  ;;  %v346_v11 = vpop.f32.mrf.mxu0  ;;  %v435_v13 = vpop.f32.mrf.mxu1  ;;  %v543_v0 = vld [vmem:[%s1180_s3 + $0x40] sm:$0xff] }
  0xe1   :  { %612 = vst [vmem:[%s1181_s4 + $0x28] sm:$0xff] %v576_v7  ;;  %614 = vst [vmem:[%s1181_s4 + $0x38] sm:$0xff] %v578_v8  ;;  %v584_v15 = vadd.f32 %v548_v4, %v345_v9  ;;  %v586_v16 = vadd.f32 %v550_v6, %v434_v10  ;;  %v347_v17 = vadd.f32 %v346_v11, %v927_v53 }
  0xe2   :  { %v436_v18 = vadd.f32 %v435_v13, %v927_v53  ;;  %v350_v19 = vpop.f32.mrf.mxu0  ;;  %v439_v21 = vpop.f32.mrf.mxu1 }
  0xe3   :  { %620 = vst [vmem:[%s1181_s4 + $0x68] sm:$0xff] %v584_v15  ;;  %622 = vst [vmem:[%s1181_s4 + $0x78] sm:$0xff] %v586_v16  ;;  %v585_v24 = vadd.f32 %v549_v12, %v347_v17  ;;  %v351_v26 = vadd.f32 %v350_v19, %v937_v62  ;;  %v440_v27 = vadd.f32 %v439_v21, %v937_v62 }
  0xe4   :  { %v587_v25 = vadd.f32 %v551_v14, %v436_v18  ;;  %v352_v28 = vpop.f32.mrf.mxu0  ;;  %v441_v30 = vpop.f32.mrf.mxu1 }
  0xe5   :  { %621 = vst [vmem:[%s1181_s4 + $0x70] sm:$0xff] %v585_v24  ;;  %v593_v32 = vadd.f32 %v557_v20, %v351_v26  ;;  %v595_v33 = vadd.f32 %v559_v22, %v440_v27  ;;  %v353_v34 = vadd.f32 %v352_v28, %v937_v62  ;;  %v442_v35 = vadd.f32 %v441_v30, %v937_v62 }
  0xe6   :  { %623 = vst [vmem:[%s1181_s4 + $0x80] sm:$0xff] %v587_v25  ;;  %v356_v36 = vpop.f32.mrf.mxu0  ;;  %v445_v38 = vpop.f32.mrf.mxu1 }
  0xe7   :  { %629 = vst [vmem:[%s1181_s4 + $0xb0] sm:$0xff] %v593_v32  ;;  %631 = vst [vmem:[%s1181_s4 + $0xc0] sm:$0xff] %v595_v33  ;;  %v594_v40 = vadd.f32 %v558_v29, %v353_v34  ;;  %v596_v41 = vadd.f32 %v560_v31, %v442_v35  ;;  %v357_v42 = vadd.f32 %v356_v36, %v981_v23 }
  0xe8   :  { %v446_v43 = vadd.f32 %v445_v38, %v981_v23  ;;  %v358_v44 = vpop.f32.mrf.mxu0  ;;  %v447_v47 = vpop.f32.mrf.mxu1 }
  0xe9   :  { %630 = vst [vmem:[%s1181_s4 + $0xb8] sm:$0xff] %v594_v40  ;;  %632 = vst [vmem:[%s1181_s4 + $0xc8] sm:$0xff] %v596_v41  ;;  %v602_v49 = vadd.f32 %v566_v37, %v357_v42  ;;  %v359_v51 = vadd.f32 %v358_v44, %v981_v23  ;;  %v448_v52 = vadd.f32 %v447_v47, %v981_v23 }
  0xea   :  { %v604_v50 = vadd.f32 %v568_v39, %v446_v43  ;;  %v685_v54 = vpop.f32.mrf.mxu0  ;;  %v688_v56 = vpop.f32.mrf.mxu1 }
  0xeb   :  { %638 = vst [vmem:[%s1181_s4 + $0xf8] sm:$0xff] %v602_v49  ;;  %v603_v58 = vadd.f32 %v567_v45, %v359_v51  ;;  %v605_v59 = vadd.f32 %v569_v48, %v448_v52  ;;  %v522_v60 = vadd.f32 %v685_v54, %v927_v53  ;;  %v532_v61 = vadd.f32 %v688_v56, %v981_v23 }
  0xec   :  { %640 = vst [vmem:[%s1181_s4 + $0x108] sm:$0xff] %v604_v50  ;;  %v516_v63 = vpop.f32.mrf.mxu0  ;;  %v526_v1 = vpop.f32.mrf.mxu1 }
  0xed   :  { %639 = vst [vmem:[%s1181_s4 + $0x100] sm:$0xff] %v603_v58  ;;  %641 = vst [vmem:[%s1181_s4 + $0x110] sm:$0xff] %v605_v59  ;;  %v588_v53 = vadd.f32 %v552_v55, %v522_v60  ;;  %v606_v23 = vadd.f32 %v570_v57, %v532_v61  ;;  %v517_v3 = vadd.f32 %v516_v63, %v917_v46 }
  0xee   :  { %v527_v4 = vadd.f32 %v526_v1, %v937_v62 }
  0xef   :  { %624 = vst [vmem:[%s1181_s4 + $0x88] sm:$0xff] %v588_v53  ;;  %642 = vst [vmem:[%s1181_s4 + $0x118] sm:$0xff] %v606_v23  ;;  %v579_v5 = vadd.f32 %v543_v0, %v517_v3 }
  0xf0   :  { %v597_v6 = vadd.f32 %v561_v2, %v527_v4 }
  0xf1   :  { %615 = vst [vmem:[%s1181_s4 + $0x40] sm:$0xff] %v579_v5 }
  0xf2   :  { %633 = vst [vmem:[%s1181_s4 + $0xd0] sm:$0xff] %v597_v6 }

// kernel: fno_forward.11
= control target key start
LH: loop header
LB: loop body
LE: loop exit
PB: predicated region body
PF: predicated region fallthrough
CT: control target
= control target key end

     0   :  { %v684_v3 = vmov 0.0   ;;  %vm56_vm0 = vcmask 261120   ;;  %v685_v20 = vmov 0   ;;  %vm271_vm1 = vcmask 130048   ;;  %s838_s0 = inlined_call_operand.vmem [shape: f32[32,512], index: 0, kind: input, shape index: {}]   ;;  %s839_s1 = inlined_call_operand.vmem [shape: f32[16,32], index: 1, kind: input, shape index: {}]   ;;  %s840_s2 = inlined_call_operand.vmem [shape: f32[16,1], index: 2, kind: input, shape index: {}]   ;;  %s841_s6 = inlined_call_operand.vmem [shape: f32[3,1], index: 6, kind: input, shape index: {}]   ;;  %s842_s4 = inlined_call_operand.vmem [shape: f32[16,1], index: 4, kind: input, shape index: {}]   ;;  %s843_s3 = inlined_call_operand.vmem [shape: f32[16,16], index: 3, kind: input, shape index: {}]   ;;  %s844_s5 = inlined_call_operand.vmem [shape: f32[3,16], index: 5, kind: input, shape index: {}]   ;;  %s845_s7 = inlined_call_operand.vmem [shape: f32[3,512], index: 7, kind: output, shape index: {}]  }
   0x1   :  { %v39_v0 = vld [vmem:[%s838_s0 + $0x68] sm:$0xff]  ;;  %v41_v1 = vld [vmem:[%s838_s0 + $0x78] sm:$0xff]  ;;  %v38_v2 = vld [vmem:[%s838_s0 + $0x60] sm:$0xff]  ;;  %127 = vmatprep.mubr.f32.mxu0 %v684_v3  ;;  %204 = vmatprep.mubr.f32.mxu1 %v684_v3 }
   0x2   :  { %87 = vmatprep.subr.mxu0 %v39_v0  ;;  %164 = vmatprep.subr.mxu1 %v41_v1  ;;  %v40_v4 = vld [vmem:[%s838_s0 + $0x70] sm:$0xff]  ;;  %v35_v5 = vld [vmem:[%s838_s0 + $0x48] sm:$0xff]  ;;  %v37_v6 = vld [vmem:[%s838_s0 + $0x58] sm:$0xff] }
   0x3   :  { %88 = vmatpush1.msra.mxu0 %v38_v2  ;;  %165 = vmatpush1.msra.mxu1 %v40_v4  ;;  %v34_v7 = vld [vmem:[%s838_s0 + $0x40] sm:$0xff]  ;;  %v36_v8 = vld [vmem:[%s838_s0 + $0x50] sm:$0xff]  ;;  %v31_v9 = vld [vmem:[%s838_s0 + $0x28] sm:$0xff] }
   0x4   :  { %89 = vmatprep.subr.mxu0 %v35_v5  ;;  %166 = vmatprep.subr.mxu1 %v37_v6  ;;  %v33_v10 = vld [vmem:[%s838_s0 + $0x38] sm:$0xff]  ;;  %v30_v11 = vld [vmem:[%s838_s0 + $0x20] sm:$0xff]  ;;  %v32_v12 = vld [vmem:[%s838_s0 + $0x30] sm:$0xff] }
   0x5   :  { %90 = vmatpush1.msra.mxu0 %v34_v7  ;;  %167 = vmatpush1.msra.mxu1 %v36_v8  ;;  %v27_v13 = vld [vmem:[%s838_s0 + $0x8] sm:$0xff]  ;;  %v29_v14 = vld [vmem:[%s838_s0 + $0x18] sm:$0xff]  ;;  %v26_v15 = vld [vmem:[%s838_s0] sm:$0xff] }
   0x6   :  { %91 = vmatprep.subr.mxu0 %v31_v9  ;;  %168 = vmatprep.subr.mxu1 %v33_v10  ;;  %v28_v16 = vld [vmem:[%s838_s0 + $0x10] sm:$0xff]  ;;  %v42_v17 = vld [vmem:[%s839_s1] sm:$0xff]  ;;  %v45_v18 = vld [vmem:[%s840_s2 + $0x8] sm:$0xff] }
   0x7   :  { %92 = vmatpush1.msra.mxu0 %v30_v11  ;;  %169 = vmatpush1.msra.mxu1 %v32_v12  ;;  %v43_v19 = vld [vmem:[%s839_s1 + $0x8] sm:$0xff]  ;;  %v44_v21 = vld [vmem:[%s840_s2] sm:$0xff] }
   0x8   :  { %93 = vmatprep.subr.mxu0 %v27_v13  ;;  %170 = vmatprep.subr.mxu1 %v29_v14  ;;  %v473_v22 = vld [vmem:[%s841_s6] sm:$0x7]  ;;  %v260_v23 = vld [vmem:[%s842_s4 + $0x8] sm:$0xff] }
   0x9   :  { %94 = vmatpush1.msra.mxu0 %v26_v15  ;;  %171 = vmatpush1.msra.mxu1 %v28_v16  ;;  %v259_v24 = vld [vmem:[%s842_s4] sm:$0xff] }
   0xa   :  { %638 = vmatmul.mubr.msk.f32.vlgmr.msra.gmra.mxu0 %vm56_vm0, %v42_v17  ;;  %640 = vmatmul.mubr.msk.f32.vlgmr.msra.gmra.mxu1 %vm56_vm0, %v42_v17 }
   0xb   :  { %133 = vmatprep.mubr.f32.mxu0 %v684_v3  ;;  %210 = vmatprep.mubr.f32.mxu1 %v684_v3 }
   0xc   :  { %650 = vset.pattern.permute.xlu0 %v685_v20  ;;  %651 = vset.pattern.permute.xlu1 %v685_v20 }
   0xd   :  { %53 = vperm.xlu0 %650, %v45_v18   ;;  %268 = vperm.xlu1 %651, %v260_v23  }
   0xe   :  { %639 = vmatmul.mubr.msk.f32.gmra.mxu0 %vm56_vm0, %v43_v19  ;;  %641 = vmatmul.mubr.msk.f32.gmra.mxu1 %vm56_vm0, %v43_v19  ;;  %v257_v19 = vld [vmem:[%s843_s3] sm:$0xff] }
   0xf   :  { %342 = vmatprep.mubr.f32.mxu0 %v684_v3  ;;  %419 = vmatprep.mubr.f32.mxu1 %v684_v3 }
  0x11   :  { %48 = vperm.xlu0 %650, %v44_v21   ;;  %263 = vperm.xlu1 %651, %v259_v24   ;;  %v258_v21 = vld [vmem:[%s843_s3 + $0x8] sm:$0xff] }
  0x15   :  { %476 = vperm.xlu0 %650, %v473_v22  }
  0x88   :  { %v54_v25 = vpop.permute.xlu0 %53  ;;  %v269_v22 = vpop.permute.xlu1 %268 }
  0x8c   :  { %v49_v26 = vpop.permute.xlu0 %48  ;;  %v264_v23 = vpop.permute.xlu1 %263 }
  0xca   :  { %v129_v27 = vpop.f32.mrf.mxu0  ;;  %v206_v28 = vpop.f32.mrf.mxu1 }
  0xcb   :  { %v130_v29 = vadd.f32 %v129_v27, %v49_v26  ;;  %v805_v30 = vadd.f32 %v206_v28, %v49_v26 }
  0xcc   :  { %v131_v31 = vpop.f32.mrf.mxu0  ;;  %v208_v32 = vpop.f32.mrf.mxu1 }
  0xcd   :  { %v217_v33 = vmul.f32 0.5, %v130_v29  ;;  %v219_v34 = vmul.f32 0.5, %v805_v30  ;;  %v132_v35 = vadd.f32 %v131_v31, %v49_v26  ;;  %v209_v36 = vadd.f32 %v208_v32, %v49_v26 }
  0xce   :  { %v135_v37 = vpop.f32.mrf.mxu0  ;;  %v212_v38 = vpop.f32.mrf.mxu1 }
  0xcf   :  { %652 = vtanh.f32 %v217_v33  ;;  %v218_v39 = vmul.f32 0.5, %v132_v35  ;;  %v220_v40 = vmul.f32 0.5, %v209_v36  ;;  %v136_v41 = vadd.f32 %v135_v37, %v54_v25 }
  0xd0   :  { %654 = vtanh.f32 %v219_v34  ;;  %v213_v42 = vadd.f32 %v212_v38, %v54_v25  ;;  %v137_v43 = vpop.f32.mrf.mxu0  ;;  %v214_v44 = vpop.f32.mrf.mxu1 }
  0xd1   :  { %656 = vtanh.f32 %v218_v39  ;;  %v221_v45 = vmul.f32 0.5, %v136_v41  ;;  %v138_v46 = vadd.f32 %v137_v43, %v54_v25  ;;  %v215_v47 = vadd.f32 %v214_v44, %v54_v25 }
  0xd2   :  { %658 = vtanh.f32 %v220_v40  ;;  %v223_v48 = vmul.f32 0.5, %v213_v42 }
  0xd3   :  { %660 = vtanh.f32 %v221_v45  ;;  %v222_v49 = vmul.f32 0.5, %v138_v46  ;;  %v224_v50 = vmul.f32 0.5, %v215_v47 }
  0xd4   :  { %662 = vtanh.f32 %v223_v48 }
  0xd5   :  { %664 = vtanh.f32 %v222_v49 }
  0xd6   :  { %666 = vtanh.f32 %v224_v50 }
  0xdc   :  { %v653_v51 = vpop.eup %652 }
  0xdd   :  { %v655_v52 = vpop.eup %654  ;;  %v233_v60 = vadd.f32 1.0, %v653_v51 }
  0xde   :  { %v657_v53 = vpop.eup %656  ;;  %v235_v0 = vadd.f32 1.0, %v655_v52 }
  0xdf   :  { %v659_v54 = vpop.eup %658  ;;  %v234_v57 = vadd.f32 1.0, %v657_v53  ;;  %v241_v8 = vmul.f32 0.5, %v233_v60 }
  0xe0   :  { %v661_v55 = vpop.eup %660  ;;  %v236_v61 = vadd.f32 1.0, %v659_v54  ;;  %v243_v11 = vmul.f32 0.5, %v235_v0 }
  0xe1   :  { %v663_v56 = vpop.eup %662  ;;  %v237_v58 = vadd.f32 1.0, %v661_v55  ;;  %v242_v5 = vmul.f32 0.5, %v234_v57  ;;  %v249_v17 = vmul.f32 %v241_v8, %v130_v29 }
  0xe2   :  { %v665_v59 = vpop.eup %664  ;;  %v239_v62 = vadd.f32 1.0, %v663_v56  ;;  %v244_v9 = vmul.f32 0.5, %v236_v61  ;;  %v251_v20 = vmul.f32 %v243_v11, %v805_v30 }
  0xe3   :  { %v667_v63 = vpop.eup %666  ;;  %v238_v1 = vadd.f32 1.0, %v665_v59  ;;  %v245_v2 = vmul.f32 0.5, %v237_v58  ;;  %v250_v15 = vmul.f32 %v242_v5, %v132_v35 }
  0xe4   :  { %v240_v4 = vadd.f32 1.0, %v667_v63  ;;  %v247_v6 = vmul.f32 0.5, %v239_v62  ;;  %v252_v18 = vmul.f32 %v244_v9, %v209_v36 }
  0xe5   :  { %v246_v7 = vmul.f32 0.5, %v238_v1  ;;  %v253_v13 = vmul.f32 %v245_v2, %v136_v41 }
  0xe6   :  { %v248_v10 = vmul.f32 0.5, %v240_v4  ;;  %v255_v16 = vmul.f32 %v247_v6, %v213_v42 }
  0xe7   :  { %v254_v12 = vmul.f32 %v246_v7, %v138_v46 }
  0xe8   :  { %v256_v14 = vmul.f32 %v248_v10, %v215_v47 }
  0xe9   :  { %306 = vmatprep.subr.mxu0 %v254_v12 }
  0xea   :  { %383 = vmatprep.subr.mxu1 %v256_v14  ;;  %307 = vmatpush1.msra.mxu0 %v253_v13 }
  0xeb   :  { %384 = vmatpush1.msra.mxu1 %v255_v16  ;;  %308 = vmatprep.subr.mxu0 %v250_v15  ;;  %v472_v15 = vld [vmem:[%s844_s5] sm:$0x7] }
  0xec   :  { %385 = vmatprep.subr.mxu1 %v252_v18  ;;  %309 = vmatpush1.msra.mxu0 %v249_v17 }
  0xed   :  { %386 = vmatpush1.msra.mxu1 %v251_v20  ;;  %642 = vmatmul.mubr.msk.f32.vlgmr.msra.gmra.mxu0 %vm271_vm1, %v257_v19 }
  0xee   :  { %644 = vmatmul.mubr.msk.f32.vlgmr.msra.gmra.mxu1 %vm271_vm1, %v257_v19  ;;  %348 = vmatprep.mubr.f32.mxu0 %v684_v3  ;;  %v477_v19 = vpop.permute.xlu0 %476 }
  0xef   :  { %425 = vmatprep.mubr.f32.mxu1 %v684_v3 }
  0xf1   :  { %643 = vmatmul.mubr.msk.f32.gmra.mxu0 %vm271_vm1, %v258_v21 }
  0xf2   :  { %645 = vmatmul.mubr.msk.f32.gmra.mxu1 %vm271_vm1, %v258_v21  ;;  %546 = vmatprep.mubr.f32.mxu0 %v684_v3 }
  0xf3   :  { %617 = vmatprep.mubr.f32.mxu1 %v684_v3 }
 0x1ad   :  { %v344_v24 = vpop.f32.mrf.mxu0 }
 0x1ae   :  { %v345_v25 = vadd.f32 %v344_v24, %v264_v23  ;;  %v421_v26 = vpop.f32.mrf.mxu1 }
 0x1af   :  { %v823_v27 = vadd.f32 %v421_v26, %v264_v23  ;;  %v346_v28 = vpop.f32.mrf.mxu0 }
 0x1b0   :  { %v432_v29 = vmul.f32 0.5, %v345_v25  ;;  %v347_v30 = vadd.f32 %v346_v28, %v264_v23  ;;  %v423_v31 = vpop.f32.mrf.mxu1 }
 0x1b1   :  { %v434_v32 = vmul.f32 0.5, %v823_v27  ;;  %v424_v33 = vadd.f32 %v423_v31, %v264_v23  ;;  %v350_v34 = vpop.f32.mrf.mxu0 }
 0x1b2   :  { %668 = vtanh.f32 %v432_v29  ;;  %v433_v35 = vmul.f32 0.5, %v347_v30  ;;  %v351_v36 = vadd.f32 %v350_v34, %v269_v22  ;;  %v427_v37 = vpop.f32.mrf.mxu1 }
 0x1b3   :  { %670 = vtanh.f32 %v434_v32  ;;  %v435_v3 = vmul.f32 0.5, %v424_v33  ;;  %v428_v38 = vadd.f32 %v427_v37, %v269_v22  ;;  %v352_v39 = vpop.f32.mrf.mxu0 }
 0x1b4   :  { %672 = vtanh.f32 %v433_v35  ;;  %v436_v40 = vmul.f32 0.5, %v351_v36  ;;  %v353_v41 = vadd.f32 %v352_v39, %v269_v22  ;;  %v429_v42 = vpop.f32.mrf.mxu1 }
 0x1b5   :  { %674 = vtanh.f32 %v435_v3  ;;  %v438_v43 = vmul.f32 0.5, %v428_v38  ;;  %v430_v44 = vadd.f32 %v429_v42, %v269_v22 }
 0x1b6   :  { %676 = vtanh.f32 %v436_v40  ;;  %v437_v45 = vmul.f32 0.5, %v353_v41 }
 0x1b7   :  { %678 = vtanh.f32 %v438_v43  ;;  %v439_v46 = vmul.f32 0.5, %v430_v44 }
 0x1b8   :  { %680 = vtanh.f32 %v437_v45 }
 0x1b9   :  { %682 = vtanh.f32 %v439_v46 }
 0x1bf   :  { %v669_v47 = vpop.eup %668 }
 0x1c0   :  { %v671_v48 = vpop.eup %670  ;;  %v448_v56 = vadd.f32 1.0, %v669_v47 }
 0x1c1   :  { %v673_v49 = vpop.eup %672  ;;  %v450_v60 = vadd.f32 1.0, %v671_v48 }
 0x1c2   :  { %v675_v50 = vpop.eup %674  ;;  %v449_v53 = vadd.f32 1.0, %v673_v49  ;;  %v456_v4 = vmul.f32 0.5, %v448_v56 }
 0x1c3   :  { %v677_v51 = vpop.eup %676  ;;  %v451_v57 = vadd.f32 1.0, %v675_v50  ;;  %v458_v7 = vmul.f32 0.5, %v450_v60 }
 0x1c4   :  { %v679_v52 = vpop.eup %678  ;;  %v452_v54 = vadd.f32 1.0, %v677_v51  ;;  %v457_v0 = vmul.f32 0.5, %v449_v53  ;;  %v464_v13 = vmul.f32 %v456_v4, %v345_v25 }
 0x1c5   :  { %v681_v55 = vpop.eup %680  ;;  %v454_v58 = vadd.f32 1.0, %v679_v52  ;;  %v459_v5 = vmul.f32 0.5, %v451_v57  ;;  %v466_v16 = vmul.f32 %v458_v7, %v823_v27 }
 0x1c6   :  { %v683_v59 = vpop.eup %682  ;;  %v453_v61 = vadd.f32 1.0, %v681_v55  ;;  %v460_v62 = vmul.f32 0.5, %v452_v54  ;;  %v465_v11 = vmul.f32 %v457_v0, %v347_v30 }
 0x1c7   :  { %v455_v63 = vadd.f32 1.0, %v683_v59  ;;  %v462_v1 = vmul.f32 0.5, %v454_v58  ;;  %v467_v14 = vmul.f32 %v459_v5, %v424_v33 }
 0x1c8   :  { %v461_v2 = vmul.f32 0.5, %v453_v61  ;;  %v468_v9 = vmul.f32 %v460_v62, %v351_v36 }
 0x1c9   :  { %v463_v6 = vmul.f32 0.5, %v455_v63  ;;  %v470_v12 = vmul.f32 %v462_v1, %v428_v38 }
 0x1ca   :  { %v469_v8 = vmul.f32 %v461_v2, %v353_v41 }
 0x1cb   :  { %v471_v10 = vmul.f32 %v463_v6, %v430_v44 }
 0x1cc   :  { %510 = vmatprep.subr.mxu0 %v469_v8 }
 0x1cd   :  { %581 = vmatprep.subr.mxu1 %v471_v10  ;;  %511 = vmatpush1.msra.mxu0 %v468_v9 }
 0x1ce   :  { %582 = vmatpush1.msra.mxu1 %v470_v12  ;;  %512 = vmatprep.subr.mxu0 %v465_v11 }
 0x1cf   :  { %583 = vmatprep.subr.mxu1 %v467_v14  ;;  %513 = vmatpush1.msra.mxu0 %v464_v13 }
 0x1d0   :  { %584 = vmatpush1.msra.mxu1 %v466_v16  ;;  %646 = vmatmul.mubr.msk.f32.vlgmr.msra.gmra.mxu0 %vm271_vm1, %v472_v15 }
 0x1d1   :  { %647 = vmatmul.mubr.msk.f32.vlgmr.msra.gmra.mxu1 %vm271_vm1, %v472_v15 }
 0x290   :  { %v548_v17 = vpop.f32.mrf.mxu0 }
 0x291   :  { %v619_v18 = vpop.f32.mrf.mxu1  ;;  %v549_v21 = vadd.f32 %v548_v17, %v477_v19 }
 0x292   :  { %v550_v20 = vpop.f32.mrf.mxu0  ;;  %v620_v24 = vadd.f32 %v619_v18, %v477_v19 }
 0x293   :  { %v551_v22 = vadd.f32 %v550_v20, %v477_v19  ;;  %v621_v23 = vpop.f32.mrf.mxu1 }
 0x294   :  { %v622_v25 = vadd.f32 %v621_v23, %v477_v19 }
 0x295   :  { %v628_v26 = vcombine.low %v549_v21, %v551_v22 }
 0x296   :  { %v629_v27 = vcombine.low %v620_v24, %v622_v25 }
 0x297   :  { %632 = vst [vmem:[%s845_s7] sm:$0x77] %v628_v26 }
 0x298   :  { %633 = vst [vmem:[%s845_s7 + $0x8] sm:$0x77] %v629_v27 }

</bundles_post_ra>
